<compile_context>
chip_gen: v7x
topology: tpu7x:2x2x1
jax: 0.10.0
libtpu: 0.0.40
codegen_flags: <defaults>
</compile_context>

<pallas_src>
import functools

import jax
import jax.numpy as jnp
import numpy as np
from jax.experimental import pallas as pl
from jax.experimental.pallas import tpu as pltpu


def _bottleneck_kernel(H, W, W_out,
                       xm_ref, xh0_ref, xh1_ref,
                       w1_ref, b1_ref,
                       w2_ref, b2_ref,
                       w3_ref, b3_ref,
                       o_ref):
    # xm_ref : (1, TH, Wp, Cin) bf16 -- main rows of the padded input strip
    # xh*_ref: (1, 1,  Wp, Cin) bf16 -- the two halo rows directly below them
    TH, Wp, Cin = xm_ref.shape[1], xm_ref.shape[2], xm_ref.shape[3]
    width = w1_ref.shape[1]
    Cout = w3_ref.shape[1]
    m_rows = TH * Wp
    total = (TH + 2) * Wp
    i = pl.program_id(1)

    xm = xm_ref[0].reshape(m_rows, Cin)          # strip rows [0, TH)
    xh0 = xh0_ref[0, 0]                          # strip row TH
    xh1 = xh1_ref[0, 0]                          # strip row TH + 1

    # ---- conv1 (1x1, BN1 scale folded into the weights) + bias + relu ------
    h1 = jnp.concatenate(
        [jnp.dot(xm, w1_ref[...], preferred_element_type=jnp.float32),
         jnp.dot(jnp.concatenate([xh0, xh1], axis=0), w1_ref[...],
                 preferred_element_type=jnp.float32)], axis=0)     # (total, width)
    h1 = jnp.maximum(h1 + b1_ref[...], 0.0)

    # Zero the spatial-padding pixels (a zero input pixel becomes relu(b1)
    # after the BN bias, which must be masked so the 3x3 conv sees true zeros).
    h1 = h1.reshape(TH + 2, Wp, width)
    row_g = i * TH + jax.lax.broadcasted_iota(jnp.int32, (TH + 2, Wp, 1), 0)
    col_g = jax.lax.broadcasted_iota(jnp.int32, (TH + 2, Wp, 1), 1)
    is_pad = (row_g == 0) | (row_g == H + 1) | (col_g == 0) | (col_g >= W + 1)
    h1 = jnp.where(is_pad, 0.0, h1).reshape(total, width)          # f32

    # ---- conv2 (3x3) as ONE matmul with K = 9*width -------------------------
    # dx taps via sublane roll (XLU); dy taps are aligned row offsets.  Rolled
    # wrap-around values only land in discarded pad columns.
    g = jnp.concatenate(
        [h1,
         pltpu.roll(h1, total - 1, axis=0),
         pltpu.roll(h1, total - 2, axis=0)], axis=-1)               # (total, 3*width)
    g9 = jnp.concatenate(
        [g[0:m_rows], g[Wp:Wp + m_rows], g[2 * Wp:2 * Wp + m_rows]],
        axis=-1).astype(jnp.bfloat16)                               # (m_rows, 9*width)
    h2 = jnp.maximum(
        jnp.dot(g9, w2_ref[...], preferred_element_type=jnp.float32)
        + b2_ref[...], 0.0)                                         # (m_rows, width)

    # ---- conv3 (1x1) + bias + residual add + relu ---------------------------
    h3 = jnp.dot(h2.astype(jnp.bfloat16), w3_ref[...],
                 preferred_element_type=jnp.float32) + b3_ref[...]  # (m_rows, Cout)
    # Identity pixel for output flat position p sits at strip flat p + Wp + 1:
    # strip rows [1, TH] shifted by one column (roll by -1 on the flat axis).
    x_id = jnp.concatenate([xm[Wp:], xh0], axis=0).astype(jnp.float32)
    ident = pltpu.roll(x_id, m_rows - 1, axis=0)                    # (m_rows, Cin)
    out = jnp.maximum(h3 + ident, 0.0)

    o_ref[0] = out.reshape(TH, Wp, Cout)[:, :W_out, :].astype(o_ref.dtype)


def _largest_divisor_leq(n, cap):
    cap = max(1, min(n, cap))
    for t in range(cap, 0, -1):
        if n % t == 0:
            return t
    return n


def _pick_vmem_limit():
    cap = None
    try:
        info = pltpu.get_tpu_info()
        cap = getattr(info, "vmem_capacity_bytes", None)
    except Exception:
        cap = None
    if not cap:
        cap = 64 * 1024 * 1024                      # conservative (v7x physical)
    return int(min(100 * 1024 * 1024, (cap * 3) // 4))


@functools.partial(jax.jit, static_argnames=("tile_h",))
def bottleneck_pallas(x_nhwc, w1, s1, b1, w2, s2, b2, w3, s3, b3, *, tile_h=32):
    """x_nhwc: (N,H,W,Cin).  w1:(Cin,width)  w2:(3,3,width,width) [ky,kx,ci,co]
    w3:(width,Cout).  s*/b*: folded eval-mode BatchNorm scale/bias, shape (1,C)."""
    N, H, W, Cin = x_nhwc.shape
    width = w1.shape[1]
    Cout = w3.shape[1]
    assert Cin == Cout, (
        "Bottleneck with downsample=None requires inplanes == planes*expansion")

    TH = _largest_divisor_leq(H, tile_h)
    n_strips = H // TH

    # Pad once in HBM (+1 row top/bottom, +1 col left, right pad to a multiple
    # of 16 so bf16 row slices stay sublane-pack aligned).  The f32->bf16 cast
    # fuses into this single pad pass.
    Wp = ((W + 2 + 15) // 16) * 16
    W_out = W if W % 8 == 0 else Wp                 # aligned stores when possible
    x_pad = jnp.pad(x_nhwc.astype(jnp.bfloat16),
                    ((0, 0), (1, 1), (1, Wp - W - 1), (0, 0)))

    # Fold BN scales into the bf16 weights; conv2 taps flattened to K=9*width
    # in (ky, kx, ci) order to match the in-kernel operand assembly.
    w1b = (w1 * s1).astype(jnp.bfloat16)                               # (Cin, width)
    w2b = (w2 * s2.reshape(1, 1, 1, -1)).reshape(9 * width, width
                                                 ).astype(jnp.bfloat16)
    w3b = (w3 * s3).astype(jnp.bfloat16)                               # (width, Cout)
    b1f = b1.astype(jnp.float32)
    b2f = b2.astype(jnp.float32)
    b3f = b3.astype(jnp.float32)

    def full(a):
        nd = a.ndim
        return pl.BlockSpec(a.shape, lambda n, i: (0,) * nd)

    flops = 2 * N * H * W * (Cin * width + 9 * width * width + width * Cout)
    bytes_accessed = int(
        x_pad.size * x_pad.dtype.itemsize * (1 + 2.0 / TH)     # input + halo refetch
        + N * H * W_out * Cout * x_nhwc.dtype.itemsize         # output
        + (w1b.size + w2b.size + w3b.size) * 2
        + (b1f.size + b2f.size + b3f.size) * 4)

    out = pl.pallas_call(
        functools.partial(_bottleneck_kernel, H, W, W_out),
        out_shape=jax.ShapeDtypeStruct((N, H, W_out, Cout), x_nhwc.dtype),
        grid=(N, n_strips),
        in_specs=[
            # main TH rows of the padded strip
            pl.BlockSpec((1, TH, Wp, Cin), lambda n, i: (n, i, 0, 0)),
            # two 1-row halo blocks directly below them
            pl.BlockSpec((1, 1, Wp, Cin), lambda n, i: (n, (i + 1) * TH, 0, 0)),
            pl.BlockSpec((1, 1, Wp, Cin), lambda n, i: (n, (i + 1) * TH + 1, 0, 0)),
            full(w1b), full(b1f),
            full(w2b), full(b2f),
            full(w3b), full(b3f),
        ],
        out_specs=pl.BlockSpec((1, TH, W_out, Cout), lambda n, i: (n, i, 0, 0)),
        compiler_params=pltpu.CompilerParams(
            dimension_semantics=("parallel", "parallel"),
            vmem_limit_bytes=_pick_vmem_limit()),
        cost_estimate=pl.CostEstimate(flops=flops, transcendentals=0,
                                      bytes_accessed=bytes_accessed),
    )(x_pad, x_pad, x_pad, w1b, b1f, w2b, b2f, w3b, b3f)

    if W_out != W:
        out = out[:, :, :W, :]
    return out


# --------------------------- pure-JAX reference ---------------------------
def _fold_bn(p, eps):
    g, b, m, v = p
    s = g / jnp.sqrt(v + eps)
    return s.reshape(1, -1), (b - m * s).reshape(1, -1)


def ref_bottleneck(x_nhwc, w1, w2, w3, bn_params, eps=1e-5):
    """NHWC reference using lax convs (eval-mode BatchNorm)."""
    def conv(x, w, pad):
        return jax.lax.conv_general_dilated(
            x, w, window_strides=(1, 1), padding=pad,
            dimension_numbers=("NHWC", "HWIO", "NHWC"))

    def bn(x, p):
        g, b, m, v = p
        inv = g / jnp.sqrt(v + eps)
        return x * inv + (b - m * inv)

    Cin, width = w1.shape
    Cout = w3.shape[1]
    out = jax.nn.relu(bn(conv(x_nhwc, w1.reshape(1, 1, Cin, width),
                              [(0, 0), (0, 0)]), bn_params[0]))
    out = jax.nn.relu(bn(conv(out, w2, [(1, 1), (1, 1)]), bn_params[1]))
    out = bn(conv(out, w3.reshape(1, 1, width, Cout),
                  [(0, 0), (0, 0)]), bn_params[2])
    return jax.nn.relu(out + x_nhwc)


if __name__ == "__main__":
    # Bottleneck(inplanes=16, planes=4): width = 4, planes*expansion = 16.
    N, inplanes, H, W = 2, 16, 16, 16
    planes, expansion = 4, 4
    width = planes                       # groups=1, base_width=64
    Cout = planes * expansion
    eps = 1e-5

    key = jax.random.PRNGKey(0)
    ks = jax.random.split(key, 16)

    x = jax.random.normal(ks[0], (N, H, W, inplanes), jnp.float32)   # NHWC

    w1 = jax.random.normal(ks[1], (inplanes, width), jnp.float32) * 0.2
    w2 = jax.random.normal(ks[2], (3, 3, width, width), jnp.float32) * 0.2  # HWIO
    w3 = jax.random.normal(ks[3], (width, Cout), jnp.float32) * 0.2

    def bn_init(kg, kb, km, kv, c):
        gamma = 1.0 + 0.1 * jax.random.normal(kg, (c,), jnp.float32)
        beta = 0.1 * jax.random.normal(kb, (c,), jnp.float32)
        mean = 0.1 * jax.random.normal(km, (c,), jnp.float32)
        var = jax.random.uniform(kv, (c,), jnp.float32, 0.5, 1.5)
        return gamma, beta, mean, var

    bn1 = bn_init(ks[4], ks[5], ks[6], ks[7], width)
    bn2 = bn_init(ks[8], ks[9], ks[10], ks[11], width)
    bn3 = bn_init(ks[12], ks[13], ks[14], ks[15], Cout)

    s1, b1 = _fold_bn(bn1, eps)
    s2, b2 = _fold_bn(bn2, eps)
    s3, b3 = _fold_bn(bn3, eps)

    out = bottleneck_pallas(x, w1, s1, b1, w2, s2, b2, w3, s3, b3)
    out = jax.block_until_ready(out)

    ref = ref_bottleneck(x, w1, w2, w3, (bn1, bn2, bn3), eps)
    # bf16 activations + bf16 weights with folded BN scales (f32 accumulation)
    # need a looser tolerance than a pure-f32 path.
    np.testing.assert_allclose(np.asarray(out), np.asarray(ref),
                               rtol=5e-2, atol=5e-2)
    print("KERNEL_OK")
</pallas_src>

<mosaic_0001>
module attributes {stable_mosaic.version = 11 : i64} {
  func.func @_bottleneck_kernel(%arg0: i32, %arg1: i32, %arg2: memref<1x16x32x16xbf16, #tpu.memory_space<vmem>>, %arg3: memref<1x1x32x16xbf16, #tpu.memory_space<vmem>>, %arg4: memref<1x1x32x16xbf16, #tpu.memory_space<vmem>>, %arg5: memref<16x4xbf16, #tpu.memory_space<vmem>>, %arg6: memref<1x4xf32, #tpu.memory_space<vmem>>, %arg7: memref<36x4xbf16, #tpu.memory_space<vmem>>, %arg8: memref<1x4xf32, #tpu.memory_space<vmem>>, %arg9: memref<4x16xbf16, #tpu.memory_space<vmem>>, %arg10: memref<1x16xf32, #tpu.memory_space<vmem>>, %arg11: memref<1x16x16x16xf32, #tpu.memory_space<vmem>>) attributes {dimension_semantics = [#tpu.dimension_semantics<parallel>, #tpu.dimension_semantics<parallel>], iteration_bounds = array<i64: 2, 1>, scalar_prefetch = 0 : i64, scratch_operands = 0 : i64, tpu.core_type = #tpu.core_type<tc>, window_params = [{transform_indices = @transform_0, window_bounds = array<i64: 1, 16, 32, 16>}, {transform_indices = @transform_1, window_bounds = array<i64: 1, 1, 32, 16>}, {transform_indices = @transform_2, window_bounds = array<i64: 1, 1, 32, 16>}, {pipeline_mode = #tpu.pipeline_mode<synchronous>, transform_indices = @transform_3, window_bounds = array<i64: 16, 4>}, {pipeline_mode = #tpu.pipeline_mode<synchronous>, transform_indices = @transform_4, window_bounds = array<i64: 1, 4>}, {pipeline_mode = #tpu.pipeline_mode<synchronous>, transform_indices = @transform_5, window_bounds = array<i64: 36, 4>}, {pipeline_mode = #tpu.pipeline_mode<synchronous>, transform_indices = @transform_6, window_bounds = array<i64: 1, 4>}, {pipeline_mode = #tpu.pipeline_mode<synchronous>, transform_indices = @transform_7, window_bounds = array<i64: 4, 16>}, {pipeline_mode = #tpu.pipeline_mode<synchronous>, transform_indices = @transform_8, window_bounds = array<i64: 1, 16>}, {transform_indices = @transform_9, window_bounds = array<i64: 1, 16, 16, 16>}]} {
    %c0 = arith.constant 0 : index
    %c0_0 = arith.constant 0 : index
    %c0_1 = arith.constant 0 : index
    %c0_2 = arith.constant 0 : index
    %0 = vector.load %arg2[%c0, %c0_0, %c0_1, %c0_2] : memref<1x16x32x16xbf16, #tpu.memory_space<vmem>>, vector<1x16x32x16xbf16>
    %1 = vector.shape_cast %0 : vector<1x16x32x16xbf16> to vector<16x32x16xbf16>
    %2 = vector.shape_cast %1 : vector<16x32x16xbf16> to vector<512x16xbf16>
    %c0_3 = arith.constant 0 : index
    %c0_4 = arith.constant 0 : index
    %c0_5 = arith.constant 0 : index
    %c0_6 = arith.constant 0 : index
    %3 = vector.load %arg3[%c0_3, %c0_4, %c0_5, %c0_6] : memref<1x1x32x16xbf16, #tpu.memory_space<vmem>>, vector<1x1x32x16xbf16>
    %4 = vector.shape_cast %3 : vector<1x1x32x16xbf16> to vector<32x16xbf16>
    %c0_7 = arith.constant 0 : index
    %c0_8 = arith.constant 0 : index
    %c0_9 = arith.constant 0 : index
    %c0_10 = arith.constant 0 : index
    %5 = vector.load %arg4[%c0_7, %c0_8, %c0_9, %c0_10] : memref<1x1x32x16xbf16, #tpu.memory_space<vmem>>, vector<1x1x32x16xbf16>
    %6 = vector.shape_cast %5 : vector<1x1x32x16xbf16> to vector<32x16xbf16>
    %c0_11 = arith.constant 0 : index
    %c0_12 = arith.constant 0 : index
    %7 = vector.load %arg5[%c0_11, %c0_12] : memref<16x4xbf16, #tpu.memory_space<vmem>>, vector<16x4xbf16>
    %cst = arith.constant dense<0.000000e+00> : vector<512x4xf32>
    %8 = tpu.matmul %2, %7, %cst {dimension_numbers = #tpu.dot_dimension_numbers<[1], [0], [0], [1], [0, 0, 1, 1], [], []>} : vector<512x16xbf16>, vector<16x4xbf16>, vector<512x4xf32> -> vector<512x4xf32>
    %9 = tpu.concatenate %4, %6 in 0 : vector<32x16xbf16>, vector<32x16xbf16> -> vector<64x16xbf16>
    %c0_13 = arith.constant 0 : index
    %c0_14 = arith.constant 0 : index
    %10 = vector.load %arg5[%c0_13, %c0_14] : memref<16x4xbf16, #tpu.memory_space<vmem>>, vector<16x4xbf16>
    %cst_15 = arith.constant dense<0.000000e+00> : vector<64x4xf32>
    %11 = tpu.matmul %9, %10, %cst_15 {dimension_numbers = #tpu.dot_dimension_numbers<[1], [0], [0], [1], [0, 0, 1, 1], [], []>} : vector<64x16xbf16>, vector<16x4xbf16>, vector<64x4xf32> -> vector<64x4xf32>
    %12 = tpu.concatenate %8, %11 in 0 : vector<512x4xf32>, vector<64x4xf32> -> vector<576x4xf32>
    %c0_16 = arith.constant 0 : index
    %c0_17 = arith.constant 0 : index
    %13 = vector.load %arg6[%c0_16, %c0_17] : memref<1x4xf32, #tpu.memory_space<vmem>>, vector<1x4xf32>
    %14 = vector.broadcast %13 : vector<1x4xf32> to vector<576x4xf32>
    %15 = arith.addf %12, %14 : vector<576x4xf32>
    %cst_18 = arith.constant 0.000000e+00 : f32
    %16 = vector.broadcast %cst_18 : f32 to vector<576x4xf32>
    %17 = arith.maximumf %15, %16 : vector<576x4xf32>
    %18 = vector.shape_cast %17 : vector<576x4xf32> to vector<18x32x4xf32>
    %c16_i32 = arith.constant 16 : i32
    %19 = arith.muli %arg1, %c16_i32 : i32
    %20 = tpu.iota {dimensions = array<i32: 0>} : vector<18x32x1xi32>
    %21 = vector.broadcast %19 : i32 to vector<18x32x1xi32>
    %22 = arith.addi %21, %20 : vector<18x32x1xi32>
    %23 = tpu.iota {dimensions = array<i32: 1>} : vector<18x32x1xi32>
    %c0_i32 = arith.constant 0 : i32
    %24 = vector.broadcast %c0_i32 : i32 to vector<18x32x1xi32>
    %25 = arith.cmpi eq, %22, %24 : vector<18x32x1xi32>
    %c17_i32 = arith.constant 17 : i32
    %26 = vector.broadcast %c17_i32 : i32 to vector<18x32x1xi32>
    %27 = arith.cmpi eq, %22, %26 : vector<18x32x1xi32>
    %28 = arith.ori %25, %27 : vector<18x32x1xi1>
    %c0_i32_19 = arith.constant 0 : i32
    %29 = vector.broadcast %c0_i32_19 : i32 to vector<18x32x1xi32>
    %30 = arith.cmpi eq, %23, %29 : vector<18x32x1xi32>
    %31 = arith.ori %28, %30 : vector<18x32x1xi1>
    %c17_i32_20 = arith.constant 17 : i32
    %32 = vector.broadcast %c17_i32_20 : i32 to vector<18x32x1xi32>
    %33 = arith.cmpi sge, %23, %32 : vector<18x32x1xi32>
    %34 = arith.ori %31, %33 : vector<18x32x1xi1>
    %cst_21 = arith.constant 0.000000e+00 : f32
    %35 = vector.shape_cast %34 : vector<18x32x1xi1> to vector<18x32x1xi1>
    %36 = vector.broadcast %35 : vector<18x32x1xi1> to vector<18x32x4xi1>
    %37 = vector.broadcast %cst_21 : f32 to vector<18x32x4xf32>
    %38 = arith.select %36, %37, %18 : vector<18x32x4xi1>, vector<18x32x4xf32>
    %39 = vector.shape_cast %38 : vector<18x32x4xf32> to vector<576x4xf32>
    %c575_i32 = arith.constant 575 : i32
    %40 = tpu.dynamic_rotate %39 by %c575_i32 dim 0 : vector<576x4xf32>, i32 -> vector<576x4xf32>
    %c574_i32 = arith.constant 574 : i32
    %41 = tpu.dynamic_rotate %39 by %c574_i32 dim 0 : vector<576x4xf32>, i32 -> vector<576x4xf32>
    %42 = tpu.concatenate %39, %40, %41 in 1 : vector<576x4xf32>, vector<576x4xf32>, vector<576x4xf32> -> vector<576x12xf32>
    %43 = vector.extract_strided_slice %42 {offsets = [0, 0], sizes = [512, 12], strides = [1, 1]} : vector<576x12xf32> to vector<512x12xf32>
    %44 = vector.extract_strided_slice %42 {offsets = [32, 0], sizes = [512, 12], strides = [1, 1]} : vector<576x12xf32> to vector<512x12xf32>
    %45 = vector.extract_strided_slice %42 {offsets = [64, 0], sizes = [512, 12], strides = [1, 1]} : vector<576x12xf32> to vector<512x12xf32>
    %46 = tpu.concatenate %43, %44, %45 in 1 : vector<512x12xf32>, vector<512x12xf32>, vector<512x12xf32> -> vector<512x36xf32>
    %47 = arith.truncf %46 : vector<512x36xf32> to vector<512x36xbf16>
    %c0_22 = arith.constant 0 : index
    %c0_23 = arith.constant 0 : index
    %48 = vector.load %arg7[%c0_22, %c0_23] : memref<36x4xbf16, #tpu.memory_space<vmem>>, vector<36x4xbf16>
    %cst_24 = arith.constant dense<0.000000e+00> : vector<512x4xf32>
    %49 = tpu.matmul %47, %48, %cst_24 {dimension_numbers = #tpu.dot_dimension_numbers<[1], [0], [0], [1], [0, 0, 1, 1], [], []>} : vector<512x36xbf16>, vector<36x4xbf16>, vector<512x4xf32> -> vector<512x4xf32>
    %c0_25 = arith.constant 0 : index
    %c0_26 = arith.constant 0 : index
    %50 = vector.load %arg8[%c0_25, %c0_26] : memref<1x4xf32, #tpu.memory_space<vmem>>, vector<1x4xf32>
    %51 = vector.broadcast %50 : vector<1x4xf32> to vector<512x4xf32>
    %52 = arith.addf %49, %51 : vector<512x4xf32>
    %cst_27 = arith.constant 0.000000e+00 : f32
    %53 = vector.broadcast %cst_27 : f32 to vector<512x4xf32>
    %54 = arith.maximumf %52, %53 : vector<512x4xf32>
    %55 = arith.truncf %54 : vector<512x4xf32> to vector<512x4xbf16>
    %c0_28 = arith.constant 0 : index
    %c0_29 = arith.constant 0 : index
    %56 = vector.load %arg9[%c0_28, %c0_29] : memref<4x16xbf16, #tpu.memory_space<vmem>>, vector<4x16xbf16>
    %cst_30 = arith.constant dense<0.000000e+00> : vector<512x16xf32>
    %57 = tpu.matmul %55, %56, %cst_30 {dimension_numbers = #tpu.dot_dimension_numbers<[1], [0], [0], [1], [0, 0, 1, 1], [], []>} : vector<512x4xbf16>, vector<4x16xbf16>, vector<512x16xf32> -> vector<512x16xf32>
    %c0_31 = arith.constant 0 : index
    %c0_32 = arith.constant 0 : index
    %58 = vector.load %arg10[%c0_31, %c0_32] : memref<1x16xf32, #tpu.memory_space<vmem>>, vector<1x16xf32>
    %59 = vector.broadcast %58 : vector<1x16xf32> to vector<512x16xf32>
    %60 = arith.addf %57, %59 : vector<512x16xf32>
    %61 = vector.extract_strided_slice %2 {offsets = [32, 0], sizes = [480, 16], strides = [1, 1]} : vector<512x16xbf16> to vector<480x16xbf16>
    %62 = tpu.concatenate %61, %4 in 0 : vector<480x16xbf16>, vector<32x16xbf16> -> vector<512x16xbf16>
    %63 = arith.extf %62 : vector<512x16xbf16> to vector<512x16xf32>
    %c511_i32 = arith.constant 511 : i32
    %64 = tpu.dynamic_rotate %63 by %c511_i32 dim 0 : vector<512x16xf32>, i32 -> vector<512x16xf32>
    %65 = arith.addf %60, %64 : vector<512x16xf32>
    %cst_33 = arith.constant 0.000000e+00 : f32
    %66 = vector.broadcast %cst_33 : f32 to vector<512x16xf32>
    %67 = arith.maximumf %65, %66 : vector<512x16xf32>
    %68 = vector.shape_cast %67 : vector<512x16xf32> to vector<16x32x16xf32>
    %69 = vector.extract_strided_slice %68 {offsets = [0, 0, 0], sizes = [16, 16, 16], strides = [1, 1, 1]} : vector<16x32x16xf32> to vector<16x16x16xf32>
    %c0_34 = arith.constant 0 : index
    %c0_35 = arith.constant 0 : index
    %c0_36 = arith.constant 0 : index
    %c0_37 = arith.constant 0 : index
    %70 = vector.load %arg11[%c0_34, %c0_35, %c0_36, %c0_37] : memref<1x16x16x16xf32, #tpu.memory_space<vmem>>, vector<1x16x16x16xf32>
    %71 = vector.shape_cast %70 : vector<1x16x16x16xf32> to vector<16x16x16xf32>
    %72 = vector.shape_cast %69 : vector<16x16x16xf32> to vector<1x16x16x16xf32>
    tpu.vector_store %arg11[%c0_34, %c0_35, %c0_36, %c0_37], %72 {strides = array<i32>} : memref<1x16x16x16xf32, #tpu.memory_space<vmem>>, vector<1x16x16x16xf32>,
    return
  }
  func.func @transform_0(%arg0: i32, %arg1: i32) -> (i32, i32, i32, i32) {
    %c0_i32 = arith.constant 0 : i32
    %c0_i32_0 = arith.constant 0 : i32
    %c0_i32_1 = arith.constant 0 : i32
    return %arg0, %arg1, %c0_i32, %c0_i32_0 : i32, i32, i32, i32
  }
  func.func @transform_1(%arg0: i32, %arg1: i32) -> (i32, i32, i32, i32) {
    %c1_i32 = arith.constant 1 : i32
    %0 = arith.addi %arg1, %c1_i32 : i32
    %c16_i32 = arith.constant 16 : i32
    %1 = arith.muli %0, %c16_i32 : i32
    %c0_i32 = arith.constant 0 : i32
    %c0_i32_0 = arith.constant 0 : i32
    %c0_i32_1 = arith.constant 0 : i32
    return %arg0, %1, %c0_i32, %c0_i32_0 : i32, i32, i32, i32
  }
  func.func @transform_2(%arg0: i32, %arg1: i32) -> (i32, i32, i32, i32) {
    %c1_i32 = arith.constant 1 : i32
    %0 = arith.addi %arg1, %c1_i32 : i32
    %c16_i32 = arith.constant 16 : i32
    %1 = arith.muli %0, %c16_i32 : i32
    %c1_i32_0 = arith.constant 1 : i32
    %2 = arith.addi %1, %c1_i32_0 : i32
    %c0_i32 = arith.constant 0 : i32
    %c0_i32_1 = arith.constant 0 : i32
    %c0_i32_2 = arith.constant 0 : i32
    return %arg0, %2, %c0_i32, %c0_i32_1 : i32, i32, i32, i32
  }
  func.func @transform_3(%arg0: i32, %arg1: i32) -> (i32, i32) {
    %c0_i32 = arith.constant 0 : i32
    %c0_i32_0 = arith.constant 0 : i32
    %c0_i32_1 = arith.constant 0 : i32
    return %c0_i32, %c0_i32_0 : i32, i32
  }
  func.func @transform_4(%arg0: i32, %arg1: i32) -> (i32, i32) {
    %c0_i32 = arith.constant 0 : i32
    %c0_i32_0 = arith.constant 0 : i32
    %c0_i32_1 = arith.constant 0 : i32
    return %c0_i32, %c0_i32_0 : i32, i32
  }
  func.func @transform_5(%arg0: i32, %arg1: i32) -> (i32, i32) {
    %c0_i32 = arith.constant 0 : i32
    %c0_i32_0 = arith.constant 0 : i32
    %c0_i32_1 = arith.constant 0 : i32
    return %c0_i32, %c0_i32_0 : i32, i32
  }
  func.func @transform_6(%arg0: i32, %arg1: i32) -> (i32, i32) {
    %c0_i32 = arith.constant 0 : i32
    %c0_i32_0 = arith.constant 0 : i32
    %c0_i32_1 = arith.constant 0 : i32
    return %c0_i32, %c0_i32_0 : i32, i32
  }
  func.func @transform_7(%arg0: i32, %arg1: i32) -> (i32, i32) {
    %c0_i32 = arith.constant 0 : i32
    %c0_i32_0 = arith.constant 0 : i32
    %c0_i32_1 = arith.constant 0 : i32
    return %c0_i32, %c0_i32_0 : i32, i32
  }
  func.func @transform_8(%arg0: i32, %arg1: i32) -> (i32, i32) {
    %c0_i32 = arith.constant 0 : i32
    %c0_i32_0 = arith.constant 0 : i32
    %c0_i32_1 = arith.constant 0 : i32
    return %c0_i32, %c0_i32_0 : i32, i32
  }
  func.func @transform_9(%arg0: i32, %arg1: i32) -> (i32, i32, i32, i32) {
    %c0_i32 = arith.constant 0 : i32
    %c0_i32_0 = arith.constant 0 : i32
    %c0_i32_1 = arith.constant 0 : i32
    return %arg0, %arg1, %c0_i32, %c0_i32_0 : i32, i32, i32, i32
  }
}

</mosaic_0001>

<bundles_post_ra>
// kernel: bottleneck_pallas.1
= control target key start
LH: loop header
LB: loop body
LE: loop exit
PB: predicated region body
PF: predicated region fallthrough
CT: control target
= control target key end

     0   :  { %14 = vsyncpa [#allocation3], 0  ;;  %s8399_s0 = inlined_call_operand.vmem [shape: bf16[2,18,32,16], index: 0, kind: input, shape index: {}, may-alias: {0,1,2}]   ;;  %s8400_s1 = inlined_call_operand.vmem [shape: bf16[2,18,32,16], index: 1, kind: input, shape index: {}, may-alias: {0,1,2}]   ;;  %s8401_s2 = inlined_call_operand.vmem [shape: bf16[2,18,32,16], index: 2, kind: input, shape index: {}, may-alias: {0,1,2}]   ;;  %s8402_s3 = inlined_call_operand.vmem [shape: bf16[16,4], index: 3, kind: input, shape index: {}]   ;;  %s8403_s4 = inlined_call_operand.vmem [shape: f32[1,4], index: 4, kind: input, shape index: {}]   ;;  %s8404_s5 = inlined_call_operand.vmem [shape: bf16[36,4], index: 5, kind: input, shape index: {}]   ;;  %s8405_s6 = inlined_call_operand.vmem [shape: f32[1,4], index: 6, kind: input, shape index: {}]   ;;  %s8406_s7 = inlined_call_operand.vmem [shape: bf16[4,16], index: 7, kind: input, shape index: {}]   ;;  %s8407_s8 = inlined_call_operand.vmem [shape: f32[1,16], index: 8, kind: input, shape index: {}]   ;;  %s8408_s9 = inlined_call_operand.hbm [shape: f32[2,16,16,16], index: 9, kind: output, shape index: {}]  }
   0x1   :  { %16 = vsyncpa [#allocation3 + $0x1], 0  ;;  %s6152_s30 = smov 0   ;;  %s6154_s10 = smov 0  }
   0x2   :  { %s6156_s11 = smov 0   ;;  %s6158_s12 = smov 0  }
   0x3   :  { %s6160_s13 = smov 0   ;;  %s6162_s14 = smov 0  }
   0x4 LB: > { %s4714_s15 = sadd.s32 4294967295, %s6093_s14   ;;  %s4715_s16 = sadd.s32 4294967294, %s6093_s14   ;;  %s6093_s14 = sphi %s6162_s14, %s22_s14   ;;  %s6089_s13 = sphi %s6160_s13, %s8584_s13   ;;  %s6085_s12 = sphi %s6158_s12, %s8583_s12   ;;  %s6081_s11 = sphi %s6156_s11, %s8582_s11   ;;  %s6077_s10 = sphi %s6154_s10, %s8581_s10   ;;  %s6073_s30 = sphi %s6152_s30, %s8580_s30  }
   0x5   : > { %s34_s17 = sadd.s32 1, %s6089_s13  ;;  %s263_s18 = sadd.s32 1, %s6081_s11 }
   0x6   : > { %p36_p0 = scmp.ge.s32.totalorder %s34_s17, 2  ;;  %p273_p1 = scmp.ne.s32.totalorder %s6081_s11, %s6077_s10 }
   0x7   : > { %p274_p2 = scmp.eq.s32.totalorder %s4714_s15, 1  ;;  %p279_p3 = scmp.ne.s32.totalorder %s6077_s10, %s6073_s30 }
   0x8   : > { %s8586_s17 = smov (%p36_p0, %s34_s17), 0  ;;  %p280_p5 = scmp.eq.s32.totalorder %s4715_s16, 1 }
   0x9   : > { %p6192_p4 = por %p274_p2, %p273_p1  ;;  %s258_s20 = ssub.s32 %s6089_s13, %s8586_s17 }
   0xa   : > { %p4718_p6 = scmp.ge.s32.totalorder %s6093_s14, 1  ;;  %p261_p7 = scmp.eq.s32.totalorder %s258_s20, 0 }
   0xb   : > { %p6199_p8 = por %p280_p5, %p279_p3  ;;  %p374_p9 = scmp.lt.s32.totalorder %s6093_s14, 3 }
   0xc   : > { %s6205_s22 = scalar_select %p261_p7, %s6081_s11, %s263_s18  }
   0xd   : > { %p375_p10 = pnand %p4718_p6, %p374_p9 }
   0xf   : > { %378 = sbr.rel (%p375_p10) target bundleno = 1221 (0x4c5), region = 56 }
  0x16   : > { %v5942_v0 = vld [vmem:[%s8402_s3] sm:$0xff]   ;;  %p449_p11 = scmp.lt.s32.totalorder %s6085_s12, 1  ;;  %vm734_vm0 = vcmask 130048   ;;  %v6095_v35 = vmov 0.0   ;;  %s6096_s23 = smov 4   ;;  %v1387_v40 = vlaneseq  ;;  %vm2680_vm5 = vcmask 31744  }
  0x17   : > { %4982 = vmatprep.subr.bf16.mxu0 %v5942_v0  ;;  %5194 = vmatprep.subr.bf16.mxu1 %v5942_v0  ;;  %v6294_v36 = vrot.slane %v6095_v35, 1  ;;  %v6300_v38 = vrot.slane %v6095_v35, 2  ;;  %s6097_s24 = smov 8   ;;  %v6315_v42 = vld [vmem:[%s8403_s4] ss:$0 sm:$0xff]  ;;  %vm2753_vm6 = vcmask 64512  }
  0x18   : > { %s450_s25 = scalar_select %p449_p11, %s6085_s12, 1  ;;  %4983 = vmatpush3.bf16.msra.mxu0 %v5942_v0  ;;  %5195 = vmatpush3.bf16.msra.mxu1 %v5942_v0  ;;  %v6310_v41 = vshrl.u32 %v1387_v40, 7  ;;  %vm3564_vm7 = vcmask 1041408   ;;  %vm3278_vm8 = vcmask 97280   ;;  %vm3343_vm9 = vcmask 195584  }
  0x19   : > { %5048 = vmatprep.subr.bf16.mxu1 %v5942_v0  ;;  %v6298_v37 = vpack.i.bf16 %v6294_v36, %v6294_v36  ;;  %v6306_v39 = vpack.i.bf16 %v6300_v38, %v6300_v38  ;;  %s6098_s16 = smov 24   ;;  %s6099_s18 = smov 12   ;;  %vm3467_vm10 = vcmask 293888  }
  0x1a   : > { %s6212_s26 = smul.u32 288, %s450_s25  ;;  %8475 = vst [vmem:[#allocation7_spill] sm:$0xff] %v6310_v41  ;;  %v6318_v43 = vadd.s32 16, %v6310_v41  ;;  %vm1446_vm2 = vcmp.eq.s32.totalorder %v6310_v41, 0  ;;  %vm2031_vm3 = vcmp.lt.s32.totalorder %v6310_v41, 6  ;;  %vm1886_vm4 = vcmp.lt.s32.totalorder %v6310_v41, 7 }
  0x1b   : > { %8473 = vst [vmem:[#allocation5_spill] sm:$0xff] %v6298_v37  ;;  %5263 = vrot.lane.b32.xlu1 %v6298_v37, %s6096_s23  ;;  %8474 = vst [vmem:[#allocation6_spill] sm:$0xff] %v6306_v39  ;;  %s440_s27 = sand.u32 1, %s6077_s10  }
  0x1c   : > { %s6218_s29 = scalar_lea.vmem %s8399_s0, %s6212_s26  ;;  %s4872_s15 = sadd.s32 256, %s6212_s26  ;;  %vm1524_vm1 = vcmp.ge.s32.totalorder %v6318_v43, 17 }
  0x1d   : > { %v5943_v1 = vld [vmem:[%s6218_s29] sm:$0xff]   ;;  %v5944_v2 = vld [vmem:[%s6218_s29 + $0x90] sm:$0xff]   ;;  %v5945_v3 = vld [vmem:[%s6218_s29 + $0x8] sm:$0xff]   ;;  %s6261_s20 = scalar_lea.vmem %s8400_s1, %s4872_s15  ;;  %s4874_s25 = sadd.s32 272, %s6212_s26 }
  0x1e   : > { %4984 = vmatprep.mubr.msk.bf16.mxu0 %vm734_vm0, %v5943_v1  ;;  %5020 = vmatprep.mubr.msk.bf16.mxu1 %vm734_vm0, %v5944_v2  ;;  %v5946_v4 = vld [vmem:[%s6218_s29 + $0x98] sm:$0xff]   ;;  %v5947_v5 = vld [vmem:[%s6218_s29 + $0x10] sm:$0xff]   ;;  %v5948_v6 = vld [vmem:[%s6218_s29 + $0xa0] sm:$0xff]   ;;  %s488_s15 = scalar_lea.vmem %s8401_s2, %s4874_s25  ;;  %s4719_s26 = sshll.u32 %s440_s27, 8 }
  0x1f   : > { %4985 = vmatmul.mubr.msk.bf16.vlgmr.msra.gmra.mrb[0].mxu0 %vm734_vm0, %v5945_v3  ;;  %5021 = vmatmul.mubr.msk.bf16.vlgmr.msra.gmra.mrb[0].mxu1 %vm734_vm0, %v5946_v4  ;;  %v5949_v7 = vld [vmem:[%s6218_s29 + $0x18] sm:$0xff]   ;;  %v5950_v8 = vld [vmem:[%s6218_s29 + $0xa8] sm:$0xff]   ;;  %v5951_v9 = vld [vmem:[%s6218_s29 + $0x20] sm:$0xff]  }
  0x20   : > { %4988 = vmatprep.mubr.msk.bf16.mxu0 %vm734_vm0, %v5947_v5  ;;  %5049 = vmatpush3.bf16.msra.mxu1 %v5942_v0  ;;  %v5952_v10 = vld [vmem:[%s6218_s29 + $0xb0] sm:$0xff]   ;;  %v5953_v11 = vld [vmem:[%s6218_s29 + $0x28] sm:$0xff]   ;;  %v5954_v12 = vld [vmem:[%s6218_s29 + $0xb8] sm:$0xff]  }
  0x21   : > { %5024 = vmatprep.mubr.msk.bf16.mxu1 %vm734_vm0, %v5948_v6  ;;  %v5955_v13 = vld [vmem:[%s6218_s29 + $0x30] sm:$0xff]   ;;  %v5956_v14 = vld [vmem:[%s6218_s29 + $0xc0] sm:$0xff]   ;;  %v5957_v15 = vld [vmem:[%s6218_s29 + $0x38] sm:$0xff]   ;;  %5268 = vrot.lane.b32.xlu1 %v6306_v39, %s6097_s24 }
  0x22   : > { %v5958_v16 = vld [vmem:[%s6218_s29 + $0xc8] sm:$0xff]   ;;  %v5959_v17 = vld [vmem:[%s6218_s29 + $0x40] sm:$0xff]   ;;  %v5962_v18 = vld [vmem:[%s6218_s29 + $0xd0] sm:$0xff]  }
  0x23   : > { %v5960_v19 = vld [vmem:[%s6218_s29 + $0x48] sm:$0xff]   ;;  %v5961_v20 = vld [vmem:[%s6218_s29 + $0x50] sm:$0xff]   ;;  %v5964_v21 = vld [vmem:[%s6218_s29 + $0xd8] sm:$0xff]  }
  0x24   : > { %v5968_v22 = vld [vmem:[%s6218_s29 + $0xe0] sm:$0xff]   ;;  %v5963_v23 = vld [vmem:[%s6218_s29 + $0x58] sm:$0xff]   ;;  %v5970_v25 = vld [vmem:[%s6218_s29 + $0xe8] sm:$0xff]  }
  0x25   : > { %v5965_v24 = vld [vmem:[%s6218_s29 + $0x60] sm:$0xff]   ;;  %v5973_v26 = vld [vmem:[%s6218_s29 + $0xf0] sm:$0xff]   ;;  %v5966_v27 = vld [vmem:[%s6218_s29 + $0x68] sm:$0xff]  }
  0x26   : > { %v5967_v28 = vld [vmem:[%s6218_s29 + $0x70] sm:$0xff]   ;;  %v5974_v29 = vld [vmem:[%s6218_s29 + $0xf8] sm:$0xff]   ;;  %v5975_v30 = vld [vmem:[%s6261_s20] sm:$0xff]  }
  0x27   : > { %4989 = vmatmul.mubr.msk.bf16.gmra.mrb[4].mxu0 %vm734_vm0, %v5949_v7  ;;  %5025 = vmatmul.mubr.msk.bf16.gmra.mrb[4].mxu1 %vm734_vm0, %v5950_v8  ;;  %v5969_v31 = vld [vmem:[%s6218_s29 + $0x78] sm:$0xff]   ;;  %v5971_v32 = vld [vmem:[%s6218_s29 + $0x80] sm:$0xff]   ;;  %v5976_v33 = vld [vmem:[%s6261_s20 + $0x8] sm:$0xff]  }
  0x28   : > { %4992 = vmatprep.mubr.msk.bf16.mxu0 %vm734_vm0, %v5951_v9  ;;  %5028 = vmatprep.mubr.msk.bf16.mxu1 %vm734_vm0, %v5952_v10  ;;  %v5972_v34 = vld [vmem:[%s6218_s29 + $0x88] sm:$0xff]  }
  0x29   : > { %v5978_v41 = vld [vmem:[%s488_s15 + $0x8] sm:$0xff]  }
  0x2f   : > { %4993 = vmatmul.mubr.msk.bf16.gmra.mrb[8].mxu0 %vm734_vm0, %v5953_v11  ;;  %5029 = vmatmul.mubr.msk.bf16.gmra.mrb[8].mxu1 %vm734_vm0, %v5954_v12 }
  0x30   : > { %4996 = vmatprep.mubr.msk.bf16.mxu0 %vm734_vm0, %v5955_v13  ;;  %5032 = vmatprep.mubr.msk.bf16.mxu1 %vm734_vm0, %v5956_v14 }
  0x37   : > { %4997 = vmatmul.mubr.msk.bf16.gmra.mrb[12].mxu0 %vm734_vm0, %v5957_v15  ;;  %5033 = vmatmul.mubr.msk.bf16.gmra.mrb[12].mxu1 %vm734_vm0, %v5958_v16 }
  0x38   : > { %5000 = vmatprep.mubr.msk.bf16.mxu0 %vm734_vm0, %v5959_v17  ;;  %5036 = vmatprep.mubr.msk.bf16.mxu1 %vm734_vm0, %v5962_v18 }
  0x3f   : > { %5001 = vmatmul.mubr.msk.bf16.gmra.mrb[16].mxu0 %vm734_vm0, %v5960_v19  ;;  %5037 = vmatmul.mubr.msk.bf16.gmra.mrb[16].mxu1 %vm734_vm0, %v5964_v21 }
  0x40   : > { %5004 = vmatprep.mubr.msk.bf16.mxu0 %vm734_vm0, %v5961_v20  ;;  %5040 = vmatprep.mubr.msk.bf16.mxu1 %vm734_vm0, %v5968_v22 }
  0x47   : > { %5005 = vmatmul.mubr.msk.bf16.gmra.mrb[20].mxu0 %vm734_vm0, %v5963_v23  ;;  %5041 = vmatmul.mubr.msk.bf16.gmra.mrb[20].mxu1 %vm734_vm0, %v5970_v25 }
  0x48   : > { %5008 = vmatprep.mubr.msk.bf16.mxu0 %vm734_vm0, %v5965_v24  ;;  %5044 = vmatprep.mubr.msk.bf16.mxu1 %vm734_vm0, %v5973_v26 }
  0x4f   : > { %5009 = vmatmul.mubr.msk.bf16.gmra.mrb[24].mxu0 %vm734_vm0, %v5966_v27  ;;  %5045 = vmatmul.mubr.msk.bf16.gmra.mrb[24].mxu1 %vm734_vm0, %v5974_v29 }
  0x50   : > { %5012 = vmatprep.mubr.msk.bf16.mxu0 %vm734_vm0, %v5967_v28  ;;  %5050 = vmatprep.mubr.msk.bf16.mxu1 %vm734_vm0, %v5975_v30 }
  0x57   : > { %5013 = vmatmul.mubr.msk.bf16.gmra.mrb[28].mxu0 %vm734_vm0, %v5969_v31  ;;  %5051 = vmatmul.mubr.msk.bf16.vlgmr.msra.gmra.mrb[28].mxu1 %vm734_vm0, %v5976_v33 }
  0x58   : > { %5016 = vmatprep.mubr.msk.bf16.mxu0 %vm734_vm0, %v5971_v32 }
  0x5f   : > { %5017 = vmatmul.mubr.msk.bf16.gmra.mrb[32].mxu0 %vm734_vm0, %v5972_v34 }
  0xf2   : > { %v4986_v44 = vpop.f32.mrb[0].mxu0  ;;  %v5022_v45 = vpop.f32.mrb[0].mxu1 }
  0xf3   : > { %v865_v46 = vpop.f32.mrb[1].mxu0  ;;  %v1262_v47 = vadd.f32 %v5022_v45, %v6315_v42  ;;  %v1009_v48 = vpop.f32.mrb[1].mxu1 }
  0xf4   : > { %v4987_v49 = vpop.f32.mrb[2].mxu0  ;;  %v1260_v50 = vadd.f32 %v6315_v42, %v1009_v48  ;;  %v5023_v51 = vpop.f32.mrb[2].mxu1 }
  0xf5   : > { %v868_v52 = vpop.f32.mrb[3].mxu0  ;;  %v1334_v53 = vmax.f32 %v1262_v47, 0.0  ;;  %v1012_v54 = vpop.f32.mrb[3].mxu1 }
  0xf6   : > { %v1332_v55 = vmax.f32 %v1260_v50, 0.0  ;;  %v1261_v56 = vadd.f32 %v6315_v42, %v1012_v54 }
  0xf7   : > { %v6327_v57 = vsel %vm1524_vm1, 0.0, %v1334_v53 }
  0xf8   : > { %8476 = vst [vmem:[#allocation8_spill] sm:$0xff] %v6327_v57  ;;  %v6331_v58 = vsel %vm1446_vm2, 0.0, %v1332_v55  ;;  %v6333_v59 = vmax.f32 %v1261_v56, 0.0  ;;  %v1997_v62 = vrot.slane %v6327_v57, 2  ;;  %v1852_v12 = vrot.slane %v6327_v57, 1 }
  0xf9   : > { %v8409_v60 = vrot.slane %v6331_v58, 2  ;;  %v8410_v13 = vrot.slane %v6331_v58, 1 }
  0xfa   : > { %v4990_v61 = vpop.f32.mrb[4].mxu0  ;;  %v1996_v63 = vrot.slane %v6333_v59, 2  ;;  %v5026_v0 = vpop.f32.mrb[4].mxu1  ;;  %v1851_v2 = vrot.slane %v6333_v59, 1  ;;  %v1919_v51 = vsel %vm1886_vm4, %v1852_v12, %v6294_v36 }
  0xfb   : > { %v881_v1 = vpop.f32.mrb[5].mxu0  ;;  %v1025_v4 = vpop.f32.mrb[5].mxu1  ;;  %v1230_v6 = vadd.f32 %v4990_v61, %v6315_v42  ;;  %v1266_v49 = vadd.f32 %v5026_v0, %v6315_v42 }
  0xfc   : > { %v1228_v3 = vadd.f32 %v6315_v42, %v881_v1  ;;  %v4991_v5 = vpop.f32.mrb[6].mxu0  ;;  %v1264_v7 = vadd.f32 %v6315_v42, %v1025_v4  ;;  %v5027_v8 = vpop.f32.mrb[6].mxu1  ;;  %v2065_v10 = vsel %vm2031_vm3, %v1996_v63, %v1997_v62  ;;  %v2066_v11 = vsel %vm2031_vm3, %v8409_v60, %v1996_v63 }
  0xfd   : > { %v884_v9 = vpop.f32.mrb[7].mxu0  ;;  %v1028_v15 = vpop.f32.mrb[7].mxu1  ;;  %v5277_v16 = vpack.i.bf16 %v2065_v10, %v2066_v11  ;;  %v1920_v20 = vsel %vm1886_vm4, %v1851_v2, %v1852_v12  ;;  %v1302_v21 = vmax.f32 %v1230_v6, 0.0  ;;  %v1921_v24 = vsel %vm1886_vm4, %v8410_v13, %v1851_v2 }
  0xfe   : > { %v1300_v14 = vmax.f32 %v1228_v3, 0.0  ;;  %v1336_v17 = vmax.f32 %v1264_v7, 0.0  ;;  %v1229_v19 = vadd.f32 %v6315_v42, %v884_v9  ;;  %v5272_v27 = vpack.i.bf16 %v1920_v20, %v1921_v24 }
  0xff   : > { %5278 = vrot.lane.b32.xlu1 %v5277_v16, %s6097_s24  ;;  %v6378_v33 = vsel %vm1524_vm1, 0.0, %v1302_v21  ;;  %v1265_v56 = vadd.f32 %v6315_v42, %v1028_v15  ;;  %v1338_v3 = vmax.f32 %v1266_v49, 0.0 }
 0x100   : > { %v6356_v18 = vsel %vm1446_vm2, 0.0, %v1300_v14  ;;  %v6365_v23 = vsel %vm1446_vm2, 0.0, %v1336_v17  ;;  %v6374_v30 = vmax.f32 %v1229_v19, 0.0  ;;  %5273 = vrot.lane.b32.xlu0 %v5272_v27, %s6096_s23  ;;  %v1965_v52 = vrot.slane %v6378_v33, 2 }
 0x101   : > { %v1963_v22 = vrot.slane %v6356_v18, 2  ;;  %8477 = vst [vmem:[#allocation9_spill] sm:$0xff] %v6365_v23  ;;  %v1854_v26 = vrot.slane %v6365_v23, 1  ;;  %v1818_v34 = vrot.slane %v6356_v18, 1  ;;  %v1999_v63 = vrot.slane %v6365_v23, 2 }
 0x102   : > { %v4994_v25 = vpop.f32.mrb[8].mxu0  ;;  %v6372_v28 = vpop.f32.mrb[8].mxu1  ;;  %v1964_v53 = vrot.slane %v6374_v30, 2  ;;  %v6419_v10 = vmax.f32 %v1265_v56, 0.0  ;;  %v6442_v24 = vsel %vm1524_vm1, 0.0, %v1338_v3  ;;  %v2064_v27 = vsel %vm2031_vm3, %v1997_v62, %v6300_v38 }
 0x103   : > { %v897_v29 = vpop.f32.mrb[9].mxu0  ;;  %v1041_v31 = vpop.f32.mrb[9].mxu1  ;;  %v1918_v46 = vsel %vm1886_vm4, %v6294_v36, %v1854_v26  ;;  %v2099_v47 = vsel %vm2031_vm3, %v6300_v38, %v1963_v22  ;;  %v1954_v61 = vsel %vm1886_vm4, %v6294_v36, %v1818_v34  ;;  %v1234_v16 = vadd.f32 %v4994_v25, %v6315_v42  ;;  %8480 = vst [vmem:[#allocation12_spill] sm:$0xff] %v6442_v24 }
 0x104   : > { %v4995_v32 = vpop.f32.mrb[10].mxu0  ;;  %v1232_v35 = vadd.f32 %v6315_v42, %v897_v29  ;;  %v5031_v44 = vpop.f32.mrb[10].mxu1  ;;  %v1268_v45 = vadd.f32 %v6315_v42, %v1041_v31  ;;  %v5282_v54 = vpack.i.bf16 %v1918_v46, %v1919_v51  ;;  %v5297_v55 = vpack.i.bf16 %v2099_v47, %v6300_v38  ;;  %8478 = vst [vmem:[#allocation10_spill] sm:$0xff] %v6419_v10 }
 0x105   : > { %v900_v40 = vpop.f32.mrb[11].mxu0  ;;  %v6392_v48 = vpop.f32.mrb[11].mxu1  ;;  %v5287_v6 = vpack.i.bf16 %v1954_v61, %v6294_v36  ;;  %v2097_v7 = vsel %vm2031_vm3, %v1964_v53, %v1965_v52  ;;  %v2098_v12 = vsel %vm2031_vm3, %v1963_v22, %v1964_v53  ;;  %v2063_v20 = vsel %vm2031_vm3, %v6300_v38, %v1999_v63 }
 0x106   : > { %v1304_v50 = vmax.f32 %v1232_v35, 0.0  ;;  %v1340_v1 = vmax.f32 %v1268_v45, 0.0  ;;  %5283 = vrot.lane.b32.xlu0 %v5282_v54, %s6096_s23  ;;  %5298 = vrot.lane.b32.xlu1 %v5297_v55, %s6097_s24  ;;  %v5307_v19 = vpack.i.bf16 %v2097_v7, %v2098_v12  ;;  %v1820_v22 = vrot.slane %v6378_v33, 1 }
 0x107   : > { %v1819_v25 = vrot.slane %v6374_v30, 1  ;;  %v5292_v29 = vpack.i.bf16 %v2063_v20, %v2064_v27  ;;  %v1855_v31 = vrot.slane %v6419_v10, 1  ;;  %v1233_v35 = vadd.f32 %v6315_v42, %v900_v40 }
 0x108   : > { %v6408_v0 = vsel %vm1446_vm2, 0.0, %v1304_v50  ;;  %v6429_v17 = vsel %vm1446_vm2, 0.0, %v1340_v1  ;;  %v1856_v45 = vrot.slane %v6442_v24, 1  ;;  %v1306_v46 = vmax.f32 %v1234_v16, 0.0 }
 0x109   : > { %v1967_v11 = vrot.slane %v6408_v0, 2  ;;  %8479 = vst [vmem:[#allocation11_spill] sm:$0xff] %v6429_v17  ;;  %v1858_v32 = vrot.slane %v6429_v17, 1  ;;  %v1270_v49 = vadd.f32 %v6372_v28, %v6315_v42  ;;  %v2096_v40 = vsel %vm2031_vm3, %v1965_v52, %v6300_v38 }
 0x10a   : > { %v6412_v2 = vpop.f32.mrb[12].mxu0  ;;  %v6414_v4 = vpop.f32.mrb[12].mxu1  ;;  %5288 = vrot.lane.b32.xlu0 %v5287_v6, %s6096_s23  ;;  %5308 = vrot.lane.b32.xlu1 %v5307_v19, %s6097_s24  ;;  %v1952_v50 = vsel %vm1886_vm4, %v1819_v25, %v1820_v22  ;;  %v1953_v51 = vsel %vm1886_vm4, %v1818_v34, %v1819_v25  ;;  %v2000_v55 = vrot.slane %v6419_v10, 2  ;;  %v2003_v52 = vrot.slane %v6429_v17, 2 }
 0x10b   : > { %v913_v5 = vpop.f32.mrb[13].mxu0  ;;  %v1057_v8 = vpop.f32.mrb[13].mxu1  ;;  %v2095_v44 = vsel %vm2031_vm3, %v6300_v38, %v1967_v11  ;;  %v5302_v61 = vpack.i.bf16 %v1952_v50, %v1953_v51  ;;  %v6481_v3 = vmax.f32 %v1233_v35, 0.0  ;;  %v1914_v34 = vsel %vm1886_vm4, %v6294_v36, %v1858_v32 }
 0x10c   : > { %v4999_v9 = vpop.f32.mrb[14].mxu0  ;;  %v5035_v15 = vpop.f32.mrb[14].mxu1  ;;  %v1236_v62 = vadd.f32 %v6315_v42, %v913_v5  ;;  %v5327_v56 = vpack.i.bf16 %v2095_v44, %v2096_v40  ;;  %v1916_v5 = vsel %vm1886_vm4, %v1855_v31, %v1856_v45  ;;  %v1917_v16 = vsel %vm1886_vm4, %v1854_v26, %v1855_v31 }
 0x10d   : > { %v6424_v14 = vpop.f32.mrb[15].mxu0  ;;  %v6437_v21 = vpop.f32.mrb[15].mxu1  ;;  %v6494_v9 = vsel %vm1524_vm1, 0.0, %v1306_v46  ;;  %v1272_v15 = vadd.f32 %v6315_v42, %v1057_v8  ;;  %v2001_v20 = vrot.slane %v6442_v24, 2  ;;  %v1342_v25 = vmax.f32 %v1270_v49, 0.0 }
 0x10e   : > { %5293 = vrot.lane.b32.xlu0 %v5292_v29, %s6097_s24  ;;  %v1308_v12 = vmax.f32 %v1236_v62, 0.0  ;;  %5328 = vrot.lane.b32.xlu1 %v5327_v56, %s6097_s24  ;;  %v1915_v27 = vsel %vm1886_vm4, %v1856_v45, %v6294_v36  ;;  %v1269_v8 = vadd.f32 %v6315_v42, %v6392_v48  ;;  %v5312_v35 = vpack.i.bf16 %v1916_v5, %v1917_v16 }
 0x10f   : > { %v5332_v29 = vpack.i.bf16 %v1914_v34, %v1915_v27  ;;  %v8414_v44 = vrot.slane %v6494_v9, 1  ;;  %v1823_v46 = vrot.slane %v6481_v3, 1  ;;  %v2059_v26 = vsel %vm2031_vm3, %v6300_v38, %v2003_v52 }
 0x110   : > { %v2061_v31 = vsel %vm2031_vm3, %v2000_v55, %v2001_v20  ;;  %v6522_v45 = vsel %vm1446_vm2, 0.0, %v1308_v12  ;;  %v1344_v48 = vmax.f32 %v1272_v15, 0.0  ;;  %v2062_v62 = vsel %vm2031_vm3, %v1999_v63, %v2000_v55 }
 0x111   : > { %v1969_v40 = vrot.slane %v6494_v9, 2  ;;  %v6535_v50 = vsel %vm1524_vm1, 0.0, %v1342_v25  ;;  %v1822_v51 = vrot.slane %v6408_v0, 1  ;;  %v2060_v56 = vsel %vm2031_vm3, %v2001_v20, %v6300_v38 }
 0x112   : > { %v6462_v47 = vpop.f32.mrb[16].mxu0  ;;  %v6475_v54 = vpop.f32.mrb[16].mxu1  ;;  %5303 = vrot.lane.b32.xlu0 %v5302_v61, %s6096_s23  ;;  %5333 = vrot.lane.b32.xlu1 %v5332_v29, %s6096_s23  ;;  %8481 = vst [vmem:[#allocation13_spill] sm:$0xff] %v6535_v50  ;;  %v6545_v34 = vmax.f32 %v1269_v8, 0.0  ;;  %v1238_v63 = vadd.f32 %v6412_v2, %v6315_v42  ;;  %v5337_v55 = vpack.i.bf16 %v2059_v26, %v2060_v56  ;;  %v1968_v15 = vrot.slane %v6481_v3, 2 }
 0x113   : > { %v929_v53 = vpop.f32.mrb[17].mxu0  ;;  %v6478_v28 = vpop.f32.mrb[17].mxu1  ;;  %v5317_v5 = vpack.i.bf16 %v2061_v31, %v2062_v62  ;;  %v8412_v16 = vrot.slane %v6522_v45, 2  ;;  %v1948_v20 = vsel %vm1886_vm4, %v1823_v46, %v8414_v44  ;;  %v1949_v25 = vsel %vm1886_vm4, %v1822_v51, %v1823_v46 }
 0x114   : > { %v5003_v1 = vpop.f32.mrb[18].mxu0  ;;  %v5039_v7 = vpop.f32.mrb[18].mxu1  ;;  %8482 = vst [vmem:[#allocation14_spill] sm:$0xff] %v6545_v34  ;;  %v6563_v8 = vsel %vm1446_vm2, 0.0, %v1344_v48  ;;  %v1240_v29 = vadd.f32 %v6315_v42, %v929_v53  ;;  %v1860_v26 = vrot.slane %v6535_v50, 1  ;;  %v1950_v46 = vsel %vm1886_vm4, %v6294_v36, %v1822_v51 }
 0x115   : > { %v6490_v6 = vpop.f32.mrb[19].mxu0  ;;  %v6503_v19 = vpop.f32.mrb[19].mxu1  ;;  %v1951_v31 = vsel %vm1886_vm4, %v1820_v22, %v6294_v36  ;;  %v1859_v48 = vrot.slane %v6545_v34, 1  ;;  %v1310_v62 = vmax.f32 %v1238_v63, 0.0  ;;  %v5342_v53 = vpack.i.bf16 %v1948_v20, %v1949_v25 }
 0x116   : > { %5313 = vrot.lane.b32.xlu0 %v5312_v35, %s6096_s23  ;;  %5338 = vrot.lane.b32.xlu1 %v5337_v55, %s6097_s24  ;;  %v5322_v56 = vpack.i.bf16 %v1950_v46, %v1951_v31  ;;  %v8411_v55 = vrot.slane %v6563_v8, 1  ;;  %v2093_v51 = vsel %vm2031_vm3, %v1968_v15, %v1969_v40  ;;  %v2094_v22 = vsel %vm2031_vm3, %v1967_v11, %v1968_v15 }
 0x117   : > { %v2005_v20 = vrot.slane %v6535_v50, 2  ;;  %v2004_v25 = vrot.slane %v6545_v34, 2  ;;  %v2092_v46 = vsel %vm2031_vm3, %v1969_v40, %v6300_v38  ;;  %v6609_v15 = vsel %vm1524_vm1, 0.0, %v1310_v62 }
 0x118   : > { %v1911_v40 = vsel %vm1886_vm4, %v1860_v26, %v6294_v36  ;;  %v1912_v62 = vsel %vm1886_vm4, %v1859_v48, %v1860_v26 }
 0x11a   : > { %v6530_v49 = vpop.f32.mrb[20].mxu0  ;;  %v6543_v1 = vpop.f32.mrb[20].mxu1  ;;  %5318 = vrot.lane.b32.xlu0 %v5317_v5, %s6097_s24  ;;  %v2091_v5 = vsel %vm2031_vm3, %v6300_v38, %v8412_v16  ;;  %5343 = vrot.lane.b32.xlu1 %v5342_v53, %s6096_s23  ;;  %v1828_v16 = vrot.slane %v6609_v15, 1 }
 0x11b   : > { %v6541_v61 = vpop.f32.mrb[21].mxu0  ;;  %v6549_v12 = vpop.f32.mrb[21].mxu1  ;;  %v5367_v53 = vpack.i.bf16 %v2091_v5, %v2092_v46  ;;  %v1276_v46 = vadd.f32 %v6315_v42, %v6478_v28 }
 0x11c   : > { %v5007_v7 = vpop.f32.mrb[22].mxu0  ;;  %v5043_v2 = vpop.f32.mrb[22].mxu1 }
 0x11d   : > { %v6559_v27 = vpop.f32.mrb[23].mxu0  ;;  %v6568_v35 = vpop.f32.mrb[23].mxu1  ;;  %v1312_v7 = vmax.f32 %v1240_v29, 0.0  ;;  %v1274_v2 = vadd.f32 %v6414_v4, %v6315_v42  ;;  %v8413_v29 = vrot.slane %v6563_v8, 2  ;;  %v1910_v4 = vsel %vm1886_vm4, %v6294_v36, %v8411_v55 }
 0x11e   : > { %5323 = vrot.lane.b32.xlu0 %v5322_v56, %s6096_s23  ;;  %v5347_v56 = vpack.i.bf16 %v2093_v51, %v2094_v22  ;;  %5368 = vrot.lane.b32.xlu1 %v5367_v53, %s6097_s24  ;;  %v2056_v53 = vsel %vm2031_vm3, %v2005_v20, %v6300_v38 }
 0x11f   : > { %v6632_v22 = vsel %vm1446_vm2, 0.0, %v1312_v7  ;;  %v1346_v55 = vmax.f32 %v1274_v2, 0.0  ;;  %v2055_v28 = vsel %vm2031_vm3, %v6300_v38, %v8413_v29  ;;  %v2057_v2 = vsel %vm2031_vm3, %v2004_v25, %v2005_v20 }
 0x120   : > { %v8487_v50 = vrot.slane %v6632_v22, 2 }
 0x122   : > { %v6594_v63 = vpop.f32.mrb[24].mxu0  ;;  %v6605_v11 = vpop.f32.mrb[24].mxu1  ;;  %5348 = vrot.lane.b32.xlu0 %v5347_v56, %s6097_s24  ;;  %v1826_v56 = vrot.slane %v6522_v45, 1  ;;  %v2087_v23 = vsel %vm2031_vm3, %v6300_v38, %v8487_v50  ;;  %v1278_v50 = vadd.f32 %v6475_v54, %v6315_v42 }
 0x123   : > { %v6603_v31 = vpop.f32.mrb[25].mxu0  ;;  %v6612_v13 = vpop.f32.mrb[25].mxu1 }
 0x124   : > { %v5011_v60 = vpop.f32.mrb[26].mxu0  ;;  %v5047_v51 = vpop.f32.mrb[26].mxu1 }
 0x125   : > { %v1913_v60 = vsel %vm1886_vm4, %v1858_v32, %v1859_v48  ;;  %v6628_v5 = vpop.f32.mrb[27].mxu0  ;;  %v6638_v26 = vpop.f32.mrb[27].mxu1  ;;  %v1237_v32 = vadd.f32 %v6315_v42, %v6424_v14  ;;  %v5372_v48 = vpack.i.bf16 %v1910_v4, %v1911_v40  ;;  %v1348_v14 = vmax.f32 %v1276_v46, 0.0 }
 0x126   : > { %v5352_v51 = vpack.i.bf16 %v1912_v62, %v1913_v60  ;;  %v2058_v4 = vsel %vm2031_vm3, %v2003_v52, %v2004_v25  ;;  %v6665_v62 = vsel %vm1524_vm1, 0.0, %v1346_v55  ;;  %v1973_v52 = vrot.slane %v6609_v15, 2 }
 0x127   : > { %5373 = vrot.lane.b32.xlu1 %v5372_v48, %s6096_s23  ;;  %8483 = vst [vmem:[#allocation15_spill] sm:$0xff] %v6665_v62  ;;  %v6671_v46 = vmax.f32 %v1237_v32, 0.0  ;;  %v1242_v48 = vadd.f32 %v6462_v47, %v6315_v42  ;;  %v5357_v29 = vpack.i.bf16 %v2057_v2, %v2058_v4  ;;  %v8484_v55 = vrot.slane %v6632_v22, 1 }
 0x128   : > { %5353 = vrot.lane.b32.xlu0 %v5352_v51, %s6096_s23  ;;  %v5377_v51 = vpack.i.bf16 %v2055_v28, %v2056_v53  ;;  %v1943_v32 = vsel %vm1886_vm4, %v1828_v16, %v6294_v36  ;;  %v6693_v53 = vsel %vm1446_vm2, 0.0, %v1348_v14  ;;  %v1244_v2 = vadd.f32 %v6315_v42, %v6541_v61 }
 0x129   : > { %v1942_v17 = vsel %vm1886_vm4, %v6294_v36, %v8484_v55  ;;  %8485 = vst [vmem:[#allocation16_spill] sm:$0xff] %v6693_v53  ;;  %v1946_v4 = vsel %vm1886_vm4, %v6294_v36, %v1826_v56  ;;  %v1314_v25 = vmax.f32 %v1242_v48, 0.0  ;;  %v2088_v10 = vsel %vm2031_vm3, %v1973_v52, %v6300_v38 }
 0x12a   : > { %v6661_v40 = vpop.f32.mrb[28].mxu0  ;;  %v6669_v20 = vpop.f32.mrb[28].mxu1  ;;  %v5402_v61 = vpack.i.bf16 %v1942_v17, %v1943_v32  ;;  %v1316_v39 = vmax.f32 %v1244_v2, 0.0  ;;  %v2009_v48 = vrot.slane %v6665_v62, 2  ;;  %v1972_v32 = vrot.slane %v6671_v46, 2 }
 0x12b   : > { %v6667_v60 = vpop.f32.mrb[29].mxu0  ;;  %v6675_v7 = vpop.f32.mrb[29].mxu1  ;;  %5378 = vrot.lane.b32.xlu1 %v5377_v51, %s6097_s24  ;;  %v1864_v51 = vrot.slane %v6665_v62, 1  ;;  %v5407_v2 = vpack.i.bf16 %v2087_v23, %v2088_v10  ;;  %v8488_v24 = vrot.slane %v6693_v53, 1 }
 0x12c   : > { %v5015_v44 = vpop.f32.mrb[30].mxu0  ;;  %v5053_v28 = vpop.f32.mrb[30].mxu1  ;;  %5358 = vrot.lane.b32.xlu0 %v5357_v29, %s6097_s24 }
 0x12d   : > { %v6687_v47 = vpop.f32.mrb[31].mxu0  ;;  %v1273_v44 = vadd.f32 %v6315_v42, %v6437_v21  ;;  %v6702_v55 = vpop.f32.mrb[31].mxu1  ;;  %v8486_v21 = vrot.slane %v6494_v9, 1  ;;  %v1827_v28 = vrot.slane %v6671_v46, 1  ;;  %v1906_v54 = vsel %vm1886_vm4, %v6294_v36, %v8488_v24 }
 0x12e   : > { %v1907_v23 = vsel %vm1886_vm4, %v1864_v51, %v6294_v36  ;;  %v2089_v24 = vsel %vm2031_vm3, %v1972_v32, %v1973_v52 }
 0x12f   : > { %v1947_v14 = vsel %vm1886_vm4, %v8486_v21, %v6294_v36  ;;  %v6720_v21 = vmax.f32 %v1273_v44, 0.0  ;;  %5403 = vrot.lane.b32.xlu1 %v5402_v61, %s6096_s23  ;;  %v6734_v44 = vsel %vm1524_vm1, 0.0, %v1314_v25  ;;  %v6756_v25 = vsel %vm1446_vm2, 0.0, %v1316_v39 }
 0x130   : > { %v5362_v34 = vpack.i.bf16 %v1946_v4, %v1947_v14  ;;  %v1944_v14 = vsel %vm1886_vm4, %v1827_v28, %v1828_v16  ;;  %v5412_v39 = vpack.i.bf16 %v1906_v54, %v1907_v23  ;;  %v1977_v54 = vrot.slane %v6734_v44, 2 }
 0x131   : > { %v1863_v16 = vrot.slane %v6720_v21, 1  ;;  %v2008_v29 = vrot.slane %v6720_v21, 2  ;;  %v8491_v23 = vrot.slane %v6563_v8, 1 }
 0x132   : > { %5363 = vrot.lane.b32.xlu0 %v5362_v34, %s6096_s23  ;;  %v6724_v17 = vpop.f32.mrb[32].mxu0  ;;  %v1945_v34 = vsel %vm1886_vm4, %v1826_v56, %v1827_v28  ;;  %v1241_v56 = vadd.f32 %v6315_v42, %v6490_v6  ;;  %v1280_v28 = vadd.f32 %v6315_v42, %v6549_v12  ;;  %v1832_v6 = vrot.slane %v6734_v44, 1 }
 0x133   : > { %v6730_v4 = vpop.f32.mrb[33].mxu0  ;;  %v5382_v62 = vpack.i.bf16 %v1944_v14, %v1945_v34  ;;  %5408 = vrot.lane.b32.xlu1 %v5407_v2, %s6097_s24  ;;  %v8489_v14 = vrot.slane %v6522_v45, 2  ;;  %v8427_v12 = vrot.slane %v6756_v25, 1  ;;  %v8490_v2 = vrot.slane %v6693_v53, 2 }
 0x134   : > { %v5019_v61 = vpop.f32.mrb[34].mxu0  ;;  %v6776_v52 = vmax.f32 %v1241_v56, 0.0  ;;  %v1352_v37 = vmax.f32 %v1280_v28, 0.0  ;;  %v1909_v56 = vsel %vm1886_vm4, %v8491_v23, %v1863_v16 }
 0x135   : > { %v6749_v10 = vpop.f32.mrb[35].mxu0  ;;  %v2090_v34 = vsel %vm2031_vm3, %v8489_v14, %v1972_v32  ;;  %v1350_v61 = vmax.f32 %v1278_v50, 0.0  ;;  %v2052_v32 = vsel %vm2031_vm3, %v2009_v48, %v6300_v38  ;;  %v1908_v50 = vsel %vm1886_vm4, %v1863_v16, %v1864_v51 }
 0x136   : > { %5383 = vrot.lane.b32.xlu0 %v5382_v62, %s6096_s23  ;;  %v5387_v57 = vpack.i.bf16 %v2089_v24, %v2090_v34  ;;  %v2051_v62 = vsel %vm2031_vm3, %v6300_v38, %v8490_v2  ;;  %v1246_v24 = vadd.f32 %v6530_v49, %v6315_v42  ;;  %v1277_v14 = vadd.f32 %v6315_v42, %v6503_v19 }
 0x137   : > { %5413 = vrot.lane.b32.xlu1 %v5412_v39, %s6096_s23  ;;  %v6792_v28 = vsel %vm1524_vm1, 0.0, %v1350_v61  ;;  %v5417_v51 = vpack.i.bf16 %v2051_v62, %v2052_v32  ;;  %v8429_v34 = vrot.slane %v6756_v25, 2  ;;  %v5392_v39 = vpack.i.bf16 %v1908_v50, %v1909_v56 }
 0x138   : > { %v1939_v16 = vsel %vm1886_vm4, %v1832_v6, %v6294_v36  ;;  %v1831_v61 = vrot.slane %v6776_v52, 1  ;;  %v1248_v49 = vadd.f32 %v6315_v42, %v6603_v31  ;;  %v6812_v19 = vsel %vm1446_vm2, 0.0, %v1352_v37 }
 0x139   : > { %v2053_v2 = vsel %vm2031_vm3, %v2008_v29, %v2009_v48  ;;  %v8492_v62 = vrot.slane %v6563_v8, 2  ;;  %v1868_v50 = vrot.slane %v6792_v28, 1  ;;  %v1318_v23 = vmax.f32 %v1246_v24, 0.0 }
 0x13a   : > { %5388 = vrot.lane.b32.xlu0 %v5387_v57, %s6097_s24  ;;  %v1938_v57 = vsel %vm1886_vm4, %v6294_v36, %v8427_v12  ;;  %v6823_v31 = vmax.f32 %v1277_v14, 0.0  ;;  %v8428_v37 = vrot.slane %v6812_v19, 1  ;;  %v2083_v48 = vsel %vm2031_vm3, %v6300_v38, %v8429_v34 }
 0x13b   : > { %5418 = vrot.lane.b32.xlu1 %v5417_v51, %s6097_s24  ;;  %v2054_v32 = vsel %vm2031_vm3, %v8492_v62, %v2008_v29  ;;  %v5442_v56 = vpack.i.bf16 %v1938_v57, %v1939_v16  ;;  %v2084_v51 = vsel %vm2031_vm3, %v1977_v54, %v6300_v38  ;;  %v1976_v29 = vrot.slane %v6776_v52, 2 }
 0x13c   : > { %8493 = vst [vmem:[#allocation17_spill] sm:$0xff] %v6823_v31  ;;  %v5397_v12 = vpack.i.bf16 %v2053_v2, %v2054_v32  ;;  %v1940_v24 = vsel %vm1886_vm4, %v1831_v61, %v1832_v6  ;;  %v8494_v14 = vrot.slane %v6632_v22, 1  ;;  %v2013_v16 = vrot.slane %v6792_v28, 2 }
 0x13d   : > { %v1245_v2 = vadd.f32 %v6315_v42, %v6559_v27  ;;  %v1867_v62 = vrot.slane %v6823_v31, 1  ;;  %v1282_v6 = vadd.f32 %v6543_v1, %v6315_v42  ;;  %v5447_v32 = vpack.i.bf16 %v2083_v48, %v2084_v51 }
 0x13e   : > { %5393 = vrot.lane.b32.xlu0 %v5392_v39, %s6096_s23  ;;  %v1320_v39 = vmax.f32 %v1248_v49, 0.0  ;;  %v1941_v57 = vsel %vm1886_vm4, %v8494_v14, %v1831_v61  ;;  %v6848_v49 = vsel %vm1524_vm1, 0.0, %v1318_v23  ;;  %v1902_v27 = vsel %vm1886_vm4, %v6294_v36, %v8428_v37 }
 0x13f   : > { %5443 = vrot.lane.b32.xlu1 %v5442_v56, %s6096_s23  ;;  %v8432_v56 = vrot.slane %v6812_v19, 2  ;;  %v5422_v61 = vpack.i.bf16 %v1940_v24, %v1941_v57  ;;  %v1284_v1 = vadd.f32 %v6315_v42, %v6612_v13  ;;  %v2085_v48 = vsel %vm2031_vm3, %v1976_v29, %v1977_v54 }
 0x140   : > { %v6864_v23 = vsel %vm1446_vm2, 0.0, %v1320_v39  ;;  %v8495_v51 = vrot.slane %v6632_v22, 2  ;;  %v1836_v14 = vrot.slane %v6848_v49, 1  ;;  %v6877_v57 = vmax.f32 %v1245_v2, 0.0 }
 0x141   : > { %v1354_v39 = vmax.f32 %v1282_v6, 0.0  ;;  %v8430_v13 = vrot.slane %v6864_v23, 1  ;;  %v2047_v54 = vsel %vm2031_vm3, %v6300_v38, %v8432_v56  ;;  %v1904_v2 = vsel %vm1886_vm4, %v1867_v62, %v1868_v50 }
 0x142   : > { %5398 = vrot.lane.b32.xlu0 %v5397_v12, %s6097_s24  ;;  %v1903_v12 = vsel %vm1886_vm4, %v1868_v50, %v6294_v36  ;;  %v2086_v24 = vsel %vm2031_vm3, %v8495_v51, %v1976_v29  ;;  %v2048_v29 = vsel %vm2031_vm3, %v2013_v16, %v6300_v38  ;;  %v8496_v6 = vrot.slane %v6693_v53, 1 }
 0x143   : > { %5448 = vrot.lane.b32.xlu1 %v5447_v32, %s6097_s24  ;;  %v5452_v37 = vpack.i.bf16 %v1902_v27, %v1903_v12  ;;  %v5427_v34 = vpack.i.bf16 %v2085_v48, %v2086_v24  ;;  %v2012_v32 = vrot.slane %v6823_v31, 2  ;;  %v1981_v12 = vrot.slane %v6848_v49, 2 }
 0x144   : > { %v1905_v27 = vsel %vm1886_vm4, %v8496_v6, %v1867_v62  ;;  %v1835_v48 = vrot.slane %v6877_v57, 1  ;;  %v6901_v51 = vsel %vm1524_vm1, 0.0, %v1354_v39  ;;  %v8431_v50 = vrot.slane %v6864_v23, 2 }
 0x145   : > { %v5432_v24 = vpack.i.bf16 %v1904_v2, %v1905_v27  ;;  %v1934_v62 = vsel %vm1886_vm4, %v6294_v36, %v8430_v13  ;;  %v1281_v39 = vadd.f32 %v6315_v42, %v6568_v35  ;;  %v1250_v6 = vadd.f32 %v6594_v63, %v6315_v42 }
 0x146   : > { %5423 = vrot.lane.b32.xlu0 %v5422_v61, %s6096_s23  ;;  %v1356_v61 = vmax.f32 %v1284_v1, 0.0  ;;  %v5457_v1 = vpack.i.bf16 %v2047_v54, %v2048_v29  ;;  %v8497_v29 = vrot.slane %v6693_v53, 2  ;;  %v1872_v35 = vrot.slane %v6901_v51, 1 }
 0x147   : > { %5453 = vrot.lane.b32.xlu1 %v5452_v37, %s6096_s23  ;;  %v1290_v37 = vadd.f32 %v6669_v20, %v6315_v42  ;;  %v2049_v20 = vsel %vm2031_vm3, %v2012_v32, %v2013_v16  ;;  %v2080_v63 = vsel %vm2031_vm3, %v1981_v12, %v6300_v38 }
 0x148   : > { %v6918_v54 = vsel %vm1446_vm2, 0.0, %v1356_v61  ;;  %v2050_v2 = vsel %vm2031_vm3, %v8497_v29, %v2012_v32  ;;  %v1252_v61 = vadd.f32 %v6315_v42, %v6667_v60  ;;  %v2079_v32 = vsel %vm2031_vm3, %v6300_v38, %v8431_v50 }
 0x149   : > { %v1362_v27 = vmax.f32 %v1290_v37, 0.0  ;;  %v1874_v13 = vrot.slane %v6918_v54, 1  ;;  %v5437_v16 = vpack.i.bf16 %v2049_v20, %v2050_v2  ;;  %v6943_v29 = vmax.f32 %v1281_v39, 0.0 }
 0x14a   : > { %5428 = vrot.lane.b32.xlu0 %v5427_v34, %s6097_s24  ;;  %v1935_v34 = vsel %vm1886_vm4, %v1836_v14, %v6294_v36  ;;  %v1936_v60 = vsel %vm1886_vm4, %v1835_v48, %v1836_v14  ;;  %v8498_v37 = vrot.slane %v6756_v25, 1  ;;  %v1322_v20 = vmax.f32 %v1250_v6, 0.0 }
 0x14b   : > { %5458 = vrot.lane.b32.xlu1 %v5457_v1, %s6097_s24  ;;  %v5482_v1 = vpack.i.bf16 %v1934_v62, %v1935_v34  ;;  %v2017_v34 = vrot.slane %v6901_v51, 2  ;;  %v1249_v2 = vadd.f32 %v6315_v42, %v6628_v5  ;;  %v1324_v39 = vmax.f32 %v1252_v61, 0.0 }
 0x14c   : > { %v1937_v62 = vsel %vm1886_vm4, %v8498_v37, %v1835_v48  ;;  %v5487_v50 = vpack.i.bf16 %v2079_v32, %v2080_v63  ;;  %v8434_v14 = vrot.slane %v6918_v54, 2  ;;  %v1898_v48 = vsel %vm1886_vm4, %v6294_v36, %v1874_v13 }
 0x14d   : > { %v5462_v56 = vpack.i.bf16 %v1936_v60, %v1937_v62  ;;  %v1899_v6 = vsel %vm1886_vm4, %v1872_v35, %v6294_v36  ;;  %v1871_v5 = vrot.slane %v6943_v29, 1  ;;  %v6981_v63 = vsel %vm1524_vm1, 0.0, %v1322_v20 }
 0x14e   : > { %5433 = vrot.lane.b32.xlu0 %v5432_v24, %s6096_s23  ;;  %v1980_v24 = vrot.slane %v6877_v57, 2  ;;  %v6983_v60 = vmax.f32 %v1249_v2, 0.0  ;;  %v1286_v37 = vadd.f32 %v6605_v11, %v6315_v42  ;;  %v2016_v20 = vrot.slane %v6943_v29, 2 }
 0x14f   : > { %5483 = vrot.lane.b32.xlu1 %v5482_v1, %s6096_s23  ;;  %v6958_v1 = vsel %vm1524_vm1, 0.0, %v1362_v27  ;;  %v8500_v27 = vrot.slane %v6756_v25, 2  ;;  %v1288_v2 = vadd.f32 %v6315_v42, %v6675_v7  ;;  %v1900_v11 = vsel %vm1886_vm4, %v1871_v5, %v1872_v35 }
 0x150   : > { %8499 = vst [vmem:[#allocation18_spill] sm:$0xff] %v6958_v1  ;;  %v2081_v61 = vsel %vm2031_vm3, %v1980_v24, %v1981_v12  ;;  %v8433_v32 = vrot.slane %v6958_v1, 1  ;;  %v5492_v12 = vpack.i.bf16 %v1898_v48, %v1899_v6  ;;  %v1840_v7 = vrot.slane %v6981_v63, 1 }
 0x152   : > { %5438 = vrot.lane.b32.xlu0 %v5437_v16, %s6097_s24  ;;  %v2082_v16 = vsel %vm2031_vm3, %v8500_v27, %v1980_v24  ;;  %v2044_v24 = vsel %vm2031_vm3, %v2017_v34, %v6300_v38  ;;  %v1891_v6 = vsel %vm1886_vm4, %v8433_v32, %v6294_v36  ;;  %v2045_v32 = vsel %vm2031_vm3, %v2016_v20, %v2017_v34 }
 0x153   : > { %5488 = vrot.lane.b32.xlu1 %v5487_v50, %s6097_s24  ;;  %v6987_v50 = vsel %vm1446_vm2, 0.0, %v1324_v39  ;;  %v5467_v62 = vpack.i.bf16 %v2081_v61, %v2082_v16  ;;  %v8501_v39 = vrot.slane %v6812_v19, 1  ;;  %v1839_v61 = vrot.slane %v6983_v60, 1 }
 0x154   : > { %v8435_v35 = vrot.slane %v6987_v50, 1  ;;  %v1358_v16 = vmax.f32 %v1286_v37, 0.0  ;;  %v1254_v37 = vadd.f32 %v6661_v40, %v6315_v42 }
 0x155   : > { %v1901_v48 = vsel %vm1886_vm4, %v8501_v39, %v1871_v5  ;;  %v1360_v39 = vmax.f32 %v1288_v2, 0.0  ;;  %v1987_v2 = vrot.slane %v6987_v50, 2 }
 0x156   : > { %5463 = vrot.lane.b32.xlu0 %v5462_v56, %s6096_s23  ;;  %v2043_v56 = vsel %vm2031_vm3, %v6300_v38, %v8434_v14  ;;  %v5472_v5 = vpack.i.bf16 %v1900_v11, %v1901_v48  ;;  %v8502_v14 = vrot.slane %v6812_v19, 2  ;;  %v1258_v11 = vadd.f32 %v6724_v17, %v6315_v42 }
 0x157   : > { %5493 = vrot.lane.b32.xlu1 %v5492_v12, %s6096_s23  ;;  %v5497_v27 = vpack.i.bf16 %v2043_v56, %v2044_v24  ;;  %v1285_v12 = vadd.f32 %v6315_v42, %v6638_v26  ;;  %v1985_v26 = vrot.slane %v6981_v63, 2  ;;  %v1984_v24 = vrot.slane %v6983_v60, 2 }
 0x158   : > { %v2046_v56 = vsel %vm2031_vm3, %v8502_v14, %v2016_v20  ;;  %v7038_v34 = vsel %vm1524_vm1, 0.0, %v1358_v16  ;;  %v1930_v40 = vsel %vm1886_vm4, %v6294_v36, %v8435_v35  ;;  %v1931_v14 = vsel %vm1886_vm4, %v1840_v7, %v6294_v36 }
 0x159   : > { %v5477_v48 = vpack.i.bf16 %v2045_v32, %v2046_v56  ;;  %v7048_v20 = vmax.f32 %v1285_v12, 0.0  ;;  %v7052_v17 = vsel %vm1446_vm2, 0.0, %v1360_v39  ;;  %v1932_v32 = vsel %vm1886_vm4, %v1839_v61, %v1840_v7 }
 0x15a   : > { %5468 = vrot.lane.b32.xlu0 %v5467_v62, %s6097_s24  ;;  %v5522_v62 = vpack.i.bf16 %v6294_v36, %v1891_v6  ;;  %v8503_v6 = vrot.slane %v6864_v23, 1  ;;  %v1326_v16 = vmax.f32 %v1254_v37, 0.0  ;;  %v1253_v12 = vadd.f32 %v6315_v42, %v6687_v47 }
 0x15b   : > { %5498 = vrot.lane.b32.xlu1 %v5497_v27, %s6097_s24  ;;  %v1876_v39 = vrot.slane %v7038_v34, 1  ;;  %v5527_v56 = vpack.i.bf16 %v1930_v40, %v1931_v14  ;;  %v2075_v7 = vsel %vm2031_vm3, %v6300_v38, %v1987_v2  ;;  %v1875_v37 = vrot.slane %v7048_v20, 1 }
 0x15c   : > { %v1933_v27 = vsel %vm1886_vm4, %v8503_v6, %v1839_v61  ;;  %v2076_v61 = vsel %vm2031_vm3, %v1985_v26, %v6300_v38  ;;  %v2077_v47 = vsel %vm2031_vm3, %v1984_v24, %v1985_v26  ;;  %v7084_v40 = vsel %vm1524_vm1, 0.0, %v1326_v16 }
 0x15d   : > { %v5502_v35 = vpack.i.bf16 %v1932_v32, %v1933_v27  ;;  %v7087_v14 = vmax.f32 %v1253_v12, 0.0  ;;  %v2021_v6 = vrot.slane %v7038_v34, 2  ;;  %v5532_v26 = vpack.i.bf16 %v2075_v7, %v2076_v61 }
 0x15e   : > { %5473 = vrot.lane.b32.xlu0 %v5472_v5, %s6096_s23  ;;  %v1330_v5 = vmax.f32 %v1258_v11, 0.0  ;;  %v8504_v11 = vrot.slane %v6864_v23, 2  ;;  %v8436_v27 = vrot.slane %v7052_v17, 2  ;;  %v2020_v43 = vrot.slane %v7048_v20, 2 }
 0x15f   : > { %5523 = vrot.lane.b32.xlu1 %v5522_v62, %s6096_s23  ;;  %v8439_v62 = vrot.slane %v7052_v17, 1  ;;  %v1256_v16 = vadd.f32 %v6315_v42, %v6730_v4  ;;  %v1896_v12 = vsel %vm1886_vm4, %v1875_v37, %v1876_v39  ;;  %v1844_v7 = vrot.slane %v7084_v40, 1 }
 0x160   : > { %v7091_v32 = vsel %vm1524_vm1, 0.0, %v1330_v5  ;;  %v1897_v5 = vsel %vm1886_vm4, %v1874_v13, %v1875_v37  ;;  %v1843_v61 = vrot.slane %v7087_v14, 1  ;;  %v2040_v13 = vsel %vm2031_vm3, %v2021_v6, %v6300_v38 }
 0x161   : > { %v8438_v4 = vrot.slane %v7091_v32, 1  ;;  %v1289_v37 = vadd.f32 %v6315_v42, %v6702_v55  ;;  %v8437_v42 = vrot.slane %v7091_v32, 2  ;;  %v8512_v53 = vrot.slane %v7091_v32, 1 }
 0x162   : > { %5478 = vrot.lane.b32.xlu0 %v5477_v48, %s6097_s24  ;;  %v2078_v48 = vsel %vm2031_vm3, %v8504_v11, %v1984_v24  ;;  %v1894_v24 = vsel %vm1886_vm4, %v6294_v36, %v8439_v62  ;;  %v7116_v11 = vpop.permute.xlu1 %5263  ;;  %v8513_v31 = vrot.slane %v7091_v32, 2 }
 0x163   : > { %5528 = vrot.lane.b32.xlu1 %v5527_v56, %s6096_s23  ;;  %v5507_v56 = vpack.i.bf16 %v2077_v47, %v2078_v48  ;;  %v5512_v48 = vpack.i.bf16 %v1896_v12, %v1897_v5  ;;  %v1989_v12 = vrot.slane %v7084_v40, 2 }
 0x166   : > { %5503 = vrot.lane.b32.xlu0 %v5502_v35, %s6096_s23  ;;  %v1895_v35 = vsel %vm1886_vm4, %v1876_v39, %v6294_v36  ;;  %v2039_v39 = vsel %vm2031_vm3, %v6300_v38, %v8436_v27  ;;  %v1988_v27 = vrot.slane %v7087_v14, 2 }
 0x167   : > { %5533 = vrot.lane.b32.xlu1 %v5532_v26, %s6097_s24  ;;  %v5537_v47 = vpack.i.bf16 %v1894_v24, %v1895_v35  ;;  %v1328_v26 = vmax.f32 %v1256_v16, 0.0  ;;  %v8505_v24 = vrot.slane %v6918_v54, 2  ;;  %v5542_v5 = vpack.i.bf16 %v2039_v39, %v2040_v13 }
 0x168   : > { %v7145_v16 = vmax.f32 %v1289_v37, 0.0  ;;  %v8506_v39 = vrot.slane %v6987_v50, 1  ;;  %v8507_v37 = vrot.slane %v6331_v58, 1 }
 0x169   : > { %v2042_v35 = vsel %vm2031_vm3, %v8505_v24, %v2020_v43 }
 0x16a   : > { %5508 = vrot.lane.b32.xlu0 %v5507_v56, %s6097_s24  ;;  %v2041_v56 = vsel %vm2031_vm3, %v2020_v43, %v2021_v6  ;;  %v1923_v6 = vsel %vm1886_vm4, %v8438_v4, %v6294_v36  ;;  %v7149_v43 = vsel %vm1446_vm2, 0.0, %v1328_v26  ;;  %v1929_v13 = vsel %vm1886_vm4, %v8506_v39, %v1843_v61 }
 0x16b   : > { %5538 = vrot.lane.b32.xlu1 %v5537_v47, %s6096_s23  ;;  %v5517_v55 = vpack.i.bf16 %v2041_v56, %v2042_v35  ;;  %v7152_v47 = vpop.permute.xlu1 %5268  ;;  %v1922_v26 = vsel %vm1886_vm4, %v6294_v36, %v8507_v37  ;;  %v1846_v24 = vrot.slane %v7149_v43, 1 }
 0x16c   : > { %v5567_v56 = vpack.i.bf16 %v1922_v26, %v1923_v6  ;;  %v2073_v6 = vsel %vm2031_vm3, %v1988_v27, %v1989_v12 }
 0x16e   : > { %5513 = vrot.lane.b32.xlu0 %v5512_v48, %s6096_s23  ;;  %v1928_v48 = vsel %vm1886_vm4, %v1843_v61, %v1844_v7  ;;  %v1879_v61 = vrot.slane %v7145_v16, 1 }
 0x16f   : > { %5543 = vrot.lane.b32.xlu1 %v5542_v5, %s6097_s24  ;;  %v5547_v35 = vpack.i.bf16 %v1928_v48, %v1929_v13  ;;  %v2068_v5 = vsel %vm2031_vm3, %v8437_v42, %v6300_v38  ;;  %v2074_v48 = vsel %vm2031_vm3, %v1987_v2, %v1988_v27  ;;  %v8508_v13 = vrot.slane %v6331_v58, 2 }
 0x170   : > { %v1991_v42 = vrot.slane %v7149_v43, 2  ;;  %v5552_v4 = vpack.i.bf16 %v2073_v6, %v2074_v48  ;;  %v1926_v2 = vsel %vm1886_vm4, %v6294_v36, %v1846_v24  ;;  %v1927_v27 = vsel %vm1886_vm4, %v1844_v7, %v6294_v36 }
 0x171   : > { %v2067_v37 = vsel %vm2031_vm3, %v6300_v38, %v8508_v13  ;;  %v5279_v26 = vpop.permute.xlu1 %5278  ;;  %v8509_v13 = vrot.slane %v6958_v1, 1  ;;  %v8510_v6 = vrot.slane %v7052_v17, 1 }
 0x172   : > { %5518 = vrot.lane.b32.xlu0 %v5517_v55, %s6097_s24  ;;  %v5982_v55 = vld [vmem:[%s8403_s4] ss:$0 sm:$0xff] }
 0x173   : > { %v1257_v39 = vadd.f32 %v5982_v55, %v6749_v10  ;;  %5568 = vrot.lane.b32.xlu1 %v5567_v56, %s6096_s23  ;;  %v2025_v10 = vrot.slane %v6958_v1, 2  ;;  %v5274_v56 = vpop.permute.xlu0 %5273  ;;  %v5572_v55 = vpack.i.bf16 %v2067_v37, %v2068_v5  ;;  %v1892_v5 = vsel %vm1886_vm4, %v1879_v61, %v8509_v13 }
 0x174   : > { %v1893_v48 = vsel %vm1886_vm4, %v8510_v6, %v1879_v61  ;;  %v5577_v37 = vpack.i.bf16 %v1926_v2, %v1927_v27  ;;  %v2072_v13 = vsel %vm2031_vm3, %v1989_v12, %v6300_v38  ;;  %v8511_v61 = vrot.slane %v7052_v17, 2 }
 0x175   : > { %v7199_v62 = vmax.f32 %v1257_v39, 0.0  ;;  %v5557_v39 = vpack.i.bf16 %v1892_v5, %v1893_v48  ;;  %v2036_v12 = vsel %vm2031_vm3, %v2025_v10, %v6300_v38 }
 0x176   : > { %5548 = vrot.lane.b32.xlu0 %v5547_v35, %s6096_s23  ;;  %v2024_v35 = vrot.slane %v7145_v16, 2 }
 0x177   : > { %5573 = vrot.lane.b32.xlu1 %v5572_v55, %s6097_s24  ;;  %v2071_v55 = vsel %vm2031_vm3, %v6300_v38, %v1991_v42  ;;  %v1847_v1 = vrot.slane %v7199_v62, 1  ;;  %v1992_v48 = vrot.slane %v7199_v62, 2 }
 0x178   : > { %v7211_v36 = vpop.permute.xlu0 %5283  ;;  %v7213_v7 = vpop.permute.xlu1 %5298  ;;  %v2038_v2 = vsel %vm2031_vm3, %v8511_v61, %v2024_v35  ;;  %v5582_v27 = vpack.i.bf16 %v2071_v55, %v2072_v13  ;;  %v5276_v55 = vunpack.i.h.bf16 %v5274_v56  ;;  %v5275_v13 = vunpack.i.l.bf16 %v5274_v56 }
 0x17a   : > { %5553 = vrot.lane.b32.xlu0 %v5552_v4, %s6097_s24  ;;  %v2037_v4 = vsel %vm2031_vm3, %v2024_v35, %v2025_v10  ;;  %v1924_v35 = vsel %vm1886_vm4, %v1847_v1, %v8512_v53  ;;  %v5587_v10 = vpack.i.bf16 %v6300_v38, %v2036_v12  ;;  %v2069_v53 = vsel %vm2031_vm3, %v1992_v48, %v8513_v31 }
 0x17b   : > { %5578 = vrot.lane.b32.xlu1 %v5577_v37, %s6096_s23  ;;  %v5562_v6 = vpack.i.bf16 %v2037_v4, %v2038_v2  ;;  %v5281_v2 = vunpack.i.h.bf16 %v5279_v26  ;;  %v2717_v38 = vsel %vm2680_vm5, %v6331_v58, %v5275_v13 }
 0x17c   : > { %v7230_v5 = vpop.permute.xlu0 %5288  ;;  %v5309_v37 = vpop.permute.xlu1 %5308 }
 0x17e   : > { %5558 = vrot.lane.b32.xlu0 %v5557_v39, %s6096_s23  ;;  %v1925_v39 = vsel %vm1886_vm4, %v1846_v24, %v1847_v1  ;;  %v2070_v1 = vsel %vm2031_vm3, %v1991_v42, %v1992_v48  ;;  %v2718_v24 = vsel %vm2680_vm5, %v6333_v59, %v5276_v55  ;;  %v5311_v42 = vunpack.i.h.bf16 %v5309_v37 }
 0x17f   : > { %5583 = vrot.lane.b32.xlu1 %v5582_v27, %s6097_s24  ;;  %v5592_v61 = vpack.i.bf16 %v1924_v35, %v1925_v39  ;;  %v5280_v27 = vunpack.i.l.bf16 %v5279_v26  ;;  %v5597_v35 = vpack.i.bf16 %v2069_v53, %v2070_v1  ;;  %v7263_v31 = vsel %vm2753_vm6, %v2718_v24, %v5281_v2 }
 0x180   : > { %v7245_v4 = vpop.permute.xlu0 %5293  ;;  %v5329_v26 = vpop.permute.xlu1 %5328  ;;  %8515 = vst [vmem:[#allocation20_spill] sm:$0xff] %v7263_v31  ;;  %v5310_v48 = vunpack.i.l.bf16 %v5309_v37 }
 0x181   : > { %v7260_v39 = vsel %vm2753_vm6, %v2717_v38, %v5280_v27  ;;  %v5331_v38 = vunpack.i.h.bf16 %v5329_v26 }
 0x182   : > { %5563 = vrot.lane.b32.xlu0 %v5562_v6, %s6097_s24  ;;  %8514 = vst [vmem:[#allocation19_spill] sm:$0xff] %v7260_v39 }
 0x183   : > { %5588 = vrot.lane.b32.xlu1 %v5587_v10, %s6097_s24  ;;  %v7276_v10 = vpack.i.bf16 %v7263_v31, %v7260_v39 }
 0x184   : > { %v5304_v56 = vpop.permute.xlu0 %5303  ;;  %v7270_v55 = vpop.permute.xlu1 %5333 }
 0x185   : > { %v5306_v6 = vunpack.i.h.bf16 %v5304_v56  ;;  %v5305_v12 = vunpack.i.l.bf16 %v5304_v56  ;;  %v5330_v56 = vunpack.i.l.bf16 %v5329_v26  ;;  %v5977_v26 = vld [vmem:[%s488_s15] sm:$0xff]   ;;  %s6100_s15 = smov [#allocation2]  }
 0x186   : > { %5593 = vrot.lane.b32.xlu0 %v5592_v61, %s6096_s23  ;;  %5054 = vmatprep.mubr.msk.bf16.mxu1 %vm734_vm0, %v5977_v26 }
 0x187   : > { %v2685_v59 = vsel %vm2680_vm5, %v6356_v18, %v5305_v12  ;;  %v2686_v58 = vsel %vm2680_vm5, %v6374_v30, %v5306_v6  ;;  %5055 = vmatmul.mubr.msk.bf16.gmra.mrb[32].mxu1 %vm734_vm0, %v5978_v41 }
 0x188   : > { %v7272_v13 = vpop.permute.xlu0 %5313  ;;  %v7279_v61 = vsel %vm2753_vm6, %v2685_v59, %v5310_v48  ;;  %v7282_v2 = vsel %vm2753_vm6, %v2686_v58, %v5311_v42  ;;  %v7286_v18 = vpop.permute.xlu1 %5338 }
 0x189   : > { %8516 = vst [vmem:[#allocation21_spill] sm:$0xff] %v7279_v61  ;;  %v5607_v37 = vpack.i.bf16 %v7282_v2, %v7279_v61 }
 0x18a   : > { %5598 = vrot.lane.b32.xlu0 %v5597_v35, %s6097_s24 }
 0x18c   : > { %v7288_v30 = vpop.permute.xlu0 %5318  ;;  %v5344_v27 = vpop.permute.xlu1 %5343 }
 0x18d   : > { %v5346_v6 = vunpack.i.h.bf16 %v5344_v27  ;;  %v5345_v12 = vunpack.i.l.bf16 %v5344_v27 }
 0x18e   : > { %5603 = vrot.lane.b32.xlu0 %v7276_v10, %s6098_s16 }
 0x190   : > { %v5324_v53 = vpop.permute.xlu0 %5323  ;;  %v5369_v58 = vpop.permute.xlu1 %5368 }
 0x191   : > { %v5326_v1 = vunpack.i.h.bf16 %v5324_v53  ;;  %v5325_v24 = vunpack.i.l.bf16 %v5324_v53 }
 0x192   : > { %5608 = vrot.lane.b32.xlu0 %v5607_v37, %s6099_s18 }
 0x193   : > { %v2688_v35 = vsel %vm2680_vm5, 0.0, %v5326_v1  ;;  %v2687_v59 = vsel %vm2680_vm5, %v6378_v33, %v5325_v24  ;;  %v2690_v1 = vsel %vm2680_vm5, %v6481_v3, %v5346_v6  ;;  %v2689_v33 = vsel %vm2680_vm5, %v6408_v0, %v5345_v12  ;;  %v5980_v12 = vld [vmem:[%s8404_s5 + $0x8] sm:$0xff]  }
 0x194   : > { %v5349_v42 = vpop.permute.xlu0 %5348  ;;  %v7301_v48 = vsel %vm2753_vm6, %v2687_v59, %v5330_v56  ;;  %v7304_v37 = vsel %vm2753_vm6, %v2688_v35, %v5331_v38  ;;  %v5979_v38 = vld [vmem:[%s8404_s5] sm:$0xff]  }
 0x195   : > { %8517 = vst [vmem:[#allocation22_spill] sm:$0xff] %v7301_v48  ;;  %8518 = vst [vmem:[#allocation23_spill] sm:$0xff] %v7304_v37  ;;  %v5351_v27 = vunpack.i.h.bf16 %v5349_v42  ;;  %v5350_v53 = vunpack.i.l.bf16 %v5349_v42  ;;  %v5612_v24 = vpack.i.bf16 %v7304_v37, %v7301_v48  ;;  %5058 = vmatprep.subr.bf16.mxu1 %v5979_v38  ;;  %v5981_v42 = vld [vmem:[%s8404_s5 + $0x10] ss:$0 sps:$4 sm:$0x33]  }
 0x196   : > { %5059 = vmatpush3.bf16.msra.mxu1 %v5979_v38  ;;  %v3566_v38 = vsel %vm3564_vm7, %v5981_v42, 0 }
 0x197   : > { %v7317_v56 = vsel %vm2753_vm6, %v2689_v33, %v5350_v53  ;;  %v7320_v35 = vsel %vm2753_vm6, %v2690_v1, %v5351_v27  ;;  %5613 = vrot.lane.b32.xlu1 %v5612_v24, %s6099_s18  ;;  %5060 = vmatprep.subr.bf16.mxu1 %v5980_v12  ;;  %v5371_v33 = vunpack.i.h.bf16 %v5369_v58  ;;  %v5370_v24 = vunpack.i.l.bf16 %v5369_v58 }
 0x198   : > { %8519 = vst [vmem:[#allocation24_spill] sm:$0xff] %v7317_v56  ;;  %8520 = vst [vmem:[#allocation25_spill] sm:$0xff] %v7320_v35  ;;  %v5617_v6 = vpack.i.bf16 %v7320_v35, %v7317_v56 }
 0x199   : > { %v7323_v3 = vpop.permute.xlu1 %5373 }
 0x19a   : > { %v7326_v0 = vpop.permute.xlu0 %5353  ;;  %5618 = vrot.lane.b32.xlu0 %v5617_v6, %s6098_s16  ;;  %5061 = vmatpush3.bf16.msra.mxu1 %v5980_v12 }
 0x19b   : > { %5196 = vmatprep.subr.msk.bf16.mxu1 %vm3564_vm7, %v5981_v42 }
 0x19d   : > { %v7334_v59 = vpop.permute.xlu1 %5378 }
 0x19e   : > { %v7336_v41 = vpop.permute.xlu0 %5358  ;;  %5623 = vrot.lane.b32.xlu0 %v5617_v6, %s6099_s18  ;;  %5063 = vmatpush3.bf16.msra.mxu1 %v3566_v38 }
 0x1a1   : > { %v5404_v26 = vpop.permute.xlu1 %5403 }
 0x1a2   : > { %v5406_v35 = vunpack.i.h.bf16 %v5404_v26  ;;  %v5405_v48 = vunpack.i.l.bf16 %v5404_v26 }
 0x1a4   : > { %v5364_v27 = vpop.permute.xlu0 %5363 }
 0x1a5   : > { %v5366_v53 = vunpack.i.h.bf16 %v5364_v27  ;;  %v5365_v1 = vunpack.i.l.bf16 %v5364_v27  ;;  %v5409_v12 = vpop.permute.xlu1 %5408 }
 0x1a6   : > { %v5411_v42 = vunpack.i.h.bf16 %v5409_v12  ;;  %v5410_v37 = vunpack.i.l.bf16 %v5409_v12 }
 0x1a7   : > { %v2692_v39 = vsel %vm2680_vm5, 0.0, %v5366_v53  ;;  %v2691_v6 = vsel %vm2680_vm5, %v6494_v9, %v5365_v1  ;;  %v2696_v1 = vsel %vm2680_vm5, 0.0, %v5406_v35 }
 0x1a8   : > { %v7348_v31 = vsel %vm2753_vm6, %v2691_v6, %v5370_v24  ;;  %v7351_v56 = vsel %vm2753_vm6, %v2692_v39, %v5371_v33  ;;  %v5384_v27 = vpop.permute.xlu0 %5383  ;;  %v2695_v39 = vsel %vm2680_vm5, %v6609_v15, %v5405_v48  ;;  %v7365_v6 = vsel %vm2753_vm6, %v2696_v1, %v5411_v42 }
 0x1a9   : > { %8521 = vst [vmem:[#allocation26_spill] sm:$0xff] %v7348_v31  ;;  %8522 = vst [vmem:[#allocation27_spill] sm:$0xff] %v7351_v56  ;;  %v5627_v58 = vpack.i.bf16 %v7351_v56, %v7348_v31  ;;  %v5386_v53 = vunpack.i.h.bf16 %v5384_v27  ;;  %v5385_v61 = vunpack.i.l.bf16 %v5384_v27  ;;  %v7356_v9 = vpop.permute.xlu1 %5413  ;;  %v7362_v38 = vsel %vm2753_vm6, %v2695_v39, %v5410_v37 }
 0x1aa   : > { %8523 = vst [vmem:[#allocation28_spill] sm:$0xff] %v7362_v38  ;;  %8524 = vst [vmem:[#allocation29_spill] sm:$0xff] %v7365_v6 }
 0x1ab   : > { %5628 = vrot.lane.b32.xlu1 %v5627_v58, %s6098_s16  ;;  %v2694_v12 = vsel %vm2680_vm5, %v6671_v46, %v5386_v53  ;;  %v2693_v27 = vsel %vm2680_vm5, %v6522_v45, %v5385_v61  ;;  %v5647_v46 = vpack.i.bf16 %v7365_v6, %v7362_v38 }
 0x1ac   : > { %v5389_v33 = vpop.permute.xlu0 %5388 }
 0x1ad   : > { %v5391_v24 = vunpack.i.h.bf16 %v5389_v33  ;;  %v5390_v26 = vunpack.i.l.bf16 %v5389_v33  ;;  %v7372_v35 = vpop.permute.xlu1 %5418 }
 0x1af   : > { %5633 = vrot.lane.b32.xlu1 %v5627_v58, %s6099_s18  ;;  %v7375_v15 = vsel %vm2753_vm6, %v2693_v27, %v5390_v26  ;;  %v7378_v48 = vsel %vm2753_vm6, %v2694_v12, %v5391_v24 }
 0x1b0   : > { %8525 = vst [vmem:[#allocation30_spill] sm:$0xff] %v7375_v15  ;;  %8526 = vst [vmem:[#allocation31_spill] sm:$0xff] %v7378_v48  ;;  %v7380_v37 = vpop.permute.xlu0 %5393  ;;  %v5637_v42 = vpack.i.bf16 %v7378_v48, %v7375_v15 }
 0x1b1   : > { %v5444_v45 = vpop.permute.xlu1 %5443 }
 0x1b2   : > { %5638 = vrot.lane.b32.xlu0 %v5637_v42, %s6098_s16  ;;  %v5446_v58 = vunpack.i.h.bf16 %v5444_v45  ;;  %v5445_v53 = vunpack.i.l.bf16 %v5444_v45 }
 0x1b3   : > { %5648 = vrot.lane.b32.xlu1 %v5647_v46, %s6098_s16 }
 0x1b4   : > { %v7388_v61 = vpop.permute.xlu0 %5398  ;;  %v2700_v26 = vsel %vm2680_vm5, 0.0, %v5446_v58  ;;  %v2699_v12 = vsel %vm2680_vm5, %v6734_v44, %v5445_v53 }
 0x1b5   : > { %v5449_v1 = vpop.permute.xlu1 %5448 }
 0x1b6   : > { %5643 = vrot.lane.b32.xlu0 %v5637_v42, %s6099_s18  ;;  %v5451_v39 = vunpack.i.h.bf16 %v5449_v1  ;;  %v5450_v33 = vunpack.i.l.bf16 %v5449_v1 }
 0x1b7   : > { %5653 = vrot.lane.b32.xlu1 %v5647_v46, %s6099_s18 }
 0x1b8   : > { %v5424_v24 = vpop.permute.xlu0 %5423  ;;  %v7396_v48 = vsel %vm2753_vm6, %v2699_v12, %v5450_v33  ;;  %v7399_v45 = vsel %vm2753_vm6, %v2700_v26, %v5451_v39 }
 0x1b9   : > { %v5426_v27 = vunpack.i.h.bf16 %v5424_v24  ;;  %v5425_v15 = vunpack.i.l.bf16 %v5424_v24  ;;  %8527 = vst [vmem:[#allocation32_spill] sm:$0xff] %v7396_v48  ;;  %8528 = vst [vmem:[#allocation33_spill] sm:$0xff] %v7399_v45  ;;  %v7401_v42 = vpop.permute.xlu1 %5453  ;;  %v5667_v46 = vpack.i.bf16 %v7399_v45, %v7396_v48 }
 0x1bb   : > { %5668 = vrot.lane.b32.xlu1 %v5667_v46, %s6098_s16  ;;  %v2698_v44 = vsel %vm2680_vm5, %v6776_v52, %v5426_v27  ;;  %v2697_v53 = vsel %vm2680_vm5, %v6632_v22, %v5425_v15 }
 0x1bc   : > { %v5429_v1 = vpop.permute.xlu0 %5428 }
 0x1bd   : > { %v5431_v58 = vunpack.i.h.bf16 %v5429_v1  ;;  %v5430_v38 = vunpack.i.l.bf16 %v5429_v1  ;;  %v7410_v33 = vpop.permute.xlu1 %5458 }
 0x1bf   : > { %v7413_v39 = vsel %vm2753_vm6, %v2697_v53, %v5430_v38  ;;  %v7416_v24 = vsel %vm2753_vm6, %v2698_v44, %v5431_v58  ;;  %5673 = vrot.lane.b32.xlu1 %v5667_v46, %s6099_s18 }
 0x1c0   : > { %8529 = vst [vmem:[#allocation34_spill] sm:$0xff] %v7413_v39  ;;  %8530 = vst [vmem:[#allocation35_spill] sm:$0xff] %v7416_v24  ;;  %v7418_v26 = vpop.permute.xlu0 %5433  ;;  %v5657_v12 = vpack.i.bf16 %v7416_v24, %v7413_v39 }
 0x1c1   : > { %v5484_v52 = vpop.permute.xlu1 %5483 }
 0x1c2   : > { %5658 = vrot.lane.b32.xlu0 %v5657_v12, %s6098_s16  ;;  %v5486_v22 = vunpack.i.h.bf16 %v5484_v52  ;;  %v5485_v15 = vunpack.i.l.bf16 %v5484_v52 }
 0x1c4   : > { %v7424_v27 = vpop.permute.xlu0 %5438  ;;  %v2704_v53 = vsel %vm2680_vm5, 0.0, %v5486_v22  ;;  %v2703_v39 = vsel %vm2680_vm5, %v6848_v49, %v5485_v15 }
 0x1c5   : > { %v5489_v38 = vpop.permute.xlu1 %5488 }
 0x1c6   : > { %5663 = vrot.lane.b32.xlu0 %v5657_v12, %s6099_s18  ;;  %v5491_v1 = vunpack.i.h.bf16 %v5489_v38  ;;  %v5490_v58 = vunpack.i.l.bf16 %v5489_v38 }
 0x1c8   : > { %v5464_v44 = vpop.permute.xlu0 %5463  ;;  %v7431_v48 = vsel %vm2753_vm6, %v2703_v39, %v5490_v58  ;;  %v7434_v45 = vsel %vm2753_vm6, %v2704_v53, %v5491_v1 }
 0x1c9   : > { %v5466_v24 = vunpack.i.h.bf16 %v5464_v44  ;;  %v5465_v46 = vunpack.i.l.bf16 %v5464_v44  ;;  %8531 = vst [vmem:[#allocation36_spill] sm:$0xff] %v7431_v48  ;;  %8532 = vst [vmem:[#allocation37_spill] sm:$0xff] %v7434_v45  ;;  %v5494_v52 = vpop.permute.xlu1 %5493  ;;  %v5687_v12 = vpack.i.bf16 %v7434_v45, %v7431_v48 }
 0x1ca   : > { %v5496_v38 = vunpack.i.h.bf16 %v5494_v52  ;;  %v5495_v31 = vunpack.i.l.bf16 %v5494_v52 }
 0x1cb   : > { %5688 = vrot.lane.b32.xlu1 %v5687_v12, %s6098_s16  ;;  %v2702_v49 = vsel %vm2680_vm5, %v6877_v57, %v5466_v24  ;;  %v2701_v39 = vsel %vm2680_vm5, %v6756_v25, %v5465_v46 }
 0x1cc   : > { %v5469_v6 = vpop.permute.xlu0 %5468  ;;  %v2739_v57 = vsel %vm2680_vm5, %v6901_v51, %v5495_v31 }
 0x1cd   : > { %v5471_v22 = vunpack.i.h.bf16 %v5469_v6  ;;  %v5470_v56 = vunpack.i.l.bf16 %v5469_v6  ;;  %v5499_v15 = vpop.permute.xlu1 %5498  ;;  %v2740_v6 = vsel %vm2680_vm5, 0.0, %v5496_v38 }
 0x1ce   : > { %v5501_v44 = vunpack.i.h.bf16 %v5499_v15  ;;  %v5500_v53 = vunpack.i.l.bf16 %v5499_v15 }
 0x1cf   : > { %v7444_v1 = vsel %vm2753_vm6, %v2701_v39, %v5470_v56  ;;  %v7447_v58 = vsel %vm2753_vm6, %v2702_v49, %v5471_v22  ;;  %5693 = vrot.lane.b32.xlu1 %v5687_v12, %s6099_s18 }
 0x1d0   : > { %8533 = vst [vmem:[#allocation38_spill] sm:$0xff] %v7444_v1  ;;  %v5474_v52 = vpop.permute.xlu0 %5473  ;;  %v5677_v48 = vpack.i.bf16 %v7447_v58, %v7444_v1  ;;  %v7456_v25 = vsel %vm2753_vm6, %v2739_v57, %v5500_v53  ;;  %v7459_v56 = vsel %vm2753_vm6, %v2740_v6, %v5501_v44 }
 0x1d1   : > { %v5476_v24 = vunpack.i.h.bf16 %v5474_v52  ;;  %v5475_v46 = vunpack.i.l.bf16 %v5474_v52  ;;  %v7462_v22 = vpop.permute.xlu1 %5523 }
 0x1d2   : > { %5678 = vrot.lane.b32.xlu0 %v5677_v48, %s6098_s16 }
 0x1d3   : > { %v2738_v51 = vsel %vm2680_vm5, %v6943_v29, %v5476_v24  ;;  %v2737_v31 = vsel %vm2680_vm5, %v6812_v19, %v5475_v46 }
 0x1d4   : > { %v5479_v49 = vpop.permute.xlu0 %5478 }
 0x1d5   : > { %v5481_v39 = vunpack.i.h.bf16 %v5479_v49  ;;  %v5480_v38 = vunpack.i.l.bf16 %v5479_v49  ;;  %v5529_v44 = vpop.permute.xlu1 %5528 }
 0x1d6   : > { %5683 = vrot.lane.b32.xlu0 %v5677_v48, %s6099_s18  ;;  %v5531_v52 = vunpack.i.h.bf16 %v5529_v44  ;;  %v5530_v6 = vunpack.i.l.bf16 %v5529_v44 }
 0x1d7   : > { %v7470_v12 = vsel %vm2753_vm6, %v2737_v31, %v5480_v38  ;;  %v7473_v15 = vsel %vm2753_vm6, %v2738_v51, %v5481_v39 }
 0x1d8   : > { %v5504_v53 = vpop.permute.xlu0 %5503  ;;  %v2708_v19 = vsel %vm2680_vm5, 0.0, %v5531_v52  ;;  %v2707_v48 = vsel %vm2680_vm5, %v6981_v63, %v5530_v6 }
 0x1d9   : > { %v5506_v57 = vunpack.i.h.bf16 %v5504_v53  ;;  %v5505_v49 = vunpack.i.l.bf16 %v5504_v53  ;;  %v5534_v45 = vpop.permute.xlu1 %5533 }
 0x1da   : > { %v5536_v1 = vunpack.i.h.bf16 %v5534_v45  ;;  %v5535_v29 = vunpack.i.l.bf16 %v5534_v45 }
 0x1db   : > { %v2706_v39 = vsel %vm2680_vm5, %v6983_v60, %v5506_v57  ;;  %v2705_v51 = vsel %vm2680_vm5, %v6864_v23, %v5505_v49 }
 0x1dc   : > { %v5509_v24 = vpop.permute.xlu0 %5508  ;;  %v7483_v31 = vsel %vm2753_vm6, %v2707_v48, %v5535_v29  ;;  %v7486_v44 = vsel %vm2753_vm6, %v2708_v19, %v5536_v1 }
 0x1dd   : > { %v5511_v46 = vunpack.i.h.bf16 %v5509_v24  ;;  %v5510_v38 = vunpack.i.l.bf16 %v5509_v24  ;;  %v5539_v45 = vpop.permute.xlu1 %5538  ;;  %v5707_v53 = vpack.i.bf16 %v7486_v44, %v7483_v31 }
 0x1de   : > { %v5541_v6 = vunpack.i.h.bf16 %v5539_v45  ;;  %v5540_v57 = vunpack.i.l.bf16 %v5539_v45 }
 0x1df   : > { %v7491_v63 = vsel %vm2753_vm6, %v2705_v51, %v5510_v38  ;;  %v7494_v52 = vsel %vm2753_vm6, %v2706_v39, %v5511_v46  ;;  %5708 = vrot.lane.b32.xlu1 %v5707_v53, %s6098_s16 }
 0x1e0   : > { %8534 = vst [vmem:[#allocation39_spill] sm:$0xff] %v7491_v63  ;;  %8535 = vst [vmem:[#allocation40_spill] sm:$0xff] %v7494_v52  ;;  %v5514_v60 = vpop.permute.xlu0 %5513  ;;  %v5697_v23 = vpack.i.bf16 %v7494_v52, %v7491_v63  ;;  %v2744_v38 = vsel %vm2680_vm5, 0.0, %v5541_v6  ;;  %v2743_v46 = vsel %vm2680_vm5, %v7038_v34, %v5540_v57 }
 0x1e1   : > { %v5516_v1 = vunpack.i.h.bf16 %v5514_v60  ;;  %v5515_v49 = vunpack.i.l.bf16 %v5514_v60  ;;  %v5544_v29 = vpop.permute.xlu1 %5543 }
 0x1e2   : > { %5698 = vrot.lane.b32.xlu0 %v5697_v23, %s6098_s16  ;;  %v5546_v24 = vunpack.i.h.bf16 %v5544_v29  ;;  %v5545_v19 = vunpack.i.l.bf16 %v5544_v29 }
 0x1e3   : > { %5713 = vrot.lane.b32.xlu1 %v5707_v53, %s6099_s18  ;;  %v2742_v45 = vsel %vm2680_vm5, %v7048_v20, %v5516_v1  ;;  %v2741_v60 = vsel %vm2680_vm5, %v6918_v54, %v5515_v49 }
 0x1e4   : > { %v5519_v48 = vpop.permute.xlu0 %5518  ;;  %v7509_v63 = vsel %vm2753_vm6, %v2743_v46, %v5545_v19  ;;  %v7512_v29 = vsel %vm2753_vm6, %v2744_v38, %v5546_v24 }
 0x1e5   : > { %v5521_v39 = vunpack.i.h.bf16 %v5519_v48  ;;  %v5520_v51 = vunpack.i.l.bf16 %v5519_v48  ;;  %v5569_v6 = vpop.permute.xlu1 %5568 }
 0x1e6   : > { %5703 = vrot.lane.b32.xlu0 %v5697_v23, %s6099_s18  ;;  %v5571_v20 = vunpack.i.h.bf16 %v5569_v6  ;;  %v5570_v1 = vunpack.i.l.bf16 %v5569_v6 }
 0x1e7   : > { %v7516_v34 = vsel %vm2753_vm6, %v2741_v60, %v5520_v51  ;;  %v7519_v53 = vsel %vm2753_vm6, %v2742_v45, %v5521_v39 }
 0x1e8   : > { %v5549_v57 = vpop.permute.xlu0 %5548  ;;  %v2716_v24 = vsel %vm2680_vm5, 0.0, %v5571_v20  ;;  %v2715_v23 = vsel %vm2680_vm5, %v7091_v32, %v5570_v1 }
 0x1e9   : > { %v5551_v48 = vunpack.i.h.bf16 %v5549_v57  ;;  %v5550_v54 = vunpack.i.l.bf16 %v5549_v57  ;;  %v5574_v49 = vpop.permute.xlu1 %5573 }
 0x1ea   : > { %v5576_v19 = vunpack.i.h.bf16 %v5574_v49  ;;  %v5575_v46 = vunpack.i.l.bf16 %v5574_v49 }
 0x1eb   : > { %v2710_v39 = vsel %vm2680_vm5, %v7087_v14, %v5551_v48  ;;  %v2709_v45 = vsel %vm2680_vm5, %v6987_v50, %v5550_v54 }
 0x1ec   : > { %v5554_v52 = vpop.permute.xlu0 %5553  ;;  %v7529_v60 = vsel %vm2753_vm6, %v2715_v23, %v5575_v46  ;;  %v7532_v6 = vsel %vm2753_vm6, %v2716_v24, %v5576_v19  ;;  %v5286_v19 = vunpack.i.h.bf16 %v7211_v36 }
 0x1ed   : > { %v5556_v38 = vunpack.i.h.bf16 %v5554_v52  ;;  %v5555_v51 = vunpack.i.l.bf16 %v5554_v52  ;;  %8536 = vst [vmem:[#allocation41_spill] sm:$0xff] %v7529_v60  ;;  %8537 = vst [vmem:[#allocation42_spill] sm:$0xff] %v7532_v6  ;;  %v5579_v57 = vpop.permute.xlu1 %5578  ;;  %v5727_v20 = vpack.i.bf16 %v7532_v6, %v7529_v60 }
 0x1ee   : > { %v5581_v1 = vunpack.i.h.bf16 %v5579_v57  ;;  %v5580_v48 = vunpack.i.l.bf16 %v5579_v57 }
 0x1ef   : > { %v7537_v32 = vsel %vm2753_vm6, %v2709_v45, %v5555_v51  ;;  %v7540_v52 = vsel %vm2753_vm6, %v2710_v39, %v5556_v38  ;;  %5728 = vrot.lane.b32.xlu1 %v5727_v20, %s6098_s16 }
 0x1f0   : > { %v5559_v14 = vpop.permute.xlu0 %5558  ;;  %v5717_v50 = vpack.i.bf16 %v7540_v52, %v7537_v32  ;;  %v2712_v38 = vsel %vm2680_vm5, 0.0, %v5581_v1  ;;  %v2711_v39 = vsel %vm2680_vm5, %v7084_v40, %v5580_v48  ;;  %v5285_v40 = vunpack.i.l.bf16 %v7211_v36  ;;  %v8538_v36 = vld [vmem:[#allocation5_spill] sm:$0xff] }
 0x1f1   : > { %v5561_v54 = vunpack.i.h.bf16 %v5559_v14  ;;  %v5560_v49 = vunpack.i.l.bf16 %v5559_v14  ;;  %v5584_v46 = vpop.permute.xlu1 %5583  ;;  %v5296_v48 = vunpack.i.h.bf16 %v7245_v4 }
 0x1f2   : > { %5718 = vrot.lane.b32.xlu0 %v5717_v50, %s6098_s16  ;;  %v5586_v24 = vunpack.i.h.bf16 %v5584_v46  ;;  %v5585_v23 = vunpack.i.l.bf16 %v5584_v46 }
 0x1f3   : > { %5733 = vrot.lane.b32.xlu1 %v5727_v20, %s6099_s18  ;;  %v2746_v14 = vsel %vm2680_vm5, %v7145_v16, %v5561_v54  ;;  %v2745_v60 = vsel %vm2680_vm5, %v7052_v17, %v5560_v49  ;;  %v5295_v17 = vunpack.i.l.bf16 %v7245_v4 }
 0x1f4   : > { %v5564_v51 = vpop.permute.xlu0 %5563  ;;  %v7556_v6 = vsel %vm2753_vm6, %v2711_v39, %v5585_v23  ;;  %v7559_v46 = vsel %vm2753_vm6, %v2712_v38, %v5586_v24  ;;  %v8539_v23 = vld [vmem:[#allocation8_spill] sm:$0xff] }
 0x1f5   : > { %v5566_v45 = vunpack.i.h.bf16 %v5564_v51  ;;  %v5565_v57 = vunpack.i.l.bf16 %v5564_v51  ;;  %v5737_v16 = vpack.i.bf16 %v7559_v46, %v7556_v6  ;;  %v2719_v51 = vsel %vm2680_vm5, %v8539_v23, %v5285_v40 }
 0x1f6   : > { %5723 = vrot.lane.b32.xlu0 %v5717_v50, %s6099_s18  ;;  %v7581_v4 = vsel %vm2753_vm6, %v2719_v51, %v5295_v17  ;;  %v5270_v17 = vunpack.i.l.bf16 %v7152_v47  ;;  %v5315_v23 = vunpack.i.l.bf16 %v7272_v13  ;;  %v5341_v51 = vunpack.i.h.bf16 %v7286_v18 }
 0x1f7   : > { %v2818_v20 = vsel %vm2753_vm6, %v2745_v60, %v5565_v57  ;;  %v2819_v1 = vsel %vm2753_vm6, %v2746_v14, %v5566_v45  ;;  %5738 = vrot.lane.b32.xlu1 %v5737_v16, %s6098_s16  ;;  %v2720_v60 = vsel %vm2680_vm5, 0.0, %v5286_v19  ;;  %8540 = vst [vmem:[#allocation5_spill] sm:$0xff] %v7581_v4 }
 0x1f8   : > { %v7569_v54 = vpack.i.bf16 %v2819_v1, %v2818_v20  ;;  %v5594_v49 = vpop.permute.xlu0 %5593  ;;  %v7578_v38 = vsel %vm2753_vm6, %v2720_v60, %v5296_v48  ;;  %v5265_v48 = vunpack.i.l.bf16 %v7116_v11  ;;  %v5316_v60 = vunpack.i.h.bf16 %v7272_v13 }
 0x1f9   : > { %v5596_v24 = vunpack.i.h.bf16 %v5594_v49  ;;  %v5595_v50 = vunpack.i.l.bf16 %v5594_v49  ;;  %v5747_v1 = vpack.i.bf16 %v7578_v38, %v7581_v4 }
 0x1fa   : > { %5753 = vrot.lane.b32.xlu0 %v8538_v36, %s6096_s23 }
 0x1fb   : > { %5743 = vrot.lane.b32.xlu1 %v5737_v16, %s6099_s18  ;;  %v2714_v14 = vsel %vm2680_vm5, %v7199_v62, %v5596_v24  ;;  %v2713_v19 = vsel %vm2680_vm5, %v7149_v43, %v5595_v50  ;;  %v5266_v62 = vunpack.i.h.bf16 %v7116_v11  ;;  %v2681_v43 = vsel %vm2680_vm5, 0.0, %v5265_v48  ;;  %v8542_v48 = vld [vmem:[#allocation6_spill] sm:$0xff] }
 0x1fc   : > { %v5599_v39 = vpop.permute.xlu0 %5598  ;;  %v5336_v24 = vunpack.i.h.bf16 %v7270_v55  ;;  %v5335_v50 = vunpack.i.l.bf16 %v7270_v55  ;;  %v5340_v11 = vunpack.i.l.bf16 %v7286_v18  ;;  %v8543_v18 = vld [vmem:[#allocation10_spill] sm:$0xff] }
 0x1fd   : > { %v5601_v45 = vunpack.i.h.bf16 %v5599_v39  ;;  %v5600_v57 = vunpack.i.l.bf16 %v5599_v39  ;;  %v5271_v39 = vunpack.i.h.bf16 %v7152_v47  ;;  %v2682_v55 = vsel %vm2680_vm5, 0.0, %v5266_v62  ;;  %v8544_v47 = vld [vmem:[#allocation9_spill] sm:$0xff] }
 0x1fe   : > { %v2721_v4 = vsel %vm2680_vm5, %v8544_v47, %v5315_v23  ;;  %v5290_v23 = vunpack.i.l.bf16 %v7230_v5  ;;  %v8546_v47 = vld [vmem:[#allocation13_spill] sm:$0xff] }
 0x1ff   : > { %v7589_v20 = vsel %vm2753_vm6, %v2713_v19, %v5600_v57  ;;  %v7592_v40 = vsel %vm2753_vm6, %v2714_v14, %v5601_v45  ;;  %5748 = vrot.lane.b32.xlu1 %v5747_v1, %s6098_s16  ;;  %v5321_v45 = vunpack.i.h.bf16 %v7288_v30  ;;  %v5320_v57 = vunpack.i.l.bf16 %v7288_v30  ;;  %v8541_v19 = vld [vmem:[#allocation12_spill] sm:$0xff] }
 0x200   : > { %v5762_v16 = vpack.i.bf16 %v7592_v40, %v7589_v20  ;;  %v7604_v49 = vpop.permute.xlu0 %5603  ;;  %v2754_v14 = vsel %vm2753_vm6, %v2681_v43, %v5270_v17  ;;  %v2723_v13 = vsel %vm2680_vm5, %v8541_v19, %v5335_v50  ;;  %v2755_v17 = vsel %vm2753_vm6, %v2682_v55, %v5271_v39 }
 0x201   : > { %v7630_v30 = vsel %vm2753_vm6, %v2723_v13, %v5340_v11  ;;  %v5376_v39 = vunpack.i.h.bf16 %v7323_v3  ;;  %v5381_v19 = vunpack.i.h.bf16 %v7334_v59  ;;  %v5360_v13 = vunpack.i.l.bf16 %v7336_v41 }
 0x202   : > { %5763 = vrot.lane.b32.xlu0 %v5762_v16, %s6098_s16 }
 0x203   : > { %5758 = vrot.lane.b32.xlu1 %v8538_v36, %s6096_s23  ;;  %v2724_v36 = vsel %vm2680_vm5, 0.0, %v5336_v24  ;;  %v7639_v24 = vsel %vm2753_vm6, %v2721_v4, %v5320_v57  ;;  %v5375_v4 = vunpack.i.l.bf16 %v7323_v3  ;;  %v5355_v57 = vunpack.i.l.bf16 %v7326_v0  ;;  %s8157_s23 = scalar_lea.vmem [#allocation2], %s4719_s26  ;;  %s6019_s26 = sshll.u32 %s6100_s15, 4  ;;  %s6020_s26 = int_to_ptr.vmem [resolvable:$false] %s6019_s26 }
 0x204   : > { %v7633_v62 = vsel %vm2753_vm6, %v2724_v36, %v5341_v51  ;;  %v5609_v43 = vpop.permute.xlu0 %5608  ;;  %8545 = vst [vmem:[#allocation8_spill] sm:$0xff] %v7639_v24  ;;  %v5361_v3 = vunpack.i.h.bf16 %v7336_v41 }
 0x205   : > { %v5611_v11 = vunpack.i.h.bf16 %v5609_v43  ;;  %v5610_v51 = vunpack.i.l.bf16 %v5609_v43  ;;  %v5797_v36 = vpack.i.bf16 %v7633_v62, %v7630_v30  ;;  %v2727_v43 = vsel %vm2680_vm5, %v8546_v47, %v5375_v4 }
 0x206   : > { %5768 = vrot.lane.b32.xlu0 %v5762_v16, %s6099_s18  ;;  %v2722_v16 = vsel %vm2680_vm5, %v8543_v18, %v5316_v60  ;;  %v5291_v60 = vunpack.i.h.bf16 %v7230_v5  ;;  %v5356_v5 = vunpack.i.h.bf16 %v7326_v0  ;;  %v2728_v0 = vsel %vm2680_vm5, 0.0, %v5376_v39 }
 0x207   : > { %5778 = vrot.lane.b32.xlu1 %v8542_v48, %s6097_s24  ;;  %v7642_v50 = vsel %vm2753_vm6, %v2722_v16, %v5321_v45  ;;  %v3279_v16 = vsel %vm3278_vm8, %v2754_v14, %v5610_v51  ;;  %v7677_v51 = vpop.permute.xlu1 %5588  ;;  %v7680_v4 = vsel %vm2753_vm6, %v2728_v0, %v5381_v19  ;;  %v5395_v19 = vunpack.i.l.bf16 %v7380_v37 }
 0x208   : > { %v5792_v45 = vpack.i.bf16 %v7642_v50, %v7639_v24 }
 0x20a   : > { %5773 = vrot.lane.b32.xlu0 %v8542_v48, %s6097_s24 }
 0x20b   : > { %5788 = vrot.lane.b32.xlu1 %v5747_v1, %s6099_s18  ;;  %v5380_v1 = vunpack.i.l.bf16 %v7334_v59  ;;  %v5614_v0 = vpop.permute.xlu1 %5613 }
 0x20c   : > { %v5619_v55 = vpop.permute.xlu0 %5618 }
 0x20d   : > { %v5621_v48 = vunpack.i.h.bf16 %v5619_v55  ;;  %v5620_v18 = vunpack.i.l.bf16 %v5619_v55  ;;  %v8547_v55 = vld [vmem:[#allocation14_spill] sm:$0xff] }
 0x20e   : > { %5783 = vrot.lane.b32.xlu0 %v7276_v10, %s6099_s18  ;;  %v3280_v10 = vsel %vm3278_vm8, %v2755_v17, %v5611_v11  ;;  %v2726_v41 = vsel %vm2680_vm5, %v8547_v55, %v5356_v5  ;;  %v8548_v17 = vld [vmem:[#allocation11_spill] sm:$0xff]  ;;  %v7675_v11 = vsel %vm2753_vm6, %v2727_v43, %v5380_v1  ;;  %v5420_v1 = vunpack.i.l.bf16 %v7372_v35 }
 0x20f   : > { %5798 = vrot.lane.b32.xlu1 %v5797_v36, %s6098_s16  ;;  %v3344_v59 = vsel %vm3343_vm9, %v3279_v16, %v5620_v18  ;;  %v3345_v24 = vsel %vm3343_vm9, %v3280_v10, %v5621_v48  ;;  %v2725_v14 = vsel %vm2680_vm5, %v8548_v17, %v5355_v57  ;;  %v5416_v48 = vunpack.i.h.bf16 %v7356_v9  ;;  %v8549_v43 = vld [vmem:[#allocation15_spill] sm:$0xff] }
 0x210   : > { %v3408_v39 = vpack.c.bf16 %v3345_v24, %v3344_v59  ;;  %v7683_v18 = vsel %vm2753_vm6, %v2725_v14, %v5360_v13  ;;  %v5415_v10 = vunpack.i.l.bf16 %v7356_v9  ;;  %v7688_v5 = vsel %vm2753_vm6, %v2726_v41, %v5361_v3 }
 0x211   : > { %v5421_v57 = vunpack.i.h.bf16 %v7372_v35  ;;  %v5396_v16 = vunpack.i.h.bf16 %v7380_v37  ;;  %v5301_v24 = vunpack.i.h.bf16 %v7213_v7  ;;  %v5300_v9 = vunpack.i.l.bf16 %v7213_v7 }
 0x212   : > { %5793 = vrot.lane.b32.xlu0 %v5792_v45, %s6098_s16  ;;  %5064 = vmatprep.mubr.msk.bf16.mxu1 %vm3467_vm10, %v3408_v39  ;;  %v5401_v13 = vunpack.i.h.bf16 %v7388_v61  ;;  %v5400_v3 = vunpack.i.l.bf16 %v7388_v61  ;;  %v5817_v35 = vpack.i.bf16 %v7680_v4, %v7675_v11  ;;  %v2732_v47 = vsel %vm2680_vm5, 0.0, %v5416_v48 }
 0x213   : > { %5808 = vrot.lane.b32.xlu1 %v5797_v36, %s6099_s18  ;;  %v2684_v36 = vsel %vm2680_vm5, 0.0, %v5291_v60  ;;  %v2731_v59 = vsel %vm2680_vm5, %v8549_v43, %v5415_v10  ;;  %v5812_v37 = vpack.i.bf16 %v7688_v5, %v7683_v18  ;;  %v2683_v7 = vsel %vm2680_vm5, 0.0, %v5290_v23 }
 0x214   : > { %v7714_v61 = vsel %vm2753_vm6, %v2732_v47, %v5421_v57  ;;  %v2730_v55 = vsel %vm2680_vm5, %v6720_v21, %v5396_v16  ;;  %v2729_v60 = vsel %vm2680_vm5, %v6563_v8, %v5395_v19  ;;  %v5456_v41 = vunpack.i.h.bf16 %v7401_v42 }
 0x215   : > { %v5616_v17 = vunpack.i.h.bf16 %v5614_v0  ;;  %v5615_v14 = vunpack.i.l.bf16 %v5614_v0  ;;  %v2757_v23 = vsel %vm2753_vm6, %v2684_v36, %v5301_v24  ;;  %v7725_v39 = vsel %vm2753_vm6, %v2729_v60, %v5400_v3 }
 0x216   : > { %5803 = vrot.lane.b32.xlu0 %v5792_v45, %s6099_s18  ;;  %v7711_v45 = vsel %vm2753_vm6, %v2731_v59, %v5420_v1  ;;  %v7728_v48 = vsel %vm2753_vm6, %v2730_v55, %v5401_v13  ;;  %v2756_v21 = vsel %vm2753_vm6, %v2683_v7, %v5300_v9  ;;  %v5455_v10 = vunpack.i.l.bf16 %v7401_v42 }
 0x217   : > { %5818 = vrot.lane.b32.xlu1 %v5817_v35, %s6098_s16  ;;  %v5837_v8 = vpack.i.bf16 %v7714_v61, %v7711_v45  ;;  %v5461_v1 = vunpack.i.h.bf16 %v7410_v33  ;;  %v5460_v16 = vunpack.i.l.bf16 %v7410_v33  ;;  %v2736_v3 = vsel %vm2680_vm5, 0.0, %v5456_v41  ;;  %v5624_v33 = vpop.permute.xlu0 %5623 }
 0x218   : > { %v3282_v13 = vsel %vm3278_vm8, %v2757_v23, %v5616_v17  ;;  %v3281_v9 = vsel %vm3278_vm8, %v2756_v21, %v5615_v14  ;;  %v5832_v42 = vpack.i.bf16 %v7728_v48, %v7725_v39  ;;  %v5436_v0 = vunpack.i.h.bf16 %v7418_v26  ;;  %v8551_v21 = vld [vmem:[#allocation16_spill] sm:$0xff] }
 0x219   : > { %v5435_v36 = vunpack.i.l.bf16 %v7418_v26  ;;  %v2735_v43 = vsel %vm2680_vm5, %v6792_v28, %v5455_v10  ;;  %v5441_v59 = vunpack.i.h.bf16 %v7424_v27  ;;  %v5440_v7 = vunpack.i.l.bf16 %v7424_v27  ;;  %v8550_v28 = vld [vmem:[#allocation17_spill] sm:$0xff] }
 0x21a   : > { %5813 = vrot.lane.b32.xlu0 %v5812_v37, %s6098_s16  ;;  %v7752_v60 = vsel %vm2753_vm6, %v2735_v43, %v5460_v16  ;;  %v7755_v41 = vsel %vm2753_vm6, %v2736_v3, %v5461_v1  ;;  %v5626_v26 = vunpack.i.h.bf16 %v5624_v33  ;;  %v5625_v17 = vunpack.i.l.bf16 %v5624_v33  ;;  %v8552_v33 = vld [vmem:[#allocation21_spill] sm:$0xff] }
 0x21b   : > { %5828 = vrot.lane.b32.xlu1 %v5817_v35, %s6099_s18  ;;  %v2734_v27 = vsel %vm2680_vm5, %v8550_v28, %v5436_v0  ;;  %v2733_v10 = vsel %vm2680_vm5, %v8551_v21, %v5435_v36  ;;  %v5872_v21 = vpack.i.bf16 %v7473_v15, %v7470_v12 }
 0x21c   : > { %v7768_v1 = vsel %vm2753_vm6, %v2734_v27, %v5441_v59  ;;  %v3284_v36 = vsel %vm3278_vm8, %v7282_v2, %v5626_v26  ;;  %v8554_v59 = vld [vmem:[#allocation22_spill] sm:$0xff]  ;;  %v5877_v27 = vpack.i.bf16 %v7459_v56, %v7456_v25 }
 0x21d   : > { %v5629_v57 = vpop.permute.xlu1 %5628 }
 0x21e   : > { %v5631_v24 = vunpack.i.h.bf16 %v5629_v57  ;;  %v5630_v19 = vunpack.i.l.bf16 %v5629_v57  ;;  %5823 = vrot.lane.b32.xlu0 %v5812_v37, %s6099_s18  ;;  %v7765_v57 = vsel %vm2753_vm6, %v2733_v10, %v5440_v7 }
 0x21f   : > { %5838 = vrot.lane.b32.xlu1 %v5837_v8, %s6098_s16 }
 0x220   : > { %v3346_v35 = vsel %vm3343_vm9, %v3281_v9, %v5630_v19  ;;  %v3347_v47 = vsel %vm3343_vm9, %v3282_v13, %v5631_v24  ;;  %v5857_v19 = vpack.i.bf16 %v7755_v41, %v7752_v60 }
 0x221   : > { %v3409_v37 = vpack.c.bf16 %v3347_v47, %v3346_v35  ;;  %v5634_v55 = vpop.permute.xlu1 %5633  ;;  %v3283_v35 = vsel %vm3278_vm8, %v8552_v33, %v5625_v17  ;;  %v8553_v47 = vld [vmem:[#allocation23_spill] sm:$0xff]  ;;  %v5852_v17 = vpack.i.bf16 %v7768_v1, %v7765_v57 }
 0x222   : > { %v5636_v14 = vunpack.i.h.bf16 %v5634_v55  ;;  %v5635_v23 = vunpack.i.l.bf16 %v5634_v55  ;;  %5833 = vrot.lane.b32.xlu0 %v5832_v42, %s6098_s16 }
 0x223   : > { %5065 = vmatmul.mubr.msk.bf16.vlgmr.msra.gmra.mrb[36].mxu1 %vm3467_vm10, %v3409_v37  ;;  %5848 = vrot.lane.b32.xlu1 %v5837_v8, %s6099_s18 }
 0x224   : > { %v5639_v16 = vpop.permute.xlu0 %5638  ;;  %v3286_v43 = vsel %vm3278_vm8, %v8553_v47, %v5636_v14  ;;  %v3285_v7 = vsel %vm3278_vm8, %v8554_v59, %v5635_v23 }
 0x225   : > { %v5649_v24 = vpop.permute.xlu1 %5648  ;;  %v5641_v3 = vunpack.i.h.bf16 %v5639_v16  ;;  %v5640_v13 = vunpack.i.l.bf16 %v5639_v16 }
 0x226   : > { %v5651_v9 = vunpack.i.h.bf16 %v5649_v24  ;;  %v5650_v0 = vunpack.i.l.bf16 %v5649_v24  ;;  %5843 = vrot.lane.b32.xlu0 %v5832_v42, %s6099_s18 }
 0x227   : > { %v3348_v8 = vsel %vm3343_vm9, %v3283_v35, %v5640_v13  ;;  %v3349_v37 = vsel %vm3343_vm9, %v3284_v36, %v5641_v3  ;;  %5858 = vrot.lane.b32.xlu1 %v5857_v19, %s6098_s16  ;;  %v8555_v36 = vld [vmem:[#allocation27_spill] sm:$0xff]  ;;  %v8556_v35 = vld [vmem:[#allocation26_spill] sm:$0xff] }
 0x228   : > { %v3350_v55 = vsel %vm3343_vm9, %v3285_v7, %v5650_v0  ;;  %v3351_v28 = vsel %vm3343_vm9, %v3286_v43, %v5651_v9  ;;  %v3410_v2 = vpack.c.bf16 %v3349_v37, %v3348_v8  ;;  %v5644_v42 = vpop.permute.xlu0 %5643  ;;  %v8557_v7 = vld [vmem:[#allocation25_spill] sm:$0xff]  ;;  %v8558_v37 = vld [vmem:[#allocation24_spill] sm:$0xff] }
 0x229   : > { %v3411_v26 = vpack.c.bf16 %v3351_v28, %v3350_v55  ;;  %v5654_v14 = vpop.permute.xlu1 %5653  ;;  %v5646_v24 = vunpack.i.h.bf16 %v5644_v42  ;;  %v5645_v3 = vunpack.i.l.bf16 %v5644_v42  ;;  %v5897_v42 = vpack.i.bf16 %v7512_v29, %v7509_v63 }
 0x22a   : > { %5068 = vmatprep.mubr.msk.bf16.mxu1 %vm3467_vm10, %v3410_v2  ;;  %5853 = vrot.lane.b32.xlu0 %v5852_v17, %s6098_s16  ;;  %v5656_v10 = vunpack.i.h.bf16 %v5654_v14  ;;  %v5655_v16 = vunpack.i.l.bf16 %v5654_v14 }
 0x22b   : > { %5069 = vmatmul.mubr.msk.bf16.gmra.mrb[40].mxu1 %vm3467_vm10, %v3411_v26  ;;  %5868 = vrot.lane.b32.xlu1 %v5857_v19, %s6099_s18  ;;  %v5526_v19 = vunpack.i.h.bf16 %v7462_v22  ;;  %v3288_v8 = vsel %vm3278_vm8, %v8557_v7, %v5646_v24  ;;  %v3287_v55 = vsel %vm3278_vm8, %v8558_v37, %v5645_v3  ;;  %v5525_v26 = vunpack.i.l.bf16 %v7462_v22  ;;  %v8560_v37 = vld [vmem:[#allocation29_spill] sm:$0xff] }
 0x22c   : > { %v3290_v33 = vsel %vm3278_vm8, %v8555_v36, %v5656_v10  ;;  %v3289_v47 = vsel %vm3278_vm8, %v8556_v35, %v5655_v16  ;;  %v5892_v16 = vpack.i.bf16 %v7519_v53, %v7516_v34 }
 0x22d   : > { %v5669_v23 = vpop.permute.xlu1 %5668  ;;  %v2748_v22 = vsel %vm2680_vm5, 0.0, %v5526_v19 }
 0x22e   : > { %5863 = vrot.lane.b32.xlu0 %v5852_v17, %s6099_s18  ;;  %v5671_v13 = vunpack.i.h.bf16 %v5669_v23  ;;  %v5670_v9 = vunpack.i.l.bf16 %v5669_v23  ;;  %v5591_v23 = vunpack.i.h.bf16 %v7677_v51 }
 0x22f   : > { %5878 = vrot.lane.b32.xlu1 %v5877_v27, %s6098_s16 }
 0x230   : > { %v3354_v28 = vsel %vm3343_vm9, %v3289_v47, %v5670_v9  ;;  %v3355_v2 = vsel %vm3343_vm9, %v3290_v33, %v5671_v13 }
 0x231   : > { %v3413_v24 = vpack.c.bf16 %v3355_v2, %v3354_v28  ;;  %v5674_v13 = vpop.permute.xlu1 %5673  ;;  %v8561_v28 = vld [vmem:[#allocation28_spill] sm:$0xff] }
 0x232   : > { %5873 = vrot.lane.b32.xlu0 %v5872_v21, %s6098_s16  ;;  %v5676_v35 = vunpack.i.h.bf16 %v5674_v13  ;;  %v5675_v47 = vunpack.i.l.bf16 %v5674_v13 }
 0x233   : > { %5888 = vrot.lane.b32.xlu1 %v5877_v27, %s6099_s18  ;;  %v5590_v27 = vunpack.i.l.bf16 %v7677_v51  ;;  %v2821_v51 = vsel %vm2753_vm6, %v2748_v22, %v5591_v23  ;;  %v8563_v23 = vld [vmem:[#allocation30_spill] sm:$0xff] }
 0x234   : > { %v5659_v0 = vpop.permute.xlu0 %5658  ;;  %v3293_v2 = vsel %vm3278_vm8, %v8561_v28, %v5675_v47  ;;  %v8566_v28 = vld [vmem:[#allocation35_spill] sm:$0xff] }
 0x235   : > { %v5661_v43 = vunpack.i.h.bf16 %v5659_v0  ;;  %v5660_v59 = vunpack.i.l.bf16 %v5659_v0 }
 0x236   : > { %5883 = vrot.lane.b32.xlu0 %v5872_v21, %s6099_s18  ;;  %v8559_v21 = vld [vmem:[#allocation18_spill] sm:$0xff] }
 0x237   : > { %v3352_v17 = vsel %vm3343_vm9, %v3287_v55, %v5660_v59  ;;  %v3353_v14 = vsel %vm3343_vm9, %v3288_v8, %v5661_v43  ;;  %5898 = vrot.lane.b32.xlu1 %v5897_v42, %s6098_s16  ;;  %v2747_v3 = vsel %vm2680_vm5, %v8559_v21, %v5525_v26  ;;  %v3294_v55 = vsel %vm3278_vm8, %v8560_v37, %v5676_v35 }
 0x238   : > { %v3412_v10 = vpack.c.bf16 %v3353_v14, %v3352_v17  ;;  %v2820_v9 = vsel %vm2753_vm6, %v2747_v3, %v5590_v27  ;;  %v5664_v36 = vpop.permute.xlu0 %5663  ;;  %v8562_v14 = vld [vmem:[#allocation31_spill] sm:$0xff] }
 0x239   : > { %v5917_v0 = vpack.i.bf16 %v2821_v51, %v2820_v9  ;;  %v5666_v19 = vunpack.i.h.bf16 %v5664_v36  ;;  %v5665_v43 = vunpack.i.l.bf16 %v5664_v36 }
 0x23a   : > { %5072 = vmatprep.mubr.msk.bf16.mxu1 %vm3467_vm10, %v3412_v10  ;;  %5893 = vrot.lane.b32.xlu0 %v5892_v16, %s6098_s16 }
 0x23b   : > { %5073 = vmatmul.mubr.msk.bf16.gmra.mrb[44].mxu1 %vm3467_vm10, %v3413_v24  ;;  %5908 = vrot.lane.b32.xlu1 %v5897_v42, %s6099_s18  ;;  %v3292_v42 = vsel %vm3278_vm8, %v8562_v14, %v5666_v19  ;;  %v3291_v27 = vsel %vm3278_vm8, %v8563_v23, %v5665_v43  ;;  %v8564_v43 = vld [vmem:[#allocation33_spill] sm:$0xff] }
 0x23d   : > { %v5689_v33 = vpop.permute.xlu1 %5688 }
 0x23e   : > { %5903 = vrot.lane.b32.xlu0 %v5892_v16, %s6099_s18  ;;  %v5691_v59 = vunpack.i.h.bf16 %v5689_v33  ;;  %v5690_v7 = vunpack.i.l.bf16 %v5689_v33 }
 0x23f   : > { %5918 = vrot.lane.b32.xlu1 %v5917_v0, %s6098_s16 }
 0x240   : > { %v3358_v10 = vsel %vm3343_vm9, %v3293_v2, %v5690_v7  ;;  %v3359_v16 = vsel %vm3343_vm9, %v3294_v55, %v5691_v59  ;;  %v8565_v7 = vld [vmem:[#allocation32_spill] sm:$0xff] }
 0x241   : > { %v3415_v3 = vpack.c.bf16 %v3359_v16, %v3358_v10  ;;  %v5694_v13 = vpop.permute.xlu1 %5693 }
 0x242   : > { %5913 = vrot.lane.b32.xlu0 %v7569_v54, %s6098_s16  ;;  %v5696_v9 = vunpack.i.h.bf16 %v5694_v13 }
 0x243   : > { %5928 = vrot.lane.b32.xlu1 %v5917_v0, %s6099_s18  ;;  %v5695_v0 = vunpack.i.l.bf16 %v5694_v13 }
 0x244   : > { %v5679_v8 = vpop.permute.xlu0 %5678  ;;  %v3298_v59 = vsel %vm3278_vm8, %v8564_v43, %v5696_v9 }
 0x245   : > { %v5681_v26 = vunpack.i.h.bf16 %v5679_v8  ;;  %v5680_v17 = vunpack.i.l.bf16 %v5679_v8  ;;  %v3297_v8 = vsel %vm3278_vm8, %v8565_v7, %v5695_v0 }
 0x246   : > { %5923 = vrot.lane.b32.xlu0 %v7569_v54, %s6099_s18 }
 0x247   : > { %v3356_v24 = vsel %vm3343_vm9, %v3291_v27, %v5680_v17  ;;  %v3357_v22 = vsel %vm3343_vm9, %v3292_v42, %v5681_v26  ;;  %v8567_v26 = vld [vmem:[#allocation34_spill] sm:$0xff] }
 0x248   : > { %v3414_v21 = vpack.c.bf16 %v3357_v22, %v3356_v24  ;;  %v5684_v51 = vpop.permute.xlu0 %5683 }
 0x249   : > { %v5686_v36 = vunpack.i.h.bf16 %v5684_v51  ;;  %v5685_v33 = vunpack.i.l.bf16 %v5684_v51 }
 0x24a   : > { %5076 = vmatprep.mubr.msk.bf16.mxu1 %vm3467_vm10, %v3414_v21 }
 0x24b   : > { %5077 = vmatmul.mubr.msk.bf16.gmra.mrb[48].mxu1 %vm3467_vm10, %v3415_v3  ;;  %v3296_v2 = vsel %vm3278_vm8, %v8566_v28, %v5686_v36  ;;  %v3295_v17 = vsel %vm3278_vm8, %v8567_v26, %v5685_v33  ;;  %v8568_v33 = vld [vmem:[#allocation38_spill] sm:$0xff]  ;;  %v8570_v26 = vld [vmem:[#allocation36_spill] sm:$0xff] }
 0x251   : > { %v5709_v35 = vpop.permute.xlu1 %5708 }
 0x252   : > { %v5711_v47 = vunpack.i.h.bf16 %v5709_v35  ;;  %v5710_v19 = vunpack.i.l.bf16 %v5709_v35 }
 0x254   : > { %v5699_v54 = vpop.permute.xlu0 %5698  ;;  %v3362_v14 = vsel %vm3343_vm9, %v3297_v8, %v5710_v19  ;;  %v3363_v42 = vsel %vm3343_vm9, %v3298_v59, %v5711_v47 }
 0x255   : > { %v5701_v37 = vunpack.i.h.bf16 %v5699_v54  ;;  %v5700_v55 = vunpack.i.l.bf16 %v5699_v54  ;;  %v3417_v16 = vpack.c.bf16 %v3363_v42, %v3362_v14  ;;  %v5714_v24 = vpop.permute.xlu1 %5713 }
 0x256   : > { %v5716_v59 = vunpack.i.h.bf16 %v5714_v24  ;;  %v5715_v7 = vunpack.i.l.bf16 %v5714_v24 }
 0x257   : > { %v3360_v23 = vsel %vm3343_vm9, %v3295_v17, %v5700_v55  ;;  %v3361_v27 = vsel %vm3343_vm9, %v3296_v2, %v5701_v37  ;;  %v8569_v2 = vld [vmem:[#allocation37_spill] sm:$0xff] }
 0x258   : > { %v3416_v10 = vpack.c.bf16 %v3361_v27, %v3360_v23  ;;  %v5704_v22 = vpop.permute.xlu0 %5703  ;;  %v3301_v17 = vsel %vm3278_vm8, %v8570_v26, %v5715_v7 }
 0x259   : > { %v5706_v21 = vunpack.i.h.bf16 %v5704_v22  ;;  %v5705_v3 = vunpack.i.l.bf16 %v5704_v22 }
 0x25a   : > { %5080 = vmatprep.mubr.msk.bf16.mxu1 %vm3467_vm10, %v3416_v10  ;;  %v5056_v14 = vpop.f32.mrb[32].mxu1 }
 0x25b   : > { %5081 = vmatmul.mubr.msk.bf16.gmra.mrb[52].mxu1 %vm3467_vm10, %v3417_v16  ;;  %v3300_v36 = vsel %vm3278_vm8, %v7447_v58, %v5706_v21  ;;  %v3299_v35 = vsel %vm3278_vm8, %v8568_v33, %v5705_v3  ;;  %v3302_v58 = vsel %vm3278_vm8, %v8569_v2, %v5716_v59  ;;  %v1202_v10 = vpop.f32.mrb[33].mxu1 }
 0x25c   : > { %v5057_v22 = vpop.f32.mrb[34].mxu1 }
 0x261   : > { %v5729_v13 = vpop.permute.xlu1 %5728 }
 0x264   : > { %v5719_v51 = vpop.permute.xlu0 %5718 }
 0x265   : > { %v5721_v9 = vunpack.i.h.bf16 %v5719_v51  ;;  %v5720_v0 = vunpack.i.l.bf16 %v5719_v51  ;;  %v5734_v47 = vpop.permute.xlu1 %5733  ;;  %v1205_v51 = vpop.f32.mrb[35].mxu1 }
 0x266   : > { %v5736_v7 = vunpack.i.h.bf16 %v5734_v47 }
 0x267   : > { %v3364_v19 = vsel %vm3343_vm9, %v3299_v35, %v5720_v0  ;;  %v3365_v54 = vsel %vm3343_vm9, %v3300_v36, %v5721_v9 }
 0x268   : > { %v3418_v43 = vpack.c.bf16 %v3365_v54, %v3364_v19  ;;  %v5724_v8 = vpop.permute.xlu0 %5723  ;;  %v5731_v19 = vunpack.i.h.bf16 %v5729_v13  ;;  %v5730_v54 = vunpack.i.l.bf16 %v5729_v13  ;;  %v5605_v13 = vunpack.i.l.bf16 %v7604_v49 }
 0x269   : > { %v5739_v37 = vpop.permute.xlu1 %5738  ;;  %v5726_v9 = vunpack.i.h.bf16 %v5724_v8  ;;  %v5725_v0 = vunpack.i.l.bf16 %v5724_v8 }
 0x26a   : > { %5084 = vmatprep.mubr.msk.bf16.mxu1 %vm3467_vm10, %v3418_v43  ;;  %v5741_v55 = vunpack.i.h.bf16 %v5739_v37  ;;  %v5740_v28 = vunpack.i.l.bf16 %v5739_v37  ;;  %v5735_v43 = vunpack.i.l.bf16 %v5734_v47  ;;  %v8571_v37 = vld [vmem:[#allocation40_spill] sm:$0xff] }
 0x26c   : > { %v3367_v42 = vsel %vm3343_vm9, %v3302_v58, %v5741_v55  ;;  %v3366_v23 = vsel %vm3343_vm9, %v3301_v17, %v5740_v28  ;;  %v5754_v27 = vpop.permute.xlu0 %5753  ;;  %v3304_v55 = vsel %vm3278_vm8, %v8571_v37, %v5726_v9  ;;  %v8572_v58 = vld [vmem:[#allocation39_spill] sm:$0xff] }
 0x26d   : > { %v3419_v16 = vpack.c.bf16 %v3367_v42, %v3366_v23  ;;  %v5744_v24 = vpop.permute.xlu1 %5743  ;;  %v3303_v8 = vsel %vm3278_vm8, %v8572_v58, %v5725_v0  ;;  %v5756_v26 = vunpack.i.h.bf16 %v5754_v27  ;;  %v3309_v23 = vsel %vm3278_vm8, %v7556_v6, %v5735_v43 }
 0x26e   : > { %v5746_v21 = vunpack.i.h.bf16 %v5744_v24  ;;  %v5745_v3 = vunpack.i.l.bf16 %v5744_v24  ;;  %v3310_v0 = vsel %vm3278_vm8, %v7559_v46, %v5736_v7 }
 0x26f   : > { %5085 = vmatmul.mubr.msk.bf16.gmra.mrb[56].mxu1 %vm3467_vm10, %v3419_v16 }
 0x270   : > { %v3306_v36 = vsel %vm3278_vm8, %v7486_v44, %v5746_v21  ;;  %v3305_v33 = vsel %vm3278_vm8, %v7483_v31, %v5745_v3  ;;  %v5606_v31 = vunpack.i.h.bf16 %v7604_v49  ;;  %v5755_v21 = vunpack.i.l.bf16 %v5754_v27 }
 0x271   : > { %v5749_v35 = vpop.permute.xlu1 %5748  ;;  %v3370_v44 = vsel %vm3343_vm9, %v3305_v33, %v5730_v54  ;;  %v3371_v17 = vsel %vm3343_vm9, %v3306_v36, %v5731_v19  ;;  %v2750_v33 = vsel %vm2680_vm5, 0.0, %v5756_v26 }
 0x272   : > { %v3421_v9 = vpack.c.bf16 %v3371_v17, %v3370_v44  ;;  %v5751_v49 = vunpack.i.h.bf16 %v5749_v35  ;;  %v5750_v36 = vunpack.i.l.bf16 %v5749_v35 }
 0x274   : > { %v5764_v59 = vpop.permute.xlu0 %5763 }
 0x275   : > { %v5766_v28 = vunpack.i.h.bf16 %v5764_v59  ;;  %v5765_v2 = vunpack.i.l.bf16 %v5764_v59  ;;  %v5759_v14 = vpop.permute.xlu1 %5758 }
 0x276   : > { %v5761_v10 = vunpack.i.h.bf16 %v5759_v14  ;;  %v5760_v16 = vunpack.i.l.bf16 %v5759_v14 }
 0x277   : > { %v3369_v47 = vsel %vm3343_vm9, %v3304_v55, %v5766_v28  ;;  %v3368_v42 = vsel %vm3343_vm9, %v3303_v8, %v5765_v2  ;;  %v2749_v55 = vsel %vm2680_vm5, 0.0, %v5755_v21  ;;  %v3374_v8 = vsel %vm3343_vm9, %v3309_v23, %v5750_v36 }
 0x278   : > { %v3420_v24 = vpack.c.bf16 %v3369_v47, %v3368_v42  ;;  %v5769_v22 = vpop.permute.xlu0 %5768  ;;  %v2752_v19 = vsel %vm2680_vm5, 0.0, %v5761_v10  ;;  %v2751_v6 = vsel %vm2680_vm5, 0.0, %v5760_v16 }
 0x279   : > { %v5771_v3 = vunpack.i.h.bf16 %v5769_v22  ;;  %v5770_v51 = vunpack.i.l.bf16 %v5769_v22  ;;  %v5779_v54 = vpop.permute.xlu1 %5778 }
 0x27a   : > { %5088 = vmatprep.mubr.msk.bf16.mxu1 %vm3467_vm10, %v3420_v24  ;;  %v5781_v46 = vunpack.i.h.bf16 %v5779_v54  ;;  %v5780_v59 = vunpack.i.l.bf16 %v5779_v54 }
 0x27b   : > { %v3308_v27 = vsel %vm3278_vm8, %v7540_v52, %v5771_v3  ;;  %v3307_v43 = vsel %vm3278_vm8, %v7537_v32, %v5770_v51  ;;  %5089 = vmatmul.mubr.msk.bf16.gmra.mrb[60].mxu1 %vm3467_vm10, %v3421_v9  ;;  %v3953_v52 = vld [vmem:[%s8406_s7] sm:$0x3]  ;;  %v3375_v32 = vsel %vm3343_vm9, %v3310_v0, %v5751_v49  ;;  %v8573_v49 = vld [vmem:[#allocation42_spill] sm:$0xff] }
 0x27c   : > { %v5774_v35 = vpop.permute.xlu0 %5773  ;;  %v3372_v7 = vsel %vm3343_vm9, %v3307_v43, %v5605_v13  ;;  %v3373_v37 = vsel %vm3343_vm9, %v3308_v27, %v5606_v31  ;;  %v2824_v26 = vsel %vm2753_vm6, %v2751_v6, %v5780_v59  ;;  %v2825_v44 = vsel %vm2753_vm6, %v2752_v19, %v5781_v46  ;;  %5197 = vmatprep.subr.msk.bf16.mxu0 %vm3564_vm7, %v3953_v52 }
 0x27d   : > { %v5776_v28 = vunpack.i.h.bf16 %v5774_v35  ;;  %v5775_v2 = vunpack.i.l.bf16 %v5774_v35  ;;  %v3422_v58 = vpack.c.bf16 %v3373_v37, %v3372_v7  ;;  %v5937_v17 = vpack.i.bf16 %v2825_v44, %v2824_v26  ;;  %v5789_v31 = vpop.permute.xlu1 %5788 }
 0x27e   : > { %v3423_v10 = vpack.c.bf16 %v3375_v32, %v3374_v8  ;;  %v5791_v16 = vunpack.i.h.bf16 %v5789_v31  ;;  %v5790_v24 = vunpack.i.l.bf16 %v5789_v31  ;;  %v4058_v23 = vsel %vm3564_vm7, %v3953_v52, 0  ;;  %v8575_v31 = vld [vmem:[#allocation5_spill] sm:$0xff] }
 0x27f   : > { %v2823_v13 = vsel %vm2753_vm6, %v2750_v33, %v5776_v28  ;;  %v2822_v14 = vsel %vm2753_vm6, %v2749_v55, %v5775_v2  ;;  %5092 = vmatprep.mubr.msk.bf16.mxu1 %vm3467_vm10, %v3422_v58  ;;  %5938 = vrot.lane.b32.xlu1 %v5937_v17, %s6098_s16  ;;  %v8574_v33 = vld [vmem:[#allocation41_spill] sm:$0xff] }
 0x280   : > { %v5932_v47 = vpack.i.bf16 %v2823_v13, %v2822_v14  ;;  %v5784_v42 = vpop.permute.xlu0 %5783  ;;  %5129 = vmatpush3.bf16.msra.mxu0 %v4058_v23  ;;  %v3314_v36 = vsel %vm3278_vm8, %v8573_v49, %v5791_v16  ;;  %v3313_v19 = vsel %vm3278_vm8, %v8574_v33, %v5790_v24  ;;  %v8576_v16 = vld [vmem:[#allocation20_spill] sm:$0xff]  ;;  %v8577_v23 = vld [vmem:[#allocation19_spill] sm:$0xff] }
 0x281   : > { %v5786_v22 = vunpack.i.h.bf16 %v5784_v42  ;;  %v5785_v21 = vunpack.i.l.bf16 %v5784_v42  ;;  %v5799_v3 = vpop.permute.xlu1 %5798 }
 0x282   : > { %5933 = vrot.lane.b32.xlu0 %v5932_v47, %s6098_s16  ;;  %v5801_v51 = vunpack.i.h.bf16 %v5799_v3  ;;  %v5800_v9 = vunpack.i.l.bf16 %v5799_v3 }
 0x283   : > { %5093 = vmatmul.mubr.msk.bf16.gmra.mrb[64].mxu1 %vm3467_vm10, %v3423_v10  ;;  %v3312_v46 = vsel %vm3278_vm8, %v7592_v40, %v5786_v22  ;;  %v3311_v59 = vsel %vm3278_vm8, %v7589_v20, %v5785_v21 }
 0x284   : > { %v5794_v0 = vpop.permute.xlu0 %5793  ;;  %v3378_v27 = vsel %vm3343_vm9, %v3313_v19, %v5800_v9  ;;  %v3379_v43 = vsel %vm3343_vm9, %v3314_v36, %v5801_v51 }
 0x285   : > { %v5796_v6 = vunpack.i.h.bf16 %v5794_v0  ;;  %v5795_v54 = vunpack.i.l.bf16 %v5794_v0  ;;  %v5809_v35 = vpop.permute.xlu1 %5808  ;;  %v3425_v2 = vpack.c.bf16 %v3379_v43, %v3378_v27 }
 0x286   : > { %v5811_v58 = vunpack.i.h.bf16 %v5809_v35  ;;  %v5810_v52 = vunpack.i.l.bf16 %v5809_v35 }
 0x287   : > { %v3376_v7 = vsel %vm3343_vm9, %v3311_v59, %v5795_v54  ;;  %v3377_v37 = vsel %vm3343_vm9, %v3312_v46, %v5796_v6 }
 0x288   : > { %v3424_v55 = vpack.c.bf16 %v3377_v37, %v3376_v7  ;;  %v5804_v28 = vpop.permute.xlu0 %5803  ;;  %v3318_v17 = vsel %vm3278_vm8, %v7578_v38, %v5811_v58  ;;  %v3317_v13 = vsel %vm3278_vm8, %v8575_v31, %v5810_v52 }
 0x289   : > { %v5806_v32 = vunpack.i.h.bf16 %v5804_v28  ;;  %v5805_v8 = vunpack.i.l.bf16 %v5804_v28  ;;  %v5819_v26 = vpop.permute.xlu1 %5818 }
 0x28a   : > { %5096 = vmatprep.mubr.msk.bf16.mxu1 %vm3467_vm10, %v3424_v55  ;;  %v5821_v40 = vunpack.i.h.bf16 %v5819_v26  ;;  %v5820_v44 = vunpack.i.l.bf16 %v5819_v26 }
 0x28b   : > { %5097 = vmatmul.mubr.msk.bf16.gmra.mrb[68].mxu1 %vm3467_vm10, %v3425_v2  ;;  %v3316_v24 = vsel %vm3278_vm8, %v8576_v16, %v5806_v32  ;;  %v3315_v22 = vsel %vm3278_vm8, %v8577_v23, %v5805_v8  ;;  %v8578_v2 = vld [vmem:[#allocation8_spill] sm:$0xff] }
 0x28c   : > { %v5814_v20 = vpop.permute.xlu0 %5813  ;;  %v3382_v42 = vsel %vm3343_vm9, %v3317_v13, %v5820_v44  ;;  %v3383_v10 = vsel %vm3343_vm9, %v3318_v17, %v5821_v40 }
 0x28d   : > { %v5816_v14 = vunpack.i.h.bf16 %v5814_v20  ;;  %v5815_v47 = vunpack.i.l.bf16 %v5814_v20  ;;  %v5829_v21 = vpop.permute.xlu1 %5828  ;;  %v3427_v0 = vpack.c.bf16 %v3383_v10, %v3382_v42 }
 0x28e   : > { %v5831_v49 = vunpack.i.h.bf16 %v5829_v21  ;;  %v5830_v36 = vunpack.i.l.bf16 %v5829_v21 }
 0x28f   : > { %v3380_v3 = vsel %vm3343_vm9, %v3315_v22, %v5815_v47  ;;  %v3381_v38 = vsel %vm3343_vm9, %v3316_v24, %v5816_v14 }
 0x290   : > { %v3426_v51 = vpack.c.bf16 %v3381_v38, %v3380_v3  ;;  %v5824_v9 = vpop.permute.xlu0 %5823  ;;  %v3322_v46 = vsel %vm3278_vm8, %v7633_v62, %v5831_v49  ;;  %v3321_v59 = vsel %vm3278_vm8, %v7630_v30, %v5830_v36 }
 0x291   : > { %v5826_v33 = vunpack.i.h.bf16 %v5824_v9  ;;  %v5825_v19 = vunpack.i.l.bf16 %v5824_v9  ;;  %v5839_v6 = vpop.permute.xlu1 %5838 }
 0x292   : > { %5100 = vmatprep.mubr.msk.bf16.mxu1 %vm3467_vm10, %v3426_v51  ;;  %v5841_v54 = vunpack.i.h.bf16 %v5839_v6  ;;  %v5840_v27 = vunpack.i.l.bf16 %v5839_v6 }
 0x293   : > { %5101 = vmatmul.mubr.msk.bf16.gmra.mrb[72].mxu1 %vm3467_vm10, %v3427_v0  ;;  %v3320_v28 = vsel %vm3278_vm8, %v7642_v50, %v5826_v33  ;;  %v3319_v58 = vsel %vm3278_vm8, %v8578_v2, %v5825_v19 }
 0x294   : > { %v5834_v43 = vpop.permute.xlu0 %5833  ;;  %v3386_v37 = vsel %vm3343_vm9, %v3321_v59, %v5840_v27  ;;  %v3387_v55 = vsel %vm3343_vm9, %v3322_v46, %v5841_v54 }
 0x295   : > { %v5836_v35 = vunpack.i.h.bf16 %v5834_v43  ;;  %v5835_v7 = vunpack.i.l.bf16 %v5834_v43  ;;  %v5849_v52 = vpop.permute.xlu1 %5848  ;;  %v3429_v30 = vpack.c.bf16 %v3387_v55, %v3386_v37 }
 0x296   : > { %v5851_v40 = vunpack.i.h.bf16 %v5849_v52  ;;  %v5850_v44 = vunpack.i.l.bf16 %v5849_v52 }
 0x297   : > { %v3384_v32 = vsel %vm3343_vm9, %v3319_v58, %v5835_v7  ;;  %v3385_v62 = vsel %vm3343_vm9, %v3320_v28, %v5836_v35 }
 0x298   : > { %v3428_v8 = vpack.c.bf16 %v3385_v62, %v3384_v32  ;;  %v5844_v26 = vpop.permute.xlu0 %5843  ;;  %v3326_v47 = vsel %vm3278_vm8, %v7680_v4, %v5851_v40  ;;  %v3325_v42 = vsel %vm3278_vm8, %v7675_v11, %v5850_v44 }
 0x299   : > { %v5846_v20 = vunpack.i.h.bf16 %v5844_v26  ;;  %v5845_v17 = vunpack.i.l.bf16 %v5844_v26  ;;  %v5859_v31 = vpop.permute.xlu1 %5858 }
 0x29a   : > { %5104 = vmatprep.mubr.msk.bf16.mxu1 %vm3467_vm10, %v3428_v8  ;;  %v5861_v50 = vunpack.i.h.bf16 %v5859_v31  ;;  %v5860_v13 = vunpack.i.l.bf16 %v5859_v31 }
 0x29b   : > { %5105 = vmatmul.mubr.msk.bf16.gmra.mrb[76].mxu1 %vm3467_vm10, %v3429_v30  ;;  %v3324_v22 = vsel %vm3278_vm8, %v7688_v5, %v5846_v20  ;;  %v3323_v21 = vsel %vm3278_vm8, %v7683_v18, %v5845_v17 }
 0x29c   : > { %v5854_v14 = vpop.permute.xlu0 %5853  ;;  %v3390_v24 = vsel %vm3343_vm9, %v3325_v42, %v5860_v13  ;;  %v3391_v23 = vsel %vm3343_vm9, %v3326_v47, %v5861_v50 }
 0x29d   : > { %v5856_v10 = vunpack.i.h.bf16 %v5854_v14  ;;  %v5855_v16 = vunpack.i.l.bf16 %v5854_v14  ;;  %v5869_v3 = vpop.permute.xlu1 %5868  ;;  %v3431_v11 = vpack.c.bf16 %v3391_v23, %v3390_v24 }
 0x29e   : > { %v5871_v0 = vunpack.i.h.bf16 %v5869_v3  ;;  %v5870_v49 = vunpack.i.l.bf16 %v5869_v3 }
 0x29f   : > { %v3388_v38 = vsel %vm3343_vm9, %v3323_v21, %v5855_v16  ;;  %v3389_v4 = vsel %vm3343_vm9, %v3324_v22, %v5856_v10 }
 0x2a0   : > { %v3430_v51 = vpack.c.bf16 %v3389_v4, %v3388_v38  ;;  %v5864_v9 = vpop.permute.xlu0 %5863  ;;  %v3330_v54 = vsel %vm3278_vm8, %v7714_v61, %v5871_v0  ;;  %v3329_v27 = vsel %vm3278_vm8, %v7711_v45, %v5870_v49 }
 0x2a1   : > { %v5866_v36 = vunpack.i.h.bf16 %v5864_v9  ;;  %v5865_v33 = vunpack.i.l.bf16 %v5864_v9  ;;  %v5879_v19 = vpop.permute.xlu1 %5878 }
 0x2a2   : > { %5108 = vmatprep.mubr.msk.bf16.mxu1 %vm3467_vm10, %v3430_v51  ;;  %v5881_v5 = vunpack.i.h.bf16 %v5879_v19  ;;  %v5880_v6 = vunpack.i.l.bf16 %v5879_v19 }
 0x2a3   : > { %5109 = vmatmul.mubr.msk.bf16.gmra.mrb[80].mxu1 %vm3467_vm10, %v3431_v11  ;;  %v3328_v7 = vsel %vm3278_vm8, %v7728_v48, %v5866_v36  ;;  %v3327_v37 = vsel %vm3278_vm8, %v7725_v39, %v5865_v33 }
 0x2a4   : > { %v5874_v18 = vpop.permute.xlu0 %5873  ;;  %v3394_v59 = vsel %vm3343_vm9, %v3329_v27, %v5880_v6  ;;  %v3395_v35 = vsel %vm3343_vm9, %v3330_v54, %v5881_v5 }
 0x2a5   : > { %v5876_v43 = vunpack.i.h.bf16 %v5874_v18  ;;  %v5875_v46 = vunpack.i.l.bf16 %v5874_v18  ;;  %v5889_v55 = vpop.permute.xlu1 %5888  ;;  %v3433_v45 = vpack.c.bf16 %v3395_v35, %v3394_v59 }
 0x2a6   : > { %v5891_v52 = vunpack.i.h.bf16 %v5889_v55  ;;  %v5890_v32 = vunpack.i.l.bf16 %v5889_v55 }
 0x2a7   : > { %v3392_v28 = vsel %vm3343_vm9, %v3327_v37, %v5875_v46  ;;  %v3393_v61 = vsel %vm3343_vm9, %v3328_v7, %v5876_v43 }
 0x2a8   : > { %v3432_v2 = vpack.c.bf16 %v3393_v61, %v3392_v28  ;;  %v5884_v58 = vpop.permute.xlu0 %5883  ;;  %v3334_v40 = vsel %vm3278_vm8, %v7755_v41, %v5891_v52  ;;  %v3333_v44 = vsel %vm3278_vm8, %v7752_v60, %v5890_v32 }
 0x2a9   : > { %v5886_v62 = vunpack.i.h.bf16 %v5884_v58  ;;  %v5885_v8 = vunpack.i.l.bf16 %v5884_v58  ;;  %v5899_v26 = vpop.permute.xlu1 %5898 }
 0x2aa   : > { %5112 = vmatprep.mubr.msk.bf16.mxu1 %vm3467_vm10, %v3432_v2  ;;  %v5901_v48 = vunpack.i.h.bf16 %v5899_v26  ;;  %v5900_v30 = vunpack.i.l.bf16 %v5899_v26 }
 0x2ab   : > { %5113 = vmatmul.mubr.msk.bf16.gmra.mrb[84].mxu1 %vm3467_vm10, %v3433_v45  ;;  %v3332_v13 = vsel %vm3278_vm8, %v7768_v1, %v5886_v62  ;;  %v3331_v14 = vsel %vm3278_vm8, %v7765_v57, %v5885_v8 }
 0x2ac   : > { %v5894_v39 = vpop.permute.xlu0 %5893  ;;  %v3398_v31 = vsel %vm3343_vm9, %v3333_v44, %v5900_v30  ;;  %v3399_v50 = vsel %vm3343_vm9, %v3334_v40, %v5901_v48 }
 0x2ad   : > { %v5896_v20 = vunpack.i.h.bf16 %v5894_v39  ;;  %v5895_v17 = vunpack.i.l.bf16 %v5894_v39  ;;  %v5909_v47 = vpop.permute.xlu1 %5908  ;;  %v3435_v60 = vpack.c.bf16 %v3399_v50, %v3398_v31 }
 0x2ae   : > { %v5911_v24 = vunpack.i.h.bf16 %v5909_v47  ;;  %v5910_v23 = vunpack.i.l.bf16 %v5909_v47 }
 0x2af   : > { %v3396_v42 = vsel %vm3343_vm9, %v3331_v14, %v5895_v17  ;;  %v3397_v41 = vsel %vm3343_vm9, %v3332_v13, %v5896_v20 }
 0x2b0   : > { %v3434_v10 = vpack.c.bf16 %v3397_v41, %v3396_v42  ;;  %v5904_v16 = vpop.permute.xlu0 %5903  ;;  %v3338_v4 = vsel %vm3278_vm8, %v7459_v56, %v5911_v24  ;;  %v3337_v51 = vsel %vm3278_vm8, %v7456_v25, %v5910_v23 }
 0x2b1   : > { %v5906_v22 = vunpack.i.h.bf16 %v5904_v16  ;;  %v5905_v21 = vunpack.i.l.bf16 %v5904_v16  ;;  %v5919_v3 = vpop.permute.xlu1 %5918 }
 0x2b2   : > { %5116 = vmatprep.mubr.msk.bf16.mxu1 %vm3467_vm10, %v3434_v10  ;;  %v5921_v1 = vunpack.i.h.bf16 %v5919_v3  ;;  %v5920_v38 = vunpack.i.l.bf16 %v5919_v3 }
 0x2b3   : > { %5117 = vmatmul.mubr.msk.bf16.gmra.mrb[88].mxu1 %vm3467_vm10, %v3435_v60  ;;  %v3336_v36 = vsel %vm3278_vm8, %v7473_v15, %v5906_v22  ;;  %v3335_v33 = vsel %vm3278_vm8, %v7470_v12, %v5905_v21  ;;  %v8027_v12 = vld [vmem:[%s8405_s6] ss:$0 sm:$0xff] }
 0x2b4   : > { %v5914_v57 = vpop.permute.xlu0 %5913  ;;  %v3402_v0 = vsel %vm3343_vm9, %v3337_v51, %v5920_v38  ;;  %v3403_v49 = vsel %vm3343_vm9, %v3338_v4, %v5921_v1 }
 0x2b5   : > { %v5916_v9 = vunpack.i.h.bf16 %v5914_v57  ;;  %v5915_v11 = vunpack.i.l.bf16 %v5914_v57  ;;  %v3437_v6 = vpack.c.bf16 %v3403_v49, %v3402_v0  ;;  %v5929_v25 = vpop.permute.xlu1 %5928 }
 0x2b6   : > { %v5931_v54 = vunpack.i.h.bf16 %v5929_v25  ;;  %v5930_v27 = vunpack.i.l.bf16 %v5929_v25 }
 0x2b7   : > { %v3400_v19 = vsel %vm3343_vm9, %v3335_v33, %v5915_v11  ;;  %v3401_v5 = vsel %vm3343_vm9, %v3336_v36, %v5916_v9 }
 0x2b8   : > { %v3436_v56 = vpack.c.bf16 %v3401_v5, %v3400_v19  ;;  %v5924_v18 = vpop.permute.xlu0 %5923  ;;  %v3342_v59 = vsel %vm3278_vm8, %v7512_v29, %v5931_v54  ;;  %v3341_v55 = vsel %vm3278_vm8, %v7509_v63, %v5930_v27 }
 0x2b9   : > { %v5926_v43 = vunpack.i.h.bf16 %v5924_v18  ;;  %v5925_v46 = vunpack.i.l.bf16 %v5924_v18 }
 0x2ba   : > { %5120 = vmatprep.mubr.msk.bf16.mxu1 %vm3467_vm10, %v3436_v56 }
 0x2bb   : > { %5121 = vmatmul.mubr.msk.bf16.gmra.mrb[92].mxu1 %vm3467_vm10, %v3437_v6  ;;  %v3340_v28 = vsel %vm3278_vm8, %v7519_v53, %v5926_v43  ;;  %v3339_v45 = vsel %vm3278_vm8, %v7516_v34, %v5925_v46 }
 0x2f1   : > { %v5939_v15 = vpop.permute.xlu1 %5938 }
 0x2f2   : > { %v5941_v35 = vunpack.i.h.bf16 %v5939_v15  ;;  %v5940_v7 = vunpack.i.l.bf16 %v5939_v15 }
 0x2f4   : > { %v5934_v37 = vpop.permute.xlu0 %5933  ;;  %v3407_v52 = vsel %vm3343_vm9, %v3342_v59, %v5941_v35  ;;  %v3406_v32 = vsel %vm3343_vm9, %v3341_v55, %v5940_v7 }
 0x2f5   : > { %v5936_v61 = vunpack.i.h.bf16 %v5934_v37  ;;  %v5935_v2 = vunpack.i.l.bf16 %v5934_v37  ;;  %v3439_v40 = vpack.c.bf16 %v3407_v52, %v3406_v32 }
 0x2f6   : > { %v5066_v58 = vpop.f32.mrb[36].mxu1 }
 0x2f7   : > { %v3611_v29 = vadd.f32 %v5066_v58, %v8027_v12  ;;  %v3602_v62 = vpop.f32.mrb[37].mxu1  ;;  %v3405_v8 = vsel %vm3343_vm9, %v3340_v28, %v5936_v61  ;;  %v3404_v63 = vsel %vm3343_vm9, %v3339_v45, %v5935_v2 }
 0x2f8   : > { %v3603_v26 = vadd.f32 %v8027_v12, %v3602_v62  ;;  %v5067_v53 = vpop.f32.mrb[38].mxu1  ;;  %v3438_v48 = vpack.c.bf16 %v3405_v8, %v3404_v63 }
 0x2f9   : > { %v3614_v30 = vadd.f32 %v5067_v53, %v8027_v12  ;;  %v3605_v39 = vpop.f32.mrb[39].mxu1  ;;  %v3859_v44 = vmax.f32 %v3611_v29, 0.0 }
 0x2fa   : > { %v3606_v34 = vadd.f32 %v8027_v12, %v3605_v39  ;;  %5124 = vmatprep.mubr.msk.bf16.mxu1 %vm3467_vm10, %v3438_v48  ;;  %v3857_v17 = vmax.f32 %v3603_v26, 0.0 }
 0x2fb   : > { %v3860_v20 = vmax.f32 %v3614_v30, 0.0  ;;  %5125 = vmatmul.mubr.msk.bf16.gmra.mrb[96].mxu1 %vm3467_vm10, %v3439_v40 }
 0x2fc   : > { %v3858_v31 = vmax.f32 %v3606_v34, 0.0 }
 0x2fd   : > { %v3922_v50 = vpack.c.bf16 %v3860_v20, %v3859_v44 }
 0x2fe   : > { %v3921_v13 = vpack.c.bf16 %v3858_v31, %v3857_v17  ;;  %v5070_v14 = vpop.f32.mrb[40].mxu1 }
 0x2ff   : > { %v3627_v47 = vadd.f32 %v5070_v14, %v8027_v12  ;;  %v3618_v42 = vpop.f32.mrb[41].mxu1 }
 0x300   : > { %5130 = vmatprep.mubr.msk.bf16.mxu0 %vm2680_vm5, %v3921_v13  ;;  %v3619_v41 = vadd.f32 %v8027_v12, %v3618_v42  ;;  %v5071_v10 = vpop.f32.mrb[42].mxu1 }
 0x301   : > { %5131 = vmatmul.mubr.msk.bf16.vlgmr.msra.gmra.mrb[36].mxu0 %vm2680_vm5, %v3922_v50  ;;  %v3630_v16 = vadd.f32 %v5071_v10, %v8027_v12  ;;  %v3621_v60 = vpop.f32.mrb[43].mxu1  ;;  %v3863_v23 = vmax.f32 %v3627_v47, 0.0 }
 0x302   : > { %v3622_v24 = vadd.f32 %v8027_v12, %v3621_v60  ;;  %v3861_v21 = vmax.f32 %v3619_v41, 0.0 }
 0x303   : > { %v3864_v22 = vmax.f32 %v3630_v16, 0.0 }
 0x304   : > { %v3862_v3 = vmax.f32 %v3622_v24, 0.0 }
 0x305   : > { %v3924_v1 = vpack.c.bf16 %v3864_v22, %v3863_v23 }
 0x306   : > { %v3923_v38 = vpack.c.bf16 %v3862_v3, %v3861_v21 }
 0x308   : > { %5134 = vmatprep.mubr.msk.bf16.mxu0 %vm2680_vm5, %v3923_v38 }
 0x309   : > { %5135 = vmatmul.mubr.msk.bf16.gmra.mrb[40].mxu0 %vm2680_vm5, %v3924_v1 }
 0x30e   : > { %v5074_v57 = vpop.f32.mrb[44].mxu1 }
 0x30f   : > { %v3643_v4 = vadd.f32 %v5074_v57, %v8027_v12  ;;  %v3634_v51 = vpop.f32.mrb[45].mxu1 }
 0x310   : > { %v3635_v9 = vadd.f32 %v8027_v12, %v3634_v51  ;;  %v5075_v11 = vpop.f32.mrb[46].mxu1 }
 0x311   : > { %v3646_v0 = vadd.f32 %v5075_v11, %v8027_v12  ;;  %v3637_v49 = vpop.f32.mrb[47].mxu1  ;;  %v3867_v33 = vmax.f32 %v3643_v4, 0.0 }
 0x312   : > { %v3638_v36 = vadd.f32 %v8027_v12, %v3637_v49  ;;  %v3865_v5 = vmax.f32 %v3635_v9, 0.0 }
 0x313   : > { %v3868_v19 = vmax.f32 %v3646_v0, 0.0 }
 0x314   : > { %v3866_v56 = vmax.f32 %v3638_v36, 0.0 }
 0x315   : > { %v3926_v6 = vpack.c.bf16 %v3868_v19, %v3867_v33 }
 0x316   : > { %v3925_v25 = vpack.c.bf16 %v3866_v56, %v3865_v5 }
 0x318   : > { %5138 = vmatprep.mubr.msk.bf16.mxu0 %vm2680_vm5, %v3925_v25 }
 0x319   : > { %5139 = vmatmul.mubr.msk.bf16.gmra.mrb[44].mxu0 %vm2680_vm5, %v3926_v6 }
 0x31e   : > { %v5078_v18 = vpop.f32.mrb[48].mxu1 }
 0x31f   : > { %v3659_v54 = vadd.f32 %v5078_v18, %v8027_v12  ;;  %v3650_v27 = vpop.f32.mrb[49].mxu1 }
 0x320   : > { %v3651_v43 = vadd.f32 %v8027_v12, %v3650_v27  ;;  %v5079_v46 = vpop.f32.mrb[50].mxu1 }
 0x321   : > { %v3662_v15 = vadd.f32 %v5079_v46, %v8027_v12  ;;  %v3653_v59 = vpop.f32.mrb[51].mxu1  ;;  %v3871_v7 = vmax.f32 %v3659_v54, 0.0 }
 0x322   : > { %v3654_v35 = vadd.f32 %v8027_v12, %v3653_v59  ;;  %v3869_v55 = vmax.f32 %v3651_v43, 0.0 }
 0x323   : > { %v3872_v37 = vmax.f32 %v3662_v15, 0.0 }
 0x324   : > { %v3870_v28 = vmax.f32 %v3654_v35, 0.0 }
 0x325   : > { %v3928_v61 = vpack.c.bf16 %v3872_v37, %v3871_v7 }
 0x326   : > { %v3927_v2 = vpack.c.bf16 %v3870_v28, %v3869_v55 }
 0x328   : > { %5142 = vmatprep.mubr.msk.bf16.mxu0 %vm2680_vm5, %v3927_v2 }
 0x329   : > { %5143 = vmatmul.mubr.msk.bf16.gmra.mrb[48].mxu0 %vm2680_vm5, %v3928_v61 }
 0x32e   : > { %v5082_v58 = vpop.f32.mrb[52].mxu1 }
 0x32f   : > { %v3675_v45 = vadd.f32 %v5082_v58, %v8027_v12  ;;  %v3666_v52 = vpop.f32.mrb[53].mxu1 }
 0x330   : > { %v3667_v32 = vadd.f32 %v8027_v12, %v3666_v52  ;;  %v5083_v29 = vpop.f32.mrb[54].mxu1 }
 0x331   : > { %v3678_v62 = vadd.f32 %v5083_v29, %v8027_v12  ;;  %v3669_v8 = vpop.f32.mrb[55].mxu1  ;;  %v3875_v26 = vmax.f32 %v3675_v45, 0.0 }
 0x332   : > { %v3670_v63 = vadd.f32 %v8027_v12, %v3669_v8  ;;  %v3873_v48 = vmax.f32 %v3667_v32, 0.0 }
 0x333   : > { %v3876_v53 = vmax.f32 %v3678_v62, 0.0 }
 0x334   : > { %v3874_v30 = vmax.f32 %v3670_v63, 0.0 }
 0x335   : > { %v3930_v39 = vpack.c.bf16 %v3876_v53, %v3875_v26 }
 0x336   : > { %v3929_v40 = vpack.c.bf16 %v3874_v30, %v3873_v48 }
 0x338   : > { %5146 = vmatprep.mubr.msk.bf16.mxu0 %vm2680_vm5, %v3929_v40 }
 0x339   : > { %5147 = vmatmul.mubr.msk.bf16.gmra.mrb[52].mxu0 %vm2680_vm5, %v3930_v39 }
 0x342   : > { %v5086_v34 = vpop.f32.mrb[56].mxu1 }
 0x343   : > { %v3691_v44 = vadd.f32 %v5086_v34, %v8027_v12  ;;  %v3682_v20 = vpop.f32.mrb[57].mxu1 }
 0x344   : > { %v3683_v17 = vadd.f32 %v8027_v12, %v3682_v20  ;;  %v5087_v31 = vpop.f32.mrb[58].mxu1 }
 0x345   : > { %v3694_v50 = vadd.f32 %v5087_v31, %v8027_v12  ;;  %v3685_v13 = vpop.f32.mrb[59].mxu1  ;;  %v3879_v47 = vmax.f32 %v3691_v44, 0.0 }
 0x346   : > { %v3686_v14 = vadd.f32 %v8027_v12, %v3685_v13  ;;  %v3877_v41 = vmax.f32 %v3683_v17, 0.0 }
 0x347   : > { %v3880_v42 = vmax.f32 %v3694_v50, 0.0 }
 0x348   : > { %v3878_v10 = vmax.f32 %v3686_v14, 0.0 }
 0x349   : > { %v3932_v16 = vpack.c.bf16 %v3880_v42, %v3879_v47 }
 0x34a   : > { %v3931_v60 = vpack.c.bf16 %v3878_v10, %v3877_v41 }
 0x34c   : > { %5150 = vmatprep.mubr.msk.bf16.mxu0 %vm2680_vm5, %v3931_v60 }
 0x34d   : > { %5151 = vmatmul.mubr.msk.bf16.gmra.mrb[56].mxu0 %vm2680_vm5, %v3932_v16 }
 0x34e   : > { %v5090_v24 = vpop.f32.mrb[60].mxu1 }
 0x34f   : > { %v3707_v23 = vadd.f32 %v5090_v24, %v8027_v12  ;;  %v3698_v22 = vpop.f32.mrb[61].mxu1 }
 0x350   : > { %v3699_v21 = vadd.f32 %v8027_v12, %v3698_v22  ;;  %v5091_v3 = vpop.f32.mrb[62].mxu1 }
 0x351   : > { %v3710_v1 = vadd.f32 %v5091_v3, %v8027_v12  ;;  %v3701_v38 = vpop.f32.mrb[63].mxu1  ;;  %v3883_v4 = vmax.f32 %v3707_v23, 0.0 }
 0x352   : > { %v3702_v57 = vadd.f32 %v8027_v12, %v3701_v38  ;;  %v3881_v9 = vmax.f32 %v3699_v21, 0.0 }
 0x353   : > { %v3884_v51 = vmax.f32 %v3710_v1, 0.0 }
 0x354   : > { %v3882_v11 = vmax.f32 %v3702_v57, 0.0 }
 0x355   : > { %v3934_v0 = vpack.c.bf16 %v3884_v51, %v3883_v4 }
 0x356   : > { %v3933_v49 = vpack.c.bf16 %v3882_v11, %v3881_v9  ;;  %v5094_v36 = vpop.f32.mrb[64].mxu1 }
 0x357   : > { %v3723_v33 = vadd.f32 %v5094_v36, %v8027_v12  ;;  %v3714_v19 = vpop.f32.mrb[65].mxu1 }
 0x358   : > { %v3715_v5 = vadd.f32 %v8027_v12, %v3714_v19  ;;  %v5095_v56 = vpop.f32.mrb[66].mxu1  ;;  %5154 = vmatprep.mubr.msk.bf16.mxu0 %vm2680_vm5, %v3933_v49 }
 0x359   : > { %v3726_v6 = vadd.f32 %v5095_v56, %v8027_v12  ;;  %v3717_v25 = vpop.f32.mrb[67].mxu1  ;;  %5155 = vmatmul.mubr.msk.bf16.gmra.mrb[60].mxu0 %vm2680_vm5, %v3934_v0  ;;  %v3887_v54 = vmax.f32 %v3723_v33, 0.0 }
 0x35a   : > { %v3718_v18 = vadd.f32 %v8027_v12, %v3717_v25  ;;  %v3885_v43 = vmax.f32 %v3715_v5, 0.0 }
 0x35b   : > { %v3888_v27 = vmax.f32 %v3726_v6, 0.0 }
 0x35c   : > { %v3886_v46 = vmax.f32 %v3718_v18, 0.0 }
 0x35d   : > { %v3936_v15 = vpack.c.bf16 %v3888_v27, %v3887_v54 }
 0x35e   : > { %v3935_v59 = vpack.c.bf16 %v3886_v46, %v3885_v43  ;;  %v5098_v35 = vpop.f32.mrb[68].mxu1 }
 0x35f   : > { %v3739_v7 = vadd.f32 %v5098_v35, %v8027_v12  ;;  %v3730_v37 = vpop.f32.mrb[69].mxu1 }
 0x360   : > { %v3731_v55 = vadd.f32 %v8027_v12, %v3730_v37  ;;  %v5099_v28 = vpop.f32.mrb[70].mxu1  ;;  %5158 = vmatprep.mubr.msk.bf16.mxu0 %vm2680_vm5, %v3935_v59 }
 0x361   : > { %v3742_v61 = vadd.f32 %v5099_v28, %v8027_v12  ;;  %v3733_v2 = vpop.f32.mrb[71].mxu1  ;;  %5159 = vmatmul.mubr.msk.bf16.gmra.mrb[64].mxu0 %vm2680_vm5, %v3936_v15  ;;  %v3891_v45 = vmax.f32 %v3739_v7, 0.0 }
 0x362   : > { %v3734_v58 = vadd.f32 %v8027_v12, %v3733_v2  ;;  %v3889_v32 = vmax.f32 %v3731_v55, 0.0 }
 0x363   : > { %v3892_v52 = vmax.f32 %v3742_v61, 0.0 }
 0x364   : > { %v3890_v29 = vmax.f32 %v3734_v58, 0.0 }
 0x365   : > { %v3938_v62 = vpack.c.bf16 %v3892_v52, %v3891_v45 }
 0x366   : > { %v3937_v8 = vpack.c.bf16 %v3890_v29, %v3889_v32  ;;  %v5102_v63 = vpop.f32.mrb[72].mxu1 }
 0x367   : > { %v3755_v26 = vadd.f32 %v5102_v63, %v8027_v12  ;;  %v3746_v53 = vpop.f32.mrb[73].mxu1 }
 0x368   : > { %v3747_v48 = vadd.f32 %v8027_v12, %v3746_v53  ;;  %v5103_v30 = vpop.f32.mrb[74].mxu1  ;;  %5162 = vmatprep.mubr.msk.bf16.mxu0 %vm2680_vm5, %v3937_v8 }
 0x369   : > { %v3758_v39 = vadd.f32 %v5103_v30, %v8027_v12  ;;  %v3749_v40 = vpop.f32.mrb[75].mxu1  ;;  %5163 = vmatmul.mubr.msk.bf16.gmra.mrb[68].mxu0 %vm2680_vm5, %v3938_v62  ;;  %v3895_v44 = vmax.f32 %v3755_v26, 0.0 }
 0x36a   : > { %v3750_v34 = vadd.f32 %v8027_v12, %v3749_v40  ;;  %v3893_v17 = vmax.f32 %v3747_v48, 0.0 }
 0x36b   : > { %v3896_v20 = vmax.f32 %v3758_v39, 0.0 }
 0x36c   : > { %v3894_v31 = vmax.f32 %v3750_v34, 0.0 }
 0x36d   : > { %v3940_v50 = vpack.c.bf16 %v3896_v20, %v3895_v44 }
 0x36e   : > { %v3939_v13 = vpack.c.bf16 %v3894_v31, %v3893_v17  ;;  %v5106_v14 = vpop.f32.mrb[76].mxu1 }
 0x36f   : > { %v3771_v47 = vadd.f32 %v5106_v14, %v8027_v12  ;;  %v3762_v42 = vpop.f32.mrb[77].mxu1 }
 0x370   : > { %v3763_v41 = vadd.f32 %v8027_v12, %v3762_v42  ;;  %v5107_v10 = vpop.f32.mrb[78].mxu1  ;;  %5166 = vmatprep.mubr.msk.bf16.mxu0 %vm2680_vm5, %v3939_v13 }
 0x371   : > { %v3774_v16 = vadd.f32 %v5107_v10, %v8027_v12  ;;  %v3765_v60 = vpop.f32.mrb[79].mxu1  ;;  %5167 = vmatmul.mubr.msk.bf16.gmra.mrb[72].mxu0 %vm2680_vm5, %v3940_v50  ;;  %v3899_v23 = vmax.f32 %v3771_v47, 0.0 }
 0x372   : > { %v3766_v24 = vadd.f32 %v8027_v12, %v3765_v60  ;;  %v3897_v21 = vmax.f32 %v3763_v41, 0.0 }
 0x373   : > { %v3900_v22 = vmax.f32 %v3774_v16, 0.0 }
 0x374   : > { %v3898_v3 = vmax.f32 %v3766_v24, 0.0  ;;  %v5983_v24 = vld [vmem:[%s6218_s29 + $0x10] sm:$0xff]  }
 0x375   : > { %v3942_v1 = vpack.c.bf16 %v3900_v22, %v3899_v23  ;;  %v4349_v23 = vunpack.c.l.bf16 %v5983_v24  ;;  %v4350_v22 = vunpack.c.h.bf16 %v5983_v24 }
 0x376   : > { %v3941_v38 = vpack.c.bf16 %v3898_v3, %v3897_v21  ;;  %v5110_v57 = vpop.f32.mrb[80].mxu1  ;;  %v5984_v3 = vld [vmem:[%s6218_s29 + $0x18] sm:$0xff]  }
 0x377   : > { %v3787_v4 = vadd.f32 %v5110_v57, %v8027_v12  ;;  %v3778_v51 = vpop.f32.mrb[81].mxu1 }
 0x378   : > { %v3779_v9 = vadd.f32 %v8027_v12, %v3778_v51  ;;  %v5111_v11 = vpop.f32.mrb[82].mxu1  ;;  %5170 = vmatprep.mubr.msk.bf16.mxu0 %vm2680_vm5, %v3941_v38 }
 0x379   : > { %v3790_v0 = vadd.f32 %v5111_v11, %v8027_v12  ;;  %v3781_v49 = vpop.f32.mrb[83].mxu1  ;;  %5171 = vmatmul.mubr.msk.bf16.gmra.mrb[76].mxu0 %vm2680_vm5, %v3942_v1  ;;  %v3903_v33 = vmax.f32 %v3787_v4, 0.0  ;;  %v4351_v1 = vunpack.c.l.bf16 %v5984_v3  ;;  %v4398_v11 = vrot.slane %v4350_v22, 1 }
 0x37a   : > { %v3782_v36 = vadd.f32 %v8027_v12, %v3781_v49  ;;  %v3901_v5 = vmax.f32 %v3779_v9, 0.0  ;;  %v4397_v9 = vrot.slane %v4349_v23, 1 }
 0x37b   : > { %v3904_v19 = vmax.f32 %v3790_v0, 0.0 }
 0x37c   : > { %v3902_v56 = vmax.f32 %v3782_v36, 0.0 }
 0x37d   : > { %v3944_v6 = vpack.c.bf16 %v3904_v19, %v3903_v33  ;;  %v8143_v33 = vld [vmem:[%s8407_s8] ss:$0 sm:$0xff]  ;;  %v4399_v19 = vrot.slane %v4351_v1, 1 }
 0x37e   : > { %v3943_v25 = vpack.c.bf16 %v3902_v56, %v3901_v5  ;;  %v5114_v18 = vpop.f32.mrb[84].mxu1 }
 0x37f   : > { %v3803_v54 = vadd.f32 %v5114_v18, %v8027_v12  ;;  %v3794_v27 = vpop.f32.mrb[85].mxu1 }
 0x380   : > { %v3795_v43 = vadd.f32 %v8027_v12, %v3794_v27  ;;  %v5115_v46 = vpop.f32.mrb[86].mxu1  ;;  %5174 = vmatprep.mubr.msk.bf16.mxu0 %vm2680_vm5, %v3943_v25 }
 0x381   : > { %v3806_v15 = vadd.f32 %v5115_v46, %v8027_v12  ;;  %v3797_v59 = vpop.f32.mrb[87].mxu1  ;;  %5175 = vmatmul.mubr.msk.bf16.gmra.mrb[80].mxu0 %vm2680_vm5, %v3944_v6  ;;  %v3907_v7 = vmax.f32 %v3803_v54, 0.0 }
 0x382   : > { %v3798_v35 = vadd.f32 %v8027_v12, %v3797_v59  ;;  %v3905_v55 = vmax.f32 %v3795_v43, 0.0  ;;  %v4476_v43 = vsel %vm1886_vm4, %v4397_v9, %v4398_v11  ;;  %v5985_v59 = vld [vmem:[%s6218_s29 + $0x20] sm:$0xff]  }
 0x383   : > { %v3908_v37 = vmax.f32 %v3806_v15, 0.0 }
 0x384   : > { %v3906_v28 = vmax.f32 %v3798_v35, 0.0  ;;  %v4352_v35 = vunpack.c.l.bf16 %v5985_v59 }
 0x385   : > { %v3946_v61 = vpack.c.bf16 %v3908_v37, %v3907_v7  ;;  %v4353_v7 = vunpack.c.h.bf16 %v5985_v59 }
 0x386   : > { %v3945_v2 = vpack.c.bf16 %v3906_v28, %v3905_v55  ;;  %v5118_v58 = vpop.f32.mrb[88].mxu1  ;;  %v4475_v28 = vsel %vm1886_vm4, %v4398_v11, %v4399_v19  ;;  %v5990_v19 = vld [vmem:[%s6218_s29 + $0x48] sm:$0xff]  }
 0x387   : > { %v3819_v45 = vadd.f32 %v5118_v58, %v8027_v12  ;;  %v3810_v52 = vpop.f32.mrb[89].mxu1  ;;  %v5986_v58 = vld [vmem:[%s6218_s29 + $0x28] sm:$0xff]  }
 0x388   : > { %v3811_v32 = vadd.f32 %v8027_v12, %v3810_v52  ;;  %v5119_v29 = vpop.f32.mrb[90].mxu1  ;;  %5178 = vmatprep.mubr.msk.bf16.mxu0 %vm2680_vm5, %v3945_v2 }
 0x389   : > { %v3822_v62 = vadd.f32 %v5119_v29, %v8027_v12  ;;  %v3813_v8 = vpop.f32.mrb[91].mxu1  ;;  %5179 = vmatmul.mubr.msk.bf16.gmra.mrb[84].mxu0 %vm2680_vm5, %v3946_v61  ;;  %v3911_v26 = vmax.f32 %v3819_v45, 0.0  ;;  %v4354_v45 = vunpack.c.l.bf16 %v5986_v58  ;;  %v4400_v29 = vrot.slane %v4352_v35, 1 }
 0x38a   : > { %v3814_v63 = vadd.f32 %v8027_v12, %v3813_v8  ;;  %v3909_v48 = vmax.f32 %v3811_v32, 0.0 }
 0x38b   : > { %v3912_v53 = vmax.f32 %v3822_v62, 0.0  ;;  %v4401_v62 = vrot.slane %v4353_v7, 1 }
 0x38c   : > { %v3910_v30 = vmax.f32 %v3814_v63, 0.0  ;;  %v4402_v63 = vrot.slane %v4354_v45, 1  ;;  %v5992_v45 = vld [vmem:[%s6218_s29 + $0x58] sm:$0xff]  }
 0x38d   : > { %v3948_v39 = vpack.c.bf16 %v3912_v53, %v3911_v26 }
 0x38e   : > { %v3947_v40 = vpack.c.bf16 %v3910_v30, %v3909_v48  ;;  %v5122_v34 = vpop.f32.mrb[92].mxu1  ;;  %v4474_v48 = vsel %vm1886_vm4, %v4400_v29, %v4401_v62 }
 0x38f   : > { %v3835_v44 = vadd.f32 %v5122_v34, %v8027_v12  ;;  %v3826_v20 = vpop.f32.mrb[93].mxu1  ;;  %v4473_v34 = vsel %vm1886_vm4, %v4401_v62, %v4402_v63 }
 0x390   : > { %v3827_v17 = vadd.f32 %v8027_v12, %v3826_v20  ;;  %v5123_v31 = vpop.f32.mrb[94].mxu1  ;;  %5182 = vmatprep.mubr.msk.bf16.mxu0 %vm2680_vm5, %v3947_v40 }
 0x391   : > { %v3838_v50 = vadd.f32 %v5123_v31, %v8027_v12  ;;  %v3829_v13 = vpop.f32.mrb[95].mxu1  ;;  %5183 = vmatmul.mubr.msk.bf16.gmra.mrb[88].mxu0 %vm2680_vm5, %v3948_v39  ;;  %v3915_v47 = vmax.f32 %v3835_v44, 0.0 }
 0x392   : > { %v3830_v14 = vadd.f32 %v8027_v12, %v3829_v13  ;;  %v3913_v41 = vmax.f32 %v3827_v17, 0.0  ;;  %v5987_v13 = vld [vmem:[%s6218_s29 + $0x30] sm:$0xff]  }
 0x393   : > { %v3916_v42 = vmax.f32 %v3838_v50, 0.0 }
 0x394   : > { %v3914_v10 = vmax.f32 %v3830_v14, 0.0  ;;  %v4355_v14 = vunpack.c.l.bf16 %v5987_v13 }
 0x395   : > { %v3950_v16 = vpack.c.bf16 %v3916_v42, %v3915_v47  ;;  %v4356_v47 = vunpack.c.h.bf16 %v5987_v13  ;;  %v5988_v42 = vld [vmem:[%s6218_s29 + $0x38] sm:$0xff]  }
 0x396   : > { %v3949_v60 = vpack.c.bf16 %v3914_v10, %v3913_v41  ;;  %v4357_v41 = vunpack.c.l.bf16 %v5988_v42  ;;  %v4403_v10 = vrot.slane %v4355_v14, 1  ;;  %v5994_v14 = vld [vmem:[%s6218_s29 + $0x68] sm:$0xff]  }
 0x398   : > { %5186 = vmatprep.mubr.msk.bf16.mxu0 %vm2680_vm5, %v3949_v60  ;;  %v4405_v60 = vrot.slane %v4357_v41, 1 }
 0x399   : > { %5187 = vmatmul.mubr.msk.bf16.gmra.mrb[92].mxu0 %vm2680_vm5, %v3950_v16  ;;  %v4404_v16 = vrot.slane %v4356_v47, 1  ;;  %v4366_v47 = vunpack.c.l.bf16 %v5994_v14 }
 0x39b   : > { %v4472_v22 = vsel %vm1886_vm4, %v4403_v10, %v4404_v16  ;;  %v4414_v10 = vrot.slane %v4366_v47, 1 }
 0x3ce   : > { %v5126_v21 = vpop.f32.mrb[96].mxu1 }
 0x3cf   : > { %v3851_v38 = vadd.f32 %v5126_v21, %v8027_v12  ;;  %v3842_v57 = vpop.f32.mrb[97].mxu1 }
 0x3d0   : > { %v3843_v4 = vadd.f32 %v8027_v12, %v3842_v57  ;;  %v5127_v51 = vpop.f32.mrb[98].mxu1 }
 0x3d1   : > { %v3854_v0 = vadd.f32 %v5127_v51, %v8027_v12  ;;  %v3845_v49 = vpop.f32.mrb[99].mxu1  ;;  %v3919_v5 = vmax.f32 %v3851_v38, 0.0  ;;  %v4471_v38 = vsel %vm1886_vm4, %v4404_v16, %v4405_v60 }
 0x3d2   : > { %v3846_v36 = vadd.f32 %v8027_v12, %v3845_v49  ;;  %v3917_v25 = vmax.f32 %v3843_v4, 0.0 }
 0x3d3   : > { %v3920_v56 = vmax.f32 %v3854_v0, 0.0  ;;  %v5989_v0 = vld [vmem:[%s6218_s29 + $0x40] sm:$0xff]  }
 0x3d4   : > { %v5132_v6 = vpop.f32.mrb[36].mxu0  ;;  %v3918_v18 = vmax.f32 %v3846_v36, 0.0  ;;  %v4358_v49 = vunpack.c.l.bf16 %v5989_v0  ;;  %v4359_v36 = vunpack.c.h.bf16 %v5989_v0 }
 0x3d5   : > { %v4094_v54 = vpop.f32.mrb[37].mxu0  ;;  %v3952_v46 = vpack.c.bf16 %v3920_v56, %v3919_v5  ;;  %v4360_v5 = vunpack.c.l.bf16 %v5990_v19 }
 0x3d6   : > { %v4095_v12 = vadd.f32 %v8143_v33, %v4094_v54  ;;  %v5133_v15 = vpop.f32.mrb[38].mxu0  ;;  %v3951_v37 = vpack.c.bf16 %v3918_v18, %v3917_v25  ;;  %v4406_v56 = vrot.slane %v4358_v49, 1  ;;  %v4407_v6 = vrot.slane %v4359_v36, 1 }
 0x3d7   : > { %v4097_v55 = vpop.f32.mrb[39].mxu0  ;;  %v4408_v25 = vrot.slane %v4360_v5, 1 }
 0x3d8   : > { %v4477_v61 = vadd.f32 %v4476_v43, %v4095_v12  ;;  %v4098_v2 = vadd.f32 %v8143_v33, %v4097_v55  ;;  %5190 = vmatprep.mubr.msk.bf16.mxu0 %vm2680_vm5, %v3951_v37  ;;  %v4470_v43 = vsel %vm1886_vm4, %v4406_v56, %v4407_v6 }
 0x3d9   : > { %5191 = vmatmul.mubr.msk.bf16.gmra.mrb[96].mxu0 %vm2680_vm5, %v3952_v46  ;;  %v4469_v59 = vsel %vm1886_vm4, %v4407_v6, %v4408_v25 }
 0x3da   : > { %v4509_v52 = vmax.f32 %v4477_v61, 0.0  ;;  %v4478_v32 = vadd.f32 %v4475_v28, %v4098_v2  ;;  %v5991_v61 = vld [vmem:[%s6218_s29 + $0x50] sm:$0xff]  }
 0x3db   : > { %v4361_v2 = vunpack.c.l.bf16 %v5991_v61  ;;  %v4362_v58 = vunpack.c.h.bf16 %v5991_v61 }
 0x3dc   : > { %4541 = vst.msk [vmem:[%s8157_s23] sm:$0xff] %vm734_vm0, %v4509_v52  ;;  %v4510_v8 = vmax.f32 %v4478_v32, 0.0  ;;  %v5136_v26 = vpop.f32.mrb[40].mxu0  ;;  %v4363_v52 = vunpack.c.l.bf16 %v5992_v45 }
 0x3dd   : > { %v4108_v53 = vpop.f32.mrb[41].mxu0  ;;  %v4409_v32 = vrot.slane %v4361_v2, 1  ;;  %v4410_v29 = vrot.slane %v4362_v58, 1 }
 0x3de   : > { %4542 = vst.msk [vmem:[%s8157_s23 + $0x8] sm:$0xff] %vm734_vm0, %v4510_v8  ;;  %v4109_v30 = vadd.f32 %v8143_v33, %v4108_v53  ;;  %v5137_v39 = vpop.f32.mrb[42].mxu0  ;;  %v4411_v62 = vrot.slane %v4363_v52, 1 }
 0x3df   : > { %v4111_v40 = vpop.f32.mrb[43].mxu0  ;;  %v4468_v26 = vsel %vm1886_vm4, %v4409_v32, %v4410_v29 }
 0x3e0   : > { %v4479_v44 = vadd.f32 %v4474_v48, %v4109_v30  ;;  %v4112_v20 = vadd.f32 %v8143_v33, %v4111_v40  ;;  %v4467_v39 = vsel %vm1886_vm4, %v4410_v29, %v4411_v62 }
 0x3e2   : > { %v4511_v17 = vmax.f32 %v4479_v44, 0.0  ;;  %v4480_v31 = vadd.f32 %v4473_v34, %v4112_v20 }
 0x3e4   : > { %4543 = vst.msk [vmem:[%s8157_s23 + $0x10] sm:$0xff] %vm734_vm0, %v4511_v17  ;;  %v4512_v50 = vmax.f32 %v4480_v31, 0.0  ;;  %v5993_v31 = vld [vmem:[%s6218_s29 + $0x60] sm:$0xff]  }
 0x3e5   : > { %v4365_v13 = vunpack.c.h.bf16 %v5993_v31 }
 0x3e6   : > { %4544 = vst.msk [vmem:[%s8157_s23 + $0x18] sm:$0xff] %vm734_vm0, %v4512_v50  ;;  %v4364_v50 = vunpack.c.l.bf16 %v5993_v31 }
 0x3e7   : > { %v4413_v41 = vrot.slane %v4365_v13, 1 }
 0x3e8   : > { %v4412_v42 = vrot.slane %v4364_v50, 1 }
 0x3ec   : > { %v5140_v24 = vpop.f32.mrb[44].mxu0 }
 0x3ed   : > { %v4122_v23 = vpop.f32.mrb[45].mxu0  ;;  %v4466_v24 = vsel %vm1886_vm4, %v4412_v42, %v4413_v41 }
 0x3ee   : > { %v4123_v21 = vadd.f32 %v8143_v33, %v4122_v23  ;;  %v5141_v3 = vpop.f32.mrb[46].mxu0 }
 0x3ef   : > { %v4125_v1 = vpop.f32.mrb[47].mxu0  ;;  %v4465_v3 = vsel %vm1886_vm4, %v4413_v41, %v4414_v10 }
 0x3f0   : > { %v4481_v57 = vadd.f32 %v4472_v22, %v4123_v21  ;;  %v4126_v4 = vadd.f32 %v8143_v33, %v4125_v1  ;;  %v5995_v1 = vld [vmem:[%s6218_s29 + $0x70] sm:$0xff]  }
 0x3f2   : > { %v4513_v51 = vmax.f32 %v4481_v57, 0.0  ;;  %v4482_v9 = vadd.f32 %v4471_v38, %v4126_v4  ;;  %v4367_v38 = vunpack.c.l.bf16 %v5995_v1  ;;  %v4368_v57 = vunpack.c.h.bf16 %v5995_v1 }
 0x3f4   : > { %4545 = vst.msk [vmem:[%s8157_s23 + $0x20] sm:$0xff] %vm734_vm0, %v4513_v51  ;;  %v4514_v11 = vmax.f32 %v4482_v9, 0.0  ;;  %v5996_v9 = vld [vmem:[%s6218_s29 + $0x78] sm:$0xff]   ;;  %v4415_v36 = vrot.slane %v4367_v38, 1  ;;  %v4416_v19 = vrot.slane %v4368_v57, 1  ;;  %v6002_v38 = vld [vmem:[%s6218_s29 + $0xa8] sm:$0xff]  }
 0x3f5   : > { %v4378_v57 = vunpack.c.l.bf16 %v6002_v38 }
 0x3f6   : > { %4546 = vst.msk [vmem:[%s8157_s23 + $0x28] sm:$0xff] %vm734_vm0, %v4514_v11  ;;  %v4369_v11 = vunpack.c.l.bf16 %v5996_v9 }
 0x3f8   : > { %v4417_v56 = vrot.slane %v4369_v11, 1 }
 0x3fc   : > { %v5144_v18 = vpop.f32.mrb[48].mxu0 }
 0x3fd   : > { %v4136_v54 = vpop.f32.mrb[49].mxu0  ;;  %v4464_v18 = vsel %vm1886_vm4, %v4415_v36, %v4416_v19  ;;  %v4426_v36 = vrot.slane %v4378_v57, 1 }
 0x3fe   : > { %v4137_v46 = vadd.f32 %v8143_v33, %v4136_v54  ;;  %v5145_v12 = vpop.f32.mrb[50].mxu0  ;;  %v5997_v54 = vld [vmem:[%s6218_s29 + $0x80] sm:$0xff]  }
 0x3ff   : > { %v4139_v15 = vpop.f32.mrb[51].mxu0 }
 0x400   : > { %v4483_v35 = vadd.f32 %v4470_v43, %v4137_v46  ;;  %v4140_v7 = vadd.f32 %v8143_v33, %v4139_v15  ;;  %v4370_v43 = vunpack.c.l.bf16 %v5997_v54  ;;  %v4371_v46 = vunpack.c.h.bf16 %v5997_v54 }
 0x402   : > { %v4515_v37 = vmax.f32 %v4483_v35, 0.0  ;;  %v4484_v55 = vadd.f32 %v4469_v59, %v4140_v7  ;;  %v4463_v35 = vsel %vm1886_vm4, %v4416_v19, %v4417_v56  ;;  %v5998_v7 = vld [vmem:[%s6218_s29 + $0x88] sm:$0xff]   ;;  %v4418_v61 = vrot.slane %v4370_v43, 1 }
 0x403   : > { %v4419_v2 = vrot.slane %v4371_v46, 1 }
 0x404   : > { %4547 = vst.msk [vmem:[%s8157_s23 + $0x30] sm:$0xff] %vm734_vm0, %v4515_v37  ;;  %v4516_v28 = vmax.f32 %v4484_v55, 0.0  ;;  %v4372_v37 = vunpack.c.l.bf16 %v5998_v7 }
 0x406   : > { %4548 = vst.msk [vmem:[%s8157_s23 + $0x38] sm:$0xff] %vm734_vm0, %v4516_v28  ;;  %v4420_v52 = vrot.slane %v4372_v37, 1 }
 0x40c   : > { %v5148_v8 = vpop.f32.mrb[52].mxu0 }
 0x40d   : > { %v4150_v63 = vpop.f32.mrb[53].mxu0  ;;  %v4462_v8 = vsel %vm1886_vm4, %v4418_v61, %v4419_v2 }
 0x40e   : > { %v4151_v53 = vadd.f32 %v8143_v33, %v4150_v63  ;;  %v5149_v48 = vpop.f32.mrb[54].mxu0  ;;  %v5999_v63 = vld [vmem:[%s6218_s29 + $0x90] sm:$0xff]  }
 0x40f   : > { %v4153_v30 = vpop.f32.mrb[55].mxu0 }
 0x410   : > { %v4485_v40 = vadd.f32 %v4468_v26, %v4151_v53  ;;  %v4154_v34 = vadd.f32 %v8143_v33, %v4153_v30  ;;  %v4373_v26 = vunpack.c.l.bf16 %v5999_v63  ;;  %v4374_v53 = vunpack.c.h.bf16 %v5999_v63 }
 0x412   : > { %v4517_v44 = vmax.f32 %v4485_v40, 0.0  ;;  %v4486_v20 = vadd.f32 %v4467_v39, %v4154_v34  ;;  %v4461_v40 = vsel %vm1886_vm4, %v4419_v2, %v4420_v52  ;;  %v6000_v34 = vld [vmem:[%s6218_s29 + $0x98] sm:$0xff]   ;;  %v4421_v31 = vrot.slane %v4373_v26, 1 }
 0x413   : > { %v4422_v50 = vrot.slane %v4374_v53, 1 }
 0x414   : > { %4549 = vst.msk [vmem:[%s8157_s23 + $0x40] sm:$0xff] %vm734_vm0, %v4517_v44  ;;  %v4518_v17 = vmax.f32 %v4486_v20, 0.0  ;;  %v4375_v44 = vunpack.c.l.bf16 %v6000_v34 }
 0x416   : > { %4550 = vst.msk [vmem:[%s8157_s23 + $0x48] sm:$0xff] %vm734_vm0, %v4518_v17  ;;  %v4423_v47 = vrot.slane %v4375_v44, 1 }
 0x418   : > { %v4459_v1 = vsel %vm1886_vm4, %v4422_v50, %v4423_v47 }
 0x420   : > { %v5152_v16 = vpop.f32.mrb[56].mxu0 }
 0x421   : > { %v4164_v60 = vpop.f32.mrb[57].mxu0  ;;  %v4460_v16 = vsel %vm1886_vm4, %v4421_v31, %v4422_v50 }
 0x422   : > { %v4165_v23 = vadd.f32 %v8143_v33, %v4164_v60  ;;  %v5153_v22 = vpop.f32.mrb[58].mxu0  ;;  %v6001_v60 = vld [vmem:[%s6218_s29 + $0xa0] sm:$0xff]  }
 0x423   : > { %v4167_v21 = vpop.f32.mrb[59].mxu0 }
 0x424   : > { %v4487_v4 = vadd.f32 %v4466_v24, %v4165_v23  ;;  %v4168_v51 = vadd.f32 %v8143_v33, %v4167_v21  ;;  %v4376_v24 = vunpack.c.l.bf16 %v6001_v60  ;;  %v4377_v23 = vunpack.c.h.bf16 %v6001_v60 }
 0x426   : > { %v4519_v0 = vmax.f32 %v4487_v4, 0.0  ;;  %v4488_v49 = vadd.f32 %v4465_v3, %v4168_v51  ;;  %v4424_v9 = vrot.slane %v4376_v24, 1  ;;  %v4425_v11 = vrot.slane %v4377_v23, 1 }
 0x428   : > { %4551 = vst.msk [vmem:[%s8157_s23 + $0x50] sm:$0xff] %vm734_vm0, %v4519_v0  ;;  %v4520_v5 = vmax.f32 %v4488_v49, 0.0 }
 0x42a   : > { %4552 = vst.msk [vmem:[%s8157_s23 + $0x58] sm:$0xff] %vm734_vm0, %v4520_v5 }
 0x42c   : > { %v5156_v6 = vpop.f32.mrb[60].mxu0 }
 0x42d   : > { %v4178_v25 = vpop.f32.mrb[61].mxu0  ;;  %v4458_v6 = vsel %vm1886_vm4, %v4424_v9, %v4425_v11 }
 0x42e   : > { %v4179_v12 = vadd.f32 %v8143_v33, %v4178_v25  ;;  %v5157_v15 = vpop.f32.mrb[62].mxu0  ;;  %v6003_v25 = vld [vmem:[%s6218_s29 + $0xb0] sm:$0xff]  }
 0x42f   : > { %v4181_v59 = vpop.f32.mrb[63].mxu0  ;;  %v4380_v54 = vunpack.c.h.bf16 %v6003_v25  ;;  %v4457_v15 = vsel %vm1886_vm4, %v4425_v11, %v4426_v36 }
 0x430   : > { %v4489_v55 = vadd.f32 %v4464_v18, %v4179_v12  ;;  %v4182_v28 = vadd.f32 %v8143_v33, %v4181_v59  ;;  %v4379_v18 = vunpack.c.l.bf16 %v6003_v25  ;;  %v6004_v59 = vld [vmem:[%s6218_s29 + $0xb8] sm:$0xff]  }
 0x432   : > { %v4521_v58 = vmax.f32 %v4489_v55, 0.0  ;;  %v4490_v45 = vadd.f32 %v4463_v35, %v4182_v28  ;;  %v4381_v35 = vunpack.c.l.bf16 %v6004_v59  ;;  %v4427_v55 = vrot.slane %v4379_v18, 1 }
 0x433   : > { %v4428_v28 = vrot.slane %v4380_v54, 1 }
 0x434   : > { %4553 = vst.msk [vmem:[%s8157_s23 + $0x60] sm:$0xff] %vm734_vm0, %v4521_v58  ;;  %v4522_v32 = vmax.f32 %v4490_v45, 0.0  ;;  %v5160_v29 = vpop.f32.mrb[64].mxu0  ;;  %v4429_v58 = vrot.slane %v4381_v35, 1 }
 0x435   : > { %v4192_v62 = vpop.f32.mrb[65].mxu0  ;;  %v4456_v29 = vsel %vm1886_vm4, %v4427_v55, %v4428_v28 }
 0x436   : > { %4554 = vst.msk [vmem:[%s8157_s23 + $0x68] sm:$0xff] %vm734_vm0, %v4522_v32  ;;  %v4193_v48 = vadd.f32 %v8143_v33, %v4192_v62  ;;  %v5161_v30 = vpop.f32.mrb[66].mxu0  ;;  %v6005_v62 = vld [vmem:[%s6218_s29 + $0xc0] sm:$0xff]  }
 0x437   : > { %v4195_v39 = vpop.f32.mrb[67].mxu0  ;;  %v4383_v63 = vunpack.c.h.bf16 %v6005_v62  ;;  %v4455_v30 = vsel %vm1886_vm4, %v4428_v28, %v4429_v58 }
 0x438   : > { %v4491_v20 = vadd.f32 %v4462_v8, %v4193_v48  ;;  %v4196_v17 = vadd.f32 %v8143_v33, %v4195_v39  ;;  %v4382_v8 = vunpack.c.l.bf16 %v6005_v62  ;;  %v6006_v39 = vld [vmem:[%s6218_s29 + $0xc8] sm:$0xff]  }
 0x43a   : > { %v4523_v13 = vmax.f32 %v4491_v20, 0.0  ;;  %v4492_v14 = vadd.f32 %v4461_v40, %v4196_v17  ;;  %v4384_v40 = vunpack.c.l.bf16 %v6006_v39  ;;  %v4430_v20 = vrot.slane %v4382_v8, 1 }
 0x43b   : > { %v4431_v17 = vrot.slane %v4383_v63, 1 }
 0x43c   : > { %4555 = vst.msk [vmem:[%s8157_s23 + $0x70] sm:$0xff] %vm734_vm0, %v4523_v13  ;;  %v4524_v42 = vmax.f32 %v4492_v14, 0.0  ;;  %v5164_v41 = vpop.f32.mrb[68].mxu0  ;;  %v4432_v13 = vrot.slane %v4384_v40, 1 }
 0x43d   : > { %v4206_v10 = vpop.f32.mrb[69].mxu0  ;;  %v4454_v41 = vsel %vm1886_vm4, %v4430_v20, %v4431_v17 }
 0x43e   : > { %4556 = vst.msk [vmem:[%s8157_s23 + $0x78] sm:$0xff] %vm734_vm0, %v4524_v42  ;;  %v4207_v22 = vadd.f32 %v8143_v33, %v4206_v10  ;;  %v5165_v21 = vpop.f32.mrb[70].mxu0  ;;  %v6007_v10 = vld [vmem:[%s6218_s29 + $0xd0] sm:$0xff]  }
 0x43f   : > { %v4209_v3 = vpop.f32.mrb[71].mxu0  ;;  %v4386_v60 = vunpack.c.h.bf16 %v6007_v10  ;;  %v4453_v21 = vsel %vm1886_vm4, %v4431_v17, %v4432_v13 }
 0x440   : > { %v4493_v4 = vadd.f32 %v4460_v16, %v4207_v22  ;;  %v4210_v51 = vadd.f32 %v8143_v33, %v4209_v3  ;;  %v4385_v16 = vunpack.c.l.bf16 %v6007_v10  ;;  %v6008_v3 = vld [vmem:[%s6218_s29 + $0xd8] sm:$0xff]  }
 0x442   : > { %v4525_v0 = vmax.f32 %v4493_v4, 0.0  ;;  %v4494_v49 = vadd.f32 %v4459_v1, %v4210_v51  ;;  %v4387_v1 = vunpack.c.l.bf16 %v6008_v3  ;;  %v4433_v4 = vrot.slane %v4385_v16, 1  ;;  %v6013_v3 = vld [vmem:[%s6261_s20] sm:$0xff]  }
 0x443   : > { %v4434_v51 = vrot.slane %v4386_v60, 1 }
 0x444   : > { %4557 = vst.msk [vmem:[%s8157_s23 + $0x80] sm:$0xff] %vm734_vm0, %v4525_v0  ;;  %v4526_v19 = vmax.f32 %v4494_v49, 0.0  ;;  %v5168_v5 = vpop.f32.mrb[72].mxu0  ;;  %v4435_v0 = vrot.slane %v4387_v1, 1  ;;  %v4394_v1 = vunpack.c.l.bf16 %v6013_v3 }
 0x445   : > { %v4220_v56 = vpop.f32.mrb[73].mxu0  ;;  %v4452_v5 = vsel %vm1886_vm4, %v4433_v4, %v4434_v51 }
 0x446   : > { %4558 = vst.msk [vmem:[%s8157_s23 + $0x88] sm:$0xff] %vm734_vm0, %v4526_v19  ;;  %v4221_v43 = vadd.f32 %v8143_v33, %v4220_v56  ;;  %v5169_v46 = vpop.f32.mrb[74].mxu0  ;;  %v6009_v56 = vld [vmem:[%s6218_s29 + $0xe0] sm:$0xff]  }
 0x447   : > { %v4223_v12 = vpop.f32.mrb[75].mxu0  ;;  %v4389_v25 = vunpack.c.h.bf16 %v6009_v56  ;;  %v4451_v46 = vsel %vm1886_vm4, %v4434_v51, %v4435_v0  ;;  %v4442_v51 = vrot.slane %v4394_v1, 1 }
 0x448   : > { %v4495_v7 = vadd.f32 %v4458_v6, %v4221_v43  ;;  %v4224_v37 = vadd.f32 %v8143_v33, %v4223_v12  ;;  %v4388_v6 = vunpack.c.l.bf16 %v6009_v56  ;;  %v6010_v12 = vld [vmem:[%s6218_s29 + $0xe8] sm:$0xff]  }
 0x44a   : > { %v4527_v61 = vmax.f32 %v4495_v7, 0.0  ;;  %v4496_v2 = vadd.f32 %v4457_v15, %v4224_v37  ;;  %v4390_v15 = vunpack.c.l.bf16 %v6010_v12  ;;  %v4436_v7 = vrot.slane %v4388_v6, 1 }
 0x44b   : > { %v4437_v37 = vrot.slane %v4389_v25, 1 }
 0x44c   : > { %4559 = vst.msk [vmem:[%s8157_s23 + $0x90] sm:$0xff] %vm734_vm0, %v4527_v61  ;;  %v4528_v45 = vmax.f32 %v4496_v2, 0.0  ;;  %v5172_v52 = vpop.f32.mrb[76].mxu0  ;;  %v4438_v61 = vrot.slane %v4390_v15, 1 }
 0x44d   : > { %v4234_v32 = vpop.f32.mrb[77].mxu0  ;;  %v4450_v52 = vsel %vm1886_vm4, %v4436_v7, %v4437_v37 }
 0x44e   : > { %4560 = vst.msk [vmem:[%s8157_s23 + $0x98] sm:$0xff] %vm734_vm0, %v4528_v45  ;;  %v4235_v26 = vadd.f32 %v8143_v33, %v4234_v32  ;;  %v5173_v53 = vpop.f32.mrb[78].mxu0  ;;  %v6011_v32 = vld [vmem:[%s6218_s29 + $0xf0] sm:$0xff]  }
 0x44f   : > { %v4237_v48 = vpop.f32.mrb[79].mxu0  ;;  %v4392_v62 = vunpack.c.h.bf16 %v6011_v32  ;;  %v4449_v53 = vsel %vm1886_vm4, %v4437_v37, %v4438_v61 }
 0x450   : > { %v4497_v34 = vadd.f32 %v4456_v29, %v4235_v26  ;;  %v4238_v44 = vadd.f32 %v8143_v33, %v4237_v48  ;;  %v4391_v29 = vunpack.c.l.bf16 %v6011_v32  ;;  %v6012_v48 = vld [vmem:[%s6218_s29 + $0xf8] sm:$0xff]   ;;  %s4875_s29 = sshll.u32 %s6085_s12, 12  ;;  %s8352_s12 = scalar_lea.sflag [#allocation3], %s440_s27 }
 0x451   : > { %s8342_s25 = scalar_lea.hbm %s8408_s9, %s4875_s29  ;;  %s6021_s29 = scalar_lea.vmem %s6020_s26, 8192 }
 0x452   : > { %v4529_v31 = vmax.f32 %v4497_v34, 0.0  ;;  %v4498_v50 = vadd.f32 %v4455_v30, %v4238_v44  ;;  %v4393_v30 = vunpack.c.l.bf16 %v6012_v48  ;;  %v4439_v34 = vrot.slane %v4391_v29, 1 }
 0x453   : > { %v4440_v44 = vrot.slane %v4392_v62, 1 }
 0x454   : > { %4561 = vst.msk [vmem:[%s8157_s23 + $0xa0] sm:$0xff] %vm734_vm0, %v4529_v31  ;;  %v4530_v14 = vmax.f32 %v4498_v50, 0.0  ;;  %v5176_v47 = vpop.f32.mrb[80].mxu0  ;;  %v4441_v31 = vrot.slane %v4393_v30, 1 }
 0x455   : > { %v4248_v42 = vpop.f32.mrb[81].mxu0  ;;  %v4448_v47 = vsel %vm1886_vm4, %v4439_v34, %v4440_v44 }
 0x456   : > { %4562 = vst.msk [vmem:[%s8157_s23 + $0xa8] sm:$0xff] %vm734_vm0, %v4530_v14  ;;  %v4249_v24 = vadd.f32 %v8143_v33, %v4248_v42  ;;  %v5177_v23 = vpop.f32.mrb[82].mxu0  ;;  %v4447_v16 = vsel %vm1886_vm4, %v4440_v44, %v4441_v31 }
 0x457   : > { %v4251_v22 = vpop.f32.mrb[83].mxu0 }
 0x458   : > { %v4499_v38 = vadd.f32 %v4454_v41, %v4249_v24  ;;  %v4252_v57 = vadd.f32 %v8143_v33, %v4251_v22 }
 0x45a   : > { %v4531_v9 = vmax.f32 %v4499_v38, 0.0  ;;  %v4500_v11 = vadd.f32 %v4453_v21, %v4252_v57  ;;  %v4395_v38 = vunpack.c.h.bf16 %v6013_v3  ;;  %v6014_v57 = vld [vmem:[%s6261_s20 + $0x8] sm:$0xff]   ;;  %s4590_s20 = sshll.u32 %s8157_s23, 4  ;;  %s8346_s20 = int_to_ptr.vmem [resolvable:$true] %s4590_s20 }
 0x45b   : > { %v4396_v4 = vunpack.c.l.bf16 %v6014_v57  ;;  %s6015_s28 = scalar_lea.vmem %s8346_s20, 4096  ;;  %p6022_p1 = scmp.lt.s32.totalorder %s8346_s20, %s6020_s26 }
 0x45c   : > { %4563 = vst.msk [vmem:[%s8157_s23 + $0xb0] sm:$0xff] %vm734_vm0, %v4531_v9  ;;  %v4532_v49 = vmax.f32 %v4500_v11, 0.0  ;;  %v5180_v36 = vpop.f32.mrb[84].mxu0  ;;  %v4443_v9 = vrot.slane %v4395_v38, 1  ;;  %p6016_p12 = scmp.ne.s32.totalorder %s8346_s20, %s6015_s28  ;;  %p6023_p2 = scmp.lt.s32.totalorder %s6021_s29, %s6015_s28 }
 0x45d   : > { %v4262_v19 = vpop.f32.mrb[85].mxu0  ;;  %v4444_v11 = vrot.slane %v4396_v4, 1 }
 0x45e   : > { %4564 = vst.msk [vmem:[%s8157_s23 + $0xb8] sm:$0xff] %vm734_vm0, %v4532_v49  ;;  %v4263_v18 = vadd.f32 %v8143_v33, %v4262_v19  ;;  %v5181_v54 = vpop.f32.mrb[86].mxu0  ;;  %v4446_v36 = vsel %vm1886_vm4, %v4442_v51, %v4443_v9  ;;  %p6017_p13 = pnand %p6016_p12, %p6192_p4  ;;  %p6024_p3 = por %p6023_p2, %p6022_p1 }
 0x45f   : > { %v4265_v43 = vpop.f32.mrb[87].mxu0  ;;  %v4445_v6 = vsel %vm1886_vm4, %v4443_v9, %v4444_v11 }
 0x460   : > { %v4501_v59 = vadd.f32 %v4452_v5, %v4263_v18  ;;  %v4266_v35 = vadd.f32 %v8143_v33, %v4265_v43  ;;  %p6018_p0 = pneg %p6017_p13 }
 0x462   : > { %v4533_v55 = vmax.f32 %v4501_v59, 0.0  ;;  %v4502_v28 = vadd.f32 %v4451_v46, %v4266_v35  ;;  %p6025_p5 = pnand %p6024_p3, %p6018_p0 }
 0x464   : > { %4565 = vst.msk [vmem:[%s8157_s23 + $0xc0] sm:$0xff] %vm734_vm0, %v4533_v55  ;;  %v4534_v2 = vmax.f32 %v4502_v28, 0.0  ;;  %v5184_v58 = vpop.f32.mrb[88].mxu0 }
 0x465   : > { %v4276_v45 = vpop.f32.mrb[89].mxu0 }
 0x466   : > { %4566 = vst.msk [vmem:[%s8157_s23 + $0xc8] sm:$0xff] %vm734_vm0, %v4534_v2  ;;  %v4277_v8 = vadd.f32 %v8143_v33, %v4276_v45  ;;  %v5185_v63 = vpop.f32.mrb[90].mxu0 }
 0x467   : > { %v4279_v26 = vpop.f32.mrb[91].mxu0 }
 0x468   : > { %v4503_v39 = vadd.f32 %v4450_v52, %v4277_v8  ;;  %v4280_v40 = vadd.f32 %v8143_v33, %v4279_v26 }
 0x46a   : > { %v4535_v20 = vmax.f32 %v4503_v39, 0.0  ;;  %v4504_v17 = vadd.f32 %v4449_v53, %v4280_v40 }
 0x46c   : > { %4567 = vst.msk [vmem:[%s8157_s23 + $0xd0] sm:$0xff] %vm734_vm0, %v4535_v20  ;;  %v4536_v50 = vmax.f32 %v4504_v17, 0.0  ;;  %v5188_v13 = vpop.f32.mrb[92].mxu0 }
 0x46d   : > { %v4290_v14 = vpop.f32.mrb[93].mxu0 }
 0x46e   : > { %4568 = vst.msk [vmem:[%s8157_s23 + $0xd8] sm:$0xff] %vm734_vm0, %v4536_v50  ;;  %v4291_v42 = vadd.f32 %v8143_v33, %v4290_v14  ;;  %v5189_v41 = vpop.f32.mrb[94].mxu0 }
 0x46f   : > { %v4293_v10 = vpop.f32.mrb[95].mxu0 }
 0x470   : > { %v4505_v60 = vadd.f32 %v4448_v47, %v4291_v42  ;;  %v4294_v24 = vadd.f32 %v8143_v33, %v4293_v10 }
 0x472   : > { %v4537_v23 = vmax.f32 %v4505_v60, 0.0  ;;  %v4506_v22 = vadd.f32 %v4447_v16, %v4294_v24 }
 0x474   : > { %4569 = vst.msk [vmem:[%s8157_s23 + $0xe0] sm:$0xff] %vm734_vm0, %v4537_v23  ;;  %v4538_v21 = vmax.f32 %v4506_v22, 0.0 }
 0x476   : > { %4570 = vst.msk [vmem:[%s8157_s23 + $0xe8] sm:$0xff] %vm734_vm0, %v4538_v21 }
 0x4ac   : > { %v5192_v0 = vpop.f32.mrb[96].mxu0 }
 0x4ad   : > { %v4304_v49 = vpop.f32.mrb[97].mxu0 }
 0x4ae   : > { %v4305_v19 = vadd.f32 %v8143_v33, %v4304_v49  ;;  %v5193_v5 = vpop.f32.mrb[98].mxu0 }
 0x4af   : > { %v4307_v56 = vpop.f32.mrb[99].mxu0 }
 0x4b0   : > { %v4507_v25 = vadd.f32 %v4446_v36, %v4305_v19  ;;  %v4308_v18 = vadd.f32 %v8143_v33, %v4307_v56 }
 0x4b2   : > { %v4539_v54 = vmax.f32 %v4507_v25, 0.0  ;;  %v4508_v43 = vadd.f32 %v4445_v6, %v4308_v18 }
 0x4b4   : > { %4571 = vst.msk [vmem:[%s8157_s23 + $0xf0] sm:$0xff] %vm734_vm0, %v4539_v54  ;;  %v4540_v46 = vmax.f32 %v4508_v43, 0.0 }
 0x4b6   : > { %4572 = vst.msk [vmem:[%s8157_s23 + $0xf8] sm:$0xff] %vm734_vm0, %v4540_v46 }
 0x4b7   : > { %6028 = shalt.err (!%p6025_p5)
}
 0x4b8   : > { %s6029_s27 = scalar_lea.hbm %s8342_s25, 4096  ;;  %s6033_s16 = scalar_lea.hbm %s8408_s9, 8192 }
 0x4b9   : > { %p6030_p6 = scmp.ne.s32.totalorder %s8342_s25, %s6029_s27  ;;  %p6034_p10 = scmp.lt.u32.totalorder %s8342_s25, %s8408_s9 }
 0x4ba   : > { %p6035_p11 = scmp.lt.u32.totalorder %s6033_s16, %s6029_s27  ;;  %p6037_p13 = scmp.lt.u32.totalorder %s6029_s27, %s8342_s25 }
 0x4bb   : > { %p6031_p7 = pnand %p6030_p6, %p6192_p4 }
 0x4bc   : > { %p6036_p12 = por %p6035_p11, %p6034_p10 }
 0x4bd   : > { %p6032_p9 = pneg %p6031_p7 }
 0x4be   : > { %p6038_p0 = por %p6037_p13, %p6036_p12 }
 0x4c0   : > { %p6039_p1 = pnand %p6038_p0, %p6032_p9 }
 0x4c2   : > { %6042 = shalt.err (!%p6039_p1)
}
 0x4c3   : > { %s6101_s28 = smov 128  }
 0x4c4   : > { %5200 = dma.vmem_to_hbm [thread:$0]  (%p6192_p4), %s8346_s20, 4096, %s8342_s25, %s8352_s12, %s6101_s28, %s6101_s28, %s6097_s24  }
 0x4c5 PF: > { %p5207_p2 = scmp.ge.s32.totalorder %s6093_s14, 2  ;;  %s4605_s29 = sand.u32 1, %s6073_s30  }
 0x4c6   : > { %s4606_s27 = scalar_lea.sflag [#allocation3], %s4605_s29 }
 0x4c7   : > { %p5203_p3 = pnand %p5207_p2, %p6199_p8 }
 0x4c9   : > { %6068 = dma.done.wait (!%p5203_p3), %s4606_s27, 4096  }
 0x4ca   : > { %6070 = vsyncadd (!%p5203_p3), %s4606_s27, 4294963200  ;;  %s22_s14 = sadd.s32 1, %s6093_s14   ;;  %s8580_s30 = smov %s6077_s10 }
 0x4cb   : > { %p19_p5 = scmp.ge.s32.totalorder %s22_s14, 4   ;;  %s8581_s10 = smov %s6081_s11 }
 0x4cc   : > { %s8582_s11 = smov %s6205_s22  ;;  %s8583_s12 = smov %s6089_s13 }
 0x4cd   : > { %s8584_s13 = smov %s8586_s17  ;;  %21 = sbr.rel (!%p19_p5) target bundleno = 4 (0x4), region = 97 }
 0x4d4   :  { %4611 = vsyncpa [#allocation3], 1 }
 0x4d5   :  { %4613 = vsyncpa [#allocation3 + $0x1], 1 }

</bundles_post_ra>
